<compile_context>
chip_gen: v7x
topology: tpu7x:2x2x1
jax: 0.10.0
libtpu: 0.0.40
codegen_flags: <defaults>
</compile_context>

<pallas_src>
import math
import functools

import jax
import jax.numpy as jnp
from jax.experimental import pallas as pl
from jax.experimental.pallas import tpu as pltpu

NEG_BIG = -1e30  # additive mask value (finite, so fully-masked rows can't NaN)


# ----------------------------------------------------------------------------
# Fused whole-forward kernel
# ----------------------------------------------------------------------------
def _berteam_kernel(src_ref, bias_ref, tgt_ref, *rest,
                    treedef, n_enc, n_dec, nhead, E,
                    output_probs, pre_softmax):
    out_ref = rest[-1]
    w = jax.tree_util.tree_unflatten(treedef, rest[:-1])  # dict of VMEM refs

    Dh = E // nhead
    scale = 1.0 / math.sqrt(Dh)

    src = src_ref[0].astype(jnp.float32)       # (S1, E)
    kbias = bias_ref[0].astype(jnp.float32)    # (1, S1) additive key-padding bias
    tgt_in = tgt_ref[0].astype(jnp.float32)    # (T, 2E)  [embedding ; sinusoidal PE]

    # --- helpers (trace-time, all operands are VMEM values) -----------------
    def dense(x, wd, key_w, key_b, l=None, act=None):
        W = (wd[key_w][l] if l is not None else wd[key_w][...]).astype(jnp.float32)
        B = (wd[key_b][l] if l is not None else wd[key_b][...]).astype(jnp.float32)
        y = jnp.dot(x, W, preferred_element_type=jnp.float32) + B
        if act == "relu":
            y = jnp.maximum(y, 0.0)
        return y

    def layernorm(x, lnd, l=None):
        g = (lnd["g"][l] if l is not None else lnd["g"][...]).astype(jnp.float32)
        b = (lnd["b"][l] if l is not None else lnd["b"][...]).astype(jnp.float32)
        mu = jnp.mean(x, axis=-1, keepdims=True)
        var = jnp.mean(jnp.square(x - mu), axis=-1, keepdims=True)
        return (x - mu) * jax.lax.rsqrt(var + 1e-5) * g + b

    def attention(q, k, v, wo, bo, bias):
        # q: (Lq, E), k/v: (Lk, E).  Per-head lane slices; output projection is
        # accumulated per head (sum_h o_h @ wo[h*Dh:(h+1)*Dh, :]) so no lane
        # concatenation is needed.
        Lq = q.shape[0]
        acc = jnp.zeros((Lq, E), jnp.float32)
        for h in range(nhead):
            sl = slice(h * Dh, (h + 1) * Dh)
            s = jax.lax.dot_general(q[:, sl], k[:, sl], (((1,), (1,)), ((), ())),
                                    preferred_element_type=jnp.float32) * scale
            if bias is not None:
                s = s + bias                               # (1, Lk) broadcast
            m = jnp.max(s, axis=-1, keepdims=True)
            p = jnp.exp(s - m)
            a = p * pl.reciprocal(jnp.sum(p, axis=-1, keepdims=True), approx=True)
            oh = jnp.dot(a, v[:, sl], preferred_element_type=jnp.float32)   # (Lq, Dh)
            acc = acc + jnp.dot(oh, wo[sl, :], preferred_element_type=jnp.float32)
        return acc + bo

    def mha_self(x, d, l, bias):
        # fused QKV: single (L, E) @ (E, 3E) matmul
        qkv = jnp.dot(x, d["qkv_w"][l].astype(jnp.float32),
                      preferred_element_type=jnp.float32) + d["qkv_b"][l].astype(jnp.float32)
        q, k, v = qkv[:, :E], qkv[:, E:2 * E], qkv[:, 2 * E:]
        return attention(q, k, v, d["o_w"][l].astype(jnp.float32),
                         d["o_b"][l].astype(jnp.float32), bias)

    def mha_cross(x, mem, d, l, bias):
        q = jnp.dot(x, d["q_w"][l].astype(jnp.float32),
                    preferred_element_type=jnp.float32) + d["q_b"][l].astype(jnp.float32)
        kv = jnp.dot(mem, d["kv_w"][l].astype(jnp.float32),
                     preferred_element_type=jnp.float32) + d["kv_b"][l].astype(jnp.float32)
        k, v = kv[:, :E], kv[:, E:]
        return attention(q, k, v, d["o_w"][l].astype(jnp.float32),
                         d["o_b"][l].astype(jnp.float32), bias)

    # --- positional encoder: Linear(2E -> E) on [target embedding ; PE] -----
    # TODO(synk): PositionalAppender source is not provided; implemented as
    # "append sinusoidal PE along the feature dim then Linear(2E -> E)".
    x = dense(tgt_in, w["pos"], "w", "b")

    # --- encoder (post-LayerNorm, ReLU: PyTorch nn.Transformer defaults) ----
    mem = src
    enc = w["enc"]
    for l in range(n_enc):
        a = mha_self(mem, enc["sa"], l, kbias)
        mem = layernorm(mem + a, enc["ln1"], l)
        h = dense(mem, enc["ff"], "w1", "b1", l, act="relu")
        h = dense(h, enc["ff"], "w2", "b2", l)
        mem = layernorm(mem + h, enc["ln2"], l)
    mem = layernorm(mem, w["enc_norm"])

    # --- decoder (no tgt mask in BERTeam.forward) ----------------------------
    dec = w["dec"]
    for l in range(n_dec):
        a = mha_self(x, dec["sa"], l, None)
        x = layernorm(x + a, dec["ln1"], l)
        a = mha_cross(x, mem, dec["ca"], l, kbias)   # memory_key_padding_mask
        x = layernorm(x + a, dec["ln2"], l)
        h = dense(x, dec["ff"], "w1", "b1", l, act="relu")
        h = dense(h, dec["ff"], "w2", "b2", l)
        x = layernorm(x + h, dec["ln3"], l)
    x = layernorm(x, w["dec_norm"])

    # --- output head ---------------------------------------------------------
    if output_probs:
        logits = dense(x, w["out"], "w", "b")        # (T, num_agents)
        if pre_softmax:
            out_ref[0] = logits.astype(out_ref.dtype)
        else:
            m = jnp.max(logits, axis=-1, keepdims=True)
            e = jnp.exp(logits - m)
            out_ref[0] = (e / jnp.sum(e, axis=-1, keepdims=True)).astype(out_ref.dtype)
    else:
        out_ref[0] = x.astype(out_ref.dtype)


# ----------------------------------------------------------------------------
# Host-side wrapper (embedding gather / token & mask concat are glue)
# ----------------------------------------------------------------------------
def sinusoidal_pe(length, d_model):
    pos = jnp.arange(length, dtype=jnp.float32)[:, None]
    i = jnp.arange(0, d_model, 2, dtype=jnp.float32)[None, :]
    ang = pos / jnp.power(10000.0, i / d_model)
    pe = jnp.zeros((length, d_model), jnp.float32)
    pe = pe.at[:, 0::2].set(jnp.sin(ang))
    pe = pe.at[:, 1::2].set(jnp.cos(ang))
    return pe


def berteam_forward(params, input_embedding, target_team, input_mask,
                    output_probs=True, pre_softmax=False, output_layer_idx=0):
    cfg = params["cfg"]
    E, nhead = cfg["E"], cfg["nhead"]
    n_enc, n_dec = cfg["n_enc"], cfg["n_dec"]
    A = cfg["num_agents"]
    N, T = target_team.shape
    emb = params["agent_embedding"]

    cls2 = jnp.broadcast_to(emb[cfg["CLS2"]][None, None, :], (N, 1, E)).astype(jnp.float32)
    if input_embedding is None:
        source = cls2
        S = 0
    else:
        source = jnp.concatenate([input_embedding.astype(jnp.float32), cls2], axis=1)
        S = input_embedding.shape[1]
    if input_mask is None:
        input_mask = jnp.zeros((N, S), bool)
    input_mask = jnp.concatenate([input_mask, jnp.zeros((N, 1), bool)], axis=1)   # (N, S+1)
    S1 = S + 1
    src_bias = jnp.where(input_mask, NEG_BIG, 0.0).astype(jnp.float32).reshape(N, 1, S1)

    target = emb[target_team]                                       # (N, T, E) gather (glue)
    pe = jnp.broadcast_to(sinusoidal_pe(T, E)[None], (N, T, E))
    tgt_in = jnp.concatenate([target, pe], axis=-1)                 # (N, T, 2E)

    # weights tree (select the requested output layer statically)
    w_tree = {**params["weights"],
              "out": params["output_layers"][output_layer_idx]}
    flat, treedef = jax.tree_util.tree_flatten(w_tree)

    data_specs = [
        pl.BlockSpec((1, S1, E), lambda i: (i, 0, 0)),       # source
        pl.BlockSpec((1, 1, S1), lambda i: (i, 0, 0)),       # key-padding bias
        pl.BlockSpec((1, T, 2 * E), lambda i: (i, 0, 0)),    # target emb + PE
    ]
    # full-array weight blocks with constant index maps -> resident in VMEM
    weight_specs = [pl.BlockSpec(a.shape, lambda i, nd=a.ndim: (0,) * nd) for a in flat]

    out_dim = A if output_probs else E
    out_shape = jax.ShapeDtypeStruct((N, T, out_dim), jnp.float32)
    out_spec = pl.BlockSpec((1, T, out_dim), lambda i: (i, 0, 0))

    kernel = functools.partial(
        _berteam_kernel, treedef=treedef, n_enc=n_enc, n_dec=n_dec, nhead=nhead,
        E=E, output_probs=output_probs, pre_softmax=pre_softmax)

    return pl.pallas_call(
        kernel,
        out_shape=out_shape,
        grid=(N,),
        in_specs=data_specs + weight_specs,
        out_specs=out_spec,
        compiler_params=pltpu.CompilerParams(dimension_semantics=("parallel",)),
    )(source, src_bias, tgt_in, *flat)


# ----------------------------------------------------------------------------
# Parameter init (PyTorch-style random init, weights stored as (in, out))
# ----------------------------------------------------------------------------
def _linear_init(key, in_dim, out_dim):
    kw, kb = jax.random.split(key)
    lim = 1.0 / math.sqrt(in_dim)
    w = jax.random.uniform(kw, (in_dim, out_dim), jnp.float32, -lim, lim)
    b = jax.random.uniform(kb, (1, out_dim), jnp.float32, -lim, lim)
    return w, b


def _ln_init(E):
    return {"g": jnp.ones((1, E), jnp.float32), "b": jnp.zeros((1, E), jnp.float32)}


def _enc_layer_init(key, E, F):
    k = jax.random.split(key, 4)
    qkv_w, qkv_b = _linear_init(k[0], E, 3 * E)
    o_w, o_b = _linear_init(k[1], E, E)
    w1, b1 = _linear_init(k[2], E, F)
    w2, b2 = _linear_init(k[3], F, E)
    return {"sa": {"qkv_w": qkv_w, "qkv_b": qkv_b, "o_w": o_w, "o_b": o_b},
            "ln1": _ln_init(E),
            "ff": {"w1": w1, "b1": b1, "w2": w2, "b2": b2},
            "ln2": _ln_init(E)}


def _dec_layer_init(key, E, F):
    k = jax.random.split(key, 7)
    qkv_w, qkv_b = _linear_init(k[0], E, 3 * E)
    sao_w, sao_b = _linear_init(k[1], E, E)
    q_w, q_b = _linear_init(k[2], E, E)
    kv_w, kv_b = _linear_init(k[3], E, 2 * E)
    cao_w, cao_b = _linear_init(k[4], E, E)
    w1, b1 = _linear_init(k[5], E, F)
    w2, b2 = _linear_init(k[6], F, E)
    return {"sa": {"qkv_w": qkv_w, "qkv_b": qkv_b, "o_w": sao_w, "o_b": sao_b},
            "ln1": _ln_init(E),
            "ca": {"q_w": q_w, "q_b": q_b, "kv_w": kv_w, "kv_b": kv_b,
                   "o_w": cao_w, "o_b": cao_b},
            "ln2": _ln_init(E),
            "ff": {"w1": w1, "b1": b1, "w2": w2, "b2": b2},
            "ln3": _ln_init(E)}


def _stack_layers(layers):
    return jax.tree_util.tree_map(lambda *xs: jnp.stack(xs, axis=0), *layers)


def init_berteam(key, num_agents, embedding_dim=32, nhead=4,
                 num_encoder_layers=2, num_decoder_layers=2,
                 dim_feedforward=None, num_output_layers=1):
    E = embedding_dim
    F = dim_feedforward if dim_feedforward is not None else 4 * E
    num_tokens = num_agents + 3
    keys = jax.random.split(key, 2 + num_encoder_layers + num_decoder_layers + num_output_layers)

    emb = 0.02 * jax.random.normal(keys[0], (num_tokens, E), jnp.float32)
    pos_w, pos_b = _linear_init(keys[1], 2 * E, E)
    enc_layers = [_enc_layer_init(keys[2 + i], E, F) for i in range(num_encoder_layers)]
    dec_layers = [_dec_layer_init(keys[2 + num_encoder_layers + i], E, F)
                  for i in range(num_decoder_layers)]
    out_keys = keys[2 + num_encoder_layers + num_decoder_layers:]
    output_layers = []
    for i in range(num_output_layers):
        w, b = _linear_init(out_keys[i], E, num_agents)
        output_layers.append({"w": w, "b": b})

    weights = {
        "pos": {"w": pos_w, "b": pos_b},
        "enc": _stack_layers(enc_layers),
        "dec": _stack_layers(dec_layers),
        "enc_norm": _ln_init(E),
        "dec_norm": _ln_init(E),
    }
    return {
        "cfg": dict(num_agents=num_agents, num_tokens=num_tokens, E=E, nhead=nhead,
                    n_enc=num_encoder_layers, n_dec=num_decoder_layers,
                    CLS=num_agents, CLS2=num_agents + 1, MASK=num_agents + 2),
        "agent_embedding": emb,
        "weights": weights,
        "output_layers": output_layers,
    }


# ----------------------------------------------------------------------------
if __name__ == "__main__":
    num_agents = 5
    E, nhead, n_enc, n_dec, ff = 32, 4, 2, 2, 128
    N, S, T = 2, 3, 5

    params = init_berteam(jax.random.PRNGKey(0), num_agents, E, nhead, n_enc, n_dec, ff)

    k1, k2 = jax.random.split(jax.random.PRNGKey(0))
    input_embedding = jax.random.normal(k1, (N, S, E), jnp.float32)
    team = jax.random.randint(k2, (N, T - 1), 0, num_agents)
    # add_cls_tokens: each team ends with the [CLS] token (== num_agents)
    target_team = jnp.concatenate(
        [team, jnp.full((N, 1), num_agents, team.dtype)], axis=1)     # (N, T)
    input_mask = jnp.zeros((N, S), bool).at[0, S - 1].set(True)

    out = berteam_forward(params, input_embedding, target_team, input_mask)
    out = jax.block_until_ready(out)

    assert out.shape == (N, T, num_agents), out.shape
    row_sums = jnp.sum(out, axis=-1)
    assert float(jnp.max(jnp.abs(row_sums - 1.0))) < 1e-3
    print("KERNEL_OK")
</pallas_src>

<mosaic_0001>
module attributes {stable_mosaic.version = 11 : i64} {
  func.func @_berteam_kernel(%arg0: i32, %arg1: memref<1x4x32xf32, #tpu.memory_space<vmem>>, %arg2: memref<1x1x4xf32, #tpu.memory_space<vmem>>, %arg3: memref<1x5x64xf32, #tpu.memory_space<vmem>>, %arg4: memref<2x1x64xf32, #tpu.memory_space<vmem>>, %arg5: memref<2x32x64xf32, #tpu.memory_space<vmem>>, %arg6: memref<2x1x32xf32, #tpu.memory_space<vmem>>, %arg7: memref<2x32x32xf32, #tpu.memory_space<vmem>>, %arg8: memref<2x1x32xf32, #tpu.memory_space<vmem>>, %arg9: memref<2x32x32xf32, #tpu.memory_space<vmem>>, %arg10: memref<2x1x128xf32, #tpu.memory_space<vmem>>, %arg11: memref<2x1x32xf32, #tpu.memory_space<vmem>>, %arg12: memref<2x32x128xf32, #tpu.memory_space<vmem>>, %arg13: memref<2x128x32xf32, #tpu.memory_space<vmem>>, %arg14: memref<2x1x32xf32, #tpu.memory_space<vmem>>, %arg15: memref<2x1x32xf32, #tpu.memory_space<vmem>>, %arg16: memref<2x1x32xf32, #tpu.memory_space<vmem>>, %arg17: memref<2x1x32xf32, #tpu.memory_space<vmem>>, %arg18: memref<2x1x32xf32, #tpu.memory_space<vmem>>, %arg19: memref<2x1x32xf32, #tpu.memory_space<vmem>>, %arg20: memref<2x1x32xf32, #tpu.memory_space<vmem>>, %arg21: memref<2x32x32xf32, #tpu.memory_space<vmem>>, %arg22: memref<2x1x96xf32, #tpu.memory_space<vmem>>, %arg23: memref<2x32x96xf32, #tpu.memory_space<vmem>>, %arg24: memref<1x32xf32, #tpu.memory_space<vmem>>, %arg25: memref<1x32xf32, #tpu.memory_space<vmem>>, %arg26: memref<2x1x128xf32, #tpu.memory_space<vmem>>, %arg27: memref<2x1x32xf32, #tpu.memory_space<vmem>>, %arg28: memref<2x32x128xf32, #tpu.memory_space<vmem>>, %arg29: memref<2x128x32xf32, #tpu.memory_space<vmem>>, %arg30: memref<2x1x32xf32, #tpu.memory_space<vmem>>, %arg31: memref<2x1x32xf32, #tpu.memory_space<vmem>>, %arg32: memref<2x1x32xf32, #tpu.memory_space<vmem>>, %arg33: memref<2x1x32xf32, #tpu.memory_space<vmem>>, %arg34: memref<2x1x32xf32, #tpu.memory_space<vmem>>, %arg35: memref<2x32x32xf32, #tpu.memory_space<vmem>>, %arg36: memref<2x1x96xf32, #tpu.memory_space<vmem>>, %arg37: memref<2x32x96xf32, #tpu.memory_space<vmem>>, %arg38: memref<1x32xf32, #tpu.memory_space<vmem>>, %arg39: memref<1x32xf32, #tpu.memory_space<vmem>>, %arg40: memref<1x5xf32, #tpu.memory_space<vmem>>, %arg41: memref<32x5xf32, #tpu.memory_space<vmem>>, %arg42: memref<1x32xf32, #tpu.memory_space<vmem>>, %arg43: memref<64x32xf32, #tpu.memory_space<vmem>>, %arg44: memref<1x5x5xf32, #tpu.memory_space<vmem>>) attributes {dimension_semantics = [#tpu.dimension_semantics<parallel>], iteration_bounds = array<i64: 2>, scalar_prefetch = 0 : i64, scratch_operands = 0 : i64, tpu.core_type = #tpu.core_type<tc>, window_params = [{transform_indices = @transform_0, window_bounds = array<i64: 1, 4, 32>}, {transform_indices = @transform_1, window_bounds = array<i64: 1, 1, 4>}, {transform_indices = @transform_2, window_bounds = array<i64: 1, 5, 64>}, {pipeline_mode = #tpu.pipeline_mode<synchronous>, transform_indices = @transform_3, window_bounds = array<i64: 2, 1, 64>}, {pipeline_mode = #tpu.pipeline_mode<synchronous>, transform_indices = @transform_4, window_bounds = array<i64: 2, 32, 64>}, {pipeline_mode = #tpu.pipeline_mode<synchronous>, transform_indices = @transform_5, window_bounds = array<i64: 2, 1, 32>}, {pipeline_mode = #tpu.pipeline_mode<synchronous>, transform_indices = @transform_6, window_bounds = array<i64: 2, 32, 32>}, {pipeline_mode = #tpu.pipeline_mode<synchronous>, transform_indices = @transform_7, window_bounds = array<i64: 2, 1, 32>}, {pipeline_mode = #tpu.pipeline_mode<synchronous>, transform_indices = @transform_8, window_bounds = array<i64: 2, 32, 32>}, {pipeline_mode = #tpu.pipeline_mode<synchronous>, transform_indices = @transform_9, window_bounds = array<i64: 2, 1, 128>}, {pipeline_mode = #tpu.pipeline_mode<synchronous>, transform_indices = @transform_10, window_bounds = array<i64: 2, 1, 32>}, {pipeline_mode = #tpu.pipeline_mode<synchronous>, transform_indices = @transform_11, window_bounds = array<i64: 2, 32, 128>}, {pipeline_mode = #tpu.pipeline_mode<synchronous>, transform_indices = @transform_12, window_bounds = array<i64: 2, 128, 32>}, {pipeline_mode = #tpu.pipeline_mode<synchronous>, transform_indices = @transform_13, window_bounds = array<i64: 2, 1, 32>}, {pipeline_mode = #tpu.pipeline_mode<synchronous>, transform_indices = @transform_14, window_bounds = array<i64: 2, 1, 32>}, {pipeline_mode = #tpu.pipeline_mode<synchronous>, transform_indices = @transform_15, window_bounds = array<i64: 2, 1, 32>}, {pipeline_mode = #tpu.pipeline_mode<synchronous>, transform_indices = @transform_16, window_bounds = array<i64: 2, 1, 32>}, {pipeline_mode = #tpu.pipeline_mode<synchronous>, transform_indices = @transform_17, window_bounds = array<i64: 2, 1, 32>}, {pipeline_mode = #tpu.pipeline_mode<synchronous>, transform_indices = @transform_18, window_bounds = array<i64: 2, 1, 32>}, {pipeline_mode = #tpu.pipeline_mode<synchronous>, transform_indices = @transform_19, window_bounds = array<i64: 2, 1, 32>}, {pipeline_mode = #tpu.pipeline_mode<synchronous>, transform_indices = @transform_20, window_bounds = array<i64: 2, 32, 32>}, {pipeline_mode = #tpu.pipeline_mode<synchronous>, transform_indices = @transform_21, window_bounds = array<i64: 2, 1, 96>}, {pipeline_mode = #tpu.pipeline_mode<synchronous>, transform_indices = @transform_22, window_bounds = array<i64: 2, 32, 96>}, {pipeline_mode = #tpu.pipeline_mode<synchronous>, transform_indices = @transform_23, window_bounds = array<i64: 1, 32>}, {pipeline_mode = #tpu.pipeline_mode<synchronous>, transform_indices = @transform_24, window_bounds = array<i64: 1, 32>}, {pipeline_mode = #tpu.pipeline_mode<synchronous>, transform_indices = @transform_25, window_bounds = array<i64: 2, 1, 128>}, {pipeline_mode = #tpu.pipeline_mode<synchronous>, transform_indices = @transform_26, window_bounds = array<i64: 2, 1, 32>}, {pipeline_mode = #tpu.pipeline_mode<synchronous>, transform_indices = @transform_27, window_bounds = array<i64: 2, 32, 128>}, {pipeline_mode = #tpu.pipeline_mode<synchronous>, transform_indices = @transform_28, window_bounds = array<i64: 2, 128, 32>}, {pipeline_mode = #tpu.pipeline_mode<synchronous>, transform_indices = @transform_29, window_bounds = array<i64: 2, 1, 32>}, {pipeline_mode = #tpu.pipeline_mode<synchronous>, transform_indices = @transform_30, window_bounds = array<i64: 2, 1, 32>}, {pipeline_mode = #tpu.pipeline_mode<synchronous>, transform_indices = @transform_31, window_bounds = array<i64: 2, 1, 32>}, {pipeline_mode = #tpu.pipeline_mode<synchronous>, transform_indices = @transform_32, window_bounds = array<i64: 2, 1, 32>}, {pipeline_mode = #tpu.pipeline_mode<synchronous>, transform_indices = @transform_33, window_bounds = array<i64: 2, 1, 32>}, {pipeline_mode = #tpu.pipeline_mode<synchronous>, transform_indices = @transform_34, window_bounds = array<i64: 2, 32, 32>}, {pipeline_mode = #tpu.pipeline_mode<synchronous>, transform_indices = @transform_35, window_bounds = array<i64: 2, 1, 96>}, {pipeline_mode = #tpu.pipeline_mode<synchronous>, transform_indices = @transform_36, window_bounds = array<i64: 2, 32, 96>}, {pipeline_mode = #tpu.pipeline_mode<synchronous>, transform_indices = @transform_37, window_bounds = array<i64: 1, 32>}, {pipeline_mode = #tpu.pipeline_mode<synchronous>, transform_indices = @transform_38, window_bounds = array<i64: 1, 32>}, {pipeline_mode = #tpu.pipeline_mode<synchronous>, transform_indices = @transform_39, window_bounds = array<i64: 1, 5>}, {pipeline_mode = #tpu.pipeline_mode<synchronous>, transform_indices = @transform_40, window_bounds = array<i64: 32, 5>}, {pipeline_mode = #tpu.pipeline_mode<synchronous>, transform_indices = @transform_41, window_bounds = array<i64: 1, 32>}, {pipeline_mode = #tpu.pipeline_mode<synchronous>, transform_indices = @transform_42, window_bounds = array<i64: 64, 32>}, {transform_indices = @transform_43, window_bounds = array<i64: 1, 5, 5>}]} {
    %c0 = arith.constant 0 : index
    %c0_0 = arith.constant 0 : index
    %c0_1 = arith.constant 0 : index
    %0 = vector.load %arg1[%c0, %c0_0, %c0_1] : memref<1x4x32xf32, #tpu.memory_space<vmem>>, vector<1x4x32xf32>
    %1 = vector.shape_cast %0 : vector<1x4x32xf32> to vector<4x32xf32>
    %c0_2 = arith.constant 0 : index
    %c0_3 = arith.constant 0 : index
    %c0_4 = arith.constant 0 : index
    %2 = vector.load %arg2[%c0_2, %c0_3, %c0_4] : memref<1x1x4xf32, #tpu.memory_space<vmem>>, vector<1x1x4xf32>
    %3 = vector.shape_cast %2 : vector<1x1x4xf32> to vector<1x4xf32>
    %c0_5 = arith.constant 0 : index
    %c0_6 = arith.constant 0 : index
    %c0_7 = arith.constant 0 : index
    %4 = vector.load %arg3[%c0_5, %c0_6, %c0_7] : memref<1x5x64xf32, #tpu.memory_space<vmem>>, vector<1x5x64xf32>
    %5 = vector.shape_cast %4 : vector<1x5x64xf32> to vector<5x64xf32>
    %c0_8 = arith.constant 0 : index
    %c0_9 = arith.constant 0 : index
    %6 = vector.load %arg43[%c0_8, %c0_9] : memref<64x32xf32, #tpu.memory_space<vmem>>, vector<64x32xf32>
    %c0_10 = arith.constant 0 : index
    %c0_11 = arith.constant 0 : index
    %7 = vector.load %arg42[%c0_10, %c0_11] : memref<1x32xf32, #tpu.memory_space<vmem>>, vector<1x32xf32>
    %cst = arith.constant dense<0.000000e+00> : vector<5x32xf32>
    %8 = tpu.matmul %5, %6, %cst {dimension_numbers = #tpu.dot_dimension_numbers<[1], [0], [0], [1], [0, 0, 1, 1], [], []>} : vector<5x64xf32>, vector<64x32xf32>, vector<5x32xf32> -> vector<5x32xf32>
    %9 = vector.broadcast %7 : vector<1x32xf32> to vector<5x32xf32>
    %10 = arith.addf %8, %9 : vector<5x32xf32>
    %c0_12 = arith.constant 0 : index
    %c0_13 = arith.constant 0 : index
    %c0_14 = arith.constant 0 : index
    %11 = vector.load %arg37[%c0_12, %c0_13, %c0_14] : memref<2x32x96xf32, #tpu.memory_space<vmem>>, vector<1x32x96xf32>
    %12 = vector.shape_cast %11 : vector<1x32x96xf32> to vector<32x96xf32>
    %cst_15 = arith.constant dense<0.000000e+00> : vector<4x96xf32>
    %13 = tpu.matmul %1, %12, %cst_15 {dimension_numbers = #tpu.dot_dimension_numbers<[1], [0], [0], [1], [0, 0, 1, 1], [], []>} : vector<4x32xf32>, vector<32x96xf32>, vector<4x96xf32> -> vector<4x96xf32>
    %c0_16 = arith.constant 0 : index
    %c0_17 = arith.constant 0 : index
    %c0_18 = arith.constant 0 : index
    %14 = vector.load %arg36[%c0_16, %c0_17, %c0_18] : memref<2x1x96xf32, #tpu.memory_space<vmem>>, vector<1x1x96xf32>
    %15 = vector.shape_cast %14 : vector<1x1x96xf32> to vector<1x96xf32>
    %16 = vector.broadcast %15 : vector<1x96xf32> to vector<4x96xf32>
    %17 = arith.addf %13, %16 : vector<4x96xf32>
    %18 = vector.extract_strided_slice %17 {offsets = [0, 0], sizes = [4, 32], strides = [1, 1]} : vector<4x96xf32> to vector<4x32xf32>
    %19 = vector.extract_strided_slice %17 {offsets = [0, 32], sizes = [4, 32], strides = [1, 1]} : vector<4x96xf32> to vector<4x32xf32>
    %20 = vector.extract_strided_slice %17 {offsets = [0, 64], sizes = [4, 32], strides = [1, 1]} : vector<4x96xf32> to vector<4x32xf32>
    %c0_19 = arith.constant 0 : index
    %c0_20 = arith.constant 0 : index
    %c0_21 = arith.constant 0 : index
    %21 = vector.load %arg35[%c0_19, %c0_20, %c0_21] : memref<2x32x32xf32, #tpu.memory_space<vmem>>, vector<1x32x32xf32>
    %22 = vector.shape_cast %21 : vector<1x32x32xf32> to vector<32x32xf32>
    %c0_22 = arith.constant 0 : index
    %c0_23 = arith.constant 0 : index
    %c0_24 = arith.constant 0 : index
    %23 = vector.load %arg34[%c0_22, %c0_23, %c0_24] : memref<2x1x32xf32, #tpu.memory_space<vmem>>, vector<1x1x32xf32>
    %24 = vector.shape_cast %23 : vector<1x1x32xf32> to vector<1x32xf32>
    %cst_25 = arith.constant 0.000000e+00 : f32
    %25 = vector.broadcast %cst_25 : f32 to vector<4x32xf32>
    %26 = vector.extract_strided_slice %18 {offsets = [0, 0], sizes = [4, 8], strides = [1, 1]} : vector<4x32xf32> to vector<4x8xf32>
    %27 = vector.extract_strided_slice %19 {offsets = [0, 0], sizes = [4, 8], strides = [1, 1]} : vector<4x32xf32> to vector<4x8xf32>
    %cst_26 = arith.constant dense<0.000000e+00> : vector<4x4xf32>
    %28 = tpu.matmul %26, %27, %cst_26 {dimension_numbers = #tpu.dot_dimension_numbers<[1], [1], [0], [0], [0, 0, 1, 0], [], []>} : vector<4x8xf32>, vector<4x8xf32>, vector<4x4xf32> -> vector<4x4xf32>
    %cst_27 = arith.constant 0.353553385 : f32
    %29 = vector.broadcast %cst_27 : f32 to vector<4x4xf32>
    %30 = arith.mulf %28, %29 : vector<4x4xf32>
    %31 = vector.broadcast %3 : vector<1x4xf32> to vector<4x4xf32>
    %32 = arith.addf %30, %31 : vector<4x4xf32>
    %cst_28 = arith.constant dense<0xFF800000> : vector<4xf32>
    %33 = vector.multi_reduction <maximumf>, %32, %cst_28 [1] : vector<4x4xf32> to vector<4xf32>
    %34 = vector.shape_cast %33 : vector<4xf32> to vector<4x1xf32>
    %35 = vector.broadcast %34 : vector<4x1xf32> to vector<4x4xf32>
    %36 = arith.subf %32, %35 : vector<4x4xf32>
    %37 = math.exp %36 : vector<4x4xf32>
    %cst_29 = arith.constant dense<0.000000e+00> : vector<4xf32>
    %38 = vector.multi_reduction <add>, %37, %cst_29 [1] : vector<4x4xf32> to vector<4xf32>
    %39 = vector.shape_cast %38 : vector<4xf32> to vector<4x1xf32>
    %40 = tpu.reciprocal %39 {approx = true} : vector<4x1xf32> -> vector<4x1xf32>
    %41 = vector.broadcast %40 : vector<4x1xf32> to vector<4x4xf32>
    %42 = arith.mulf %37, %41 : vector<4x4xf32>
    %43 = vector.extract_strided_slice %20 {offsets = [0, 0], sizes = [4, 8], strides = [1, 1]} : vector<4x32xf32> to vector<4x8xf32>
    %cst_30 = arith.constant dense<0.000000e+00> : vector<4x8xf32>
    %44 = tpu.matmul %42, %43, %cst_30 {dimension_numbers = #tpu.dot_dimension_numbers<[1], [0], [0], [1], [0, 0, 1, 1], [], []>} : vector<4x4xf32>, vector<4x8xf32>, vector<4x8xf32> -> vector<4x8xf32>
    %45 = vector.extract_strided_slice %22 {offsets = [0, 0], sizes = [8, 32], strides = [1, 1]} : vector<32x32xf32> to vector<8x32xf32>
    %cst_31 = arith.constant dense<0.000000e+00> : vector<4x32xf32>
    %46 = tpu.matmul %44, %45, %cst_31 {dimension_numbers = #tpu.dot_dimension_numbers<[1], [0], [0], [1], [0, 0, 1, 1], [], []>} : vector<4x8xf32>, vector<8x32xf32>, vector<4x32xf32> -> vector<4x32xf32>
    %47 = arith.addf %25, %46 : vector<4x32xf32>
    %48 = vector.extract_strided_slice %18 {offsets = [0, 8], sizes = [4, 8], strides = [1, 1]} : vector<4x32xf32> to vector<4x8xf32>
    %49 = vector.extract_strided_slice %19 {offsets = [0, 8], sizes = [4, 8], strides = [1, 1]} : vector<4x32xf32> to vector<4x8xf32>
    %cst_32 = arith.constant dense<0.000000e+00> : vector<4x4xf32>
    %50 = tpu.matmul %48, %49, %cst_32 {dimension_numbers = #tpu.dot_dimension_numbers<[1], [1], [0], [0], [0, 0, 1, 0], [], []>} : vector<4x8xf32>, vector<4x8xf32>, vector<4x4xf32> -> vector<4x4xf32>
    %cst_33 = arith.constant 0.353553385 : f32
    %51 = vector.broadcast %cst_33 : f32 to vector<4x4xf32>
    %52 = arith.mulf %50, %51 : vector<4x4xf32>
    %53 = vector.broadcast %3 : vector<1x4xf32> to vector<4x4xf32>
    %54 = arith.addf %52, %53 : vector<4x4xf32>
    %cst_34 = arith.constant dense<0xFF800000> : vector<4xf32>
    %55 = vector.multi_reduction <maximumf>, %54, %cst_34 [1] : vector<4x4xf32> to vector<4xf32>
    %56 = vector.shape_cast %55 : vector<4xf32> to vector<4x1xf32>
    %57 = vector.broadcast %56 : vector<4x1xf32> to vector<4x4xf32>
    %58 = arith.subf %54, %57 : vector<4x4xf32>
    %59 = math.exp %58 : vector<4x4xf32>
    %cst_35 = arith.constant dense<0.000000e+00> : vector<4xf32>
    %60 = vector.multi_reduction <add>, %59, %cst_35 [1] : vector<4x4xf32> to vector<4xf32>
    %61 = vector.shape_cast %60 : vector<4xf32> to vector<4x1xf32>
    %62 = tpu.reciprocal %61 {approx = true} : vector<4x1xf32> -> vector<4x1xf32>
    %63 = vector.broadcast %62 : vector<4x1xf32> to vector<4x4xf32>
    %64 = arith.mulf %59, %63 : vector<4x4xf32>
    %65 = vector.extract_strided_slice %20 {offsets = [0, 8], sizes = [4, 8], strides = [1, 1]} : vector<4x32xf32> to vector<4x8xf32>
    %cst_36 = arith.constant dense<0.000000e+00> : vector<4x8xf32>
    %66 = tpu.matmul %64, %65, %cst_36 {dimension_numbers = #tpu.dot_dimension_numbers<[1], [0], [0], [1], [0, 0, 1, 1], [], []>} : vector<4x4xf32>, vector<4x8xf32>, vector<4x8xf32> -> vector<4x8xf32>
    %67 = vector.extract_strided_slice %22 {offsets = [8, 0], sizes = [8, 32], strides = [1, 1]} : vector<32x32xf32> to vector<8x32xf32>
    %cst_37 = arith.constant dense<0.000000e+00> : vector<4x32xf32>
    %68 = tpu.matmul %66, %67, %cst_37 {dimension_numbers = #tpu.dot_dimension_numbers<[1], [0], [0], [1], [0, 0, 1, 1], [], []>} : vector<4x8xf32>, vector<8x32xf32>, vector<4x32xf32> -> vector<4x32xf32>
    %69 = arith.addf %47, %68 : vector<4x32xf32>
    %70 = vector.extract_strided_slice %18 {offsets = [0, 16], sizes = [4, 8], strides = [1, 1]} : vector<4x32xf32> to vector<4x8xf32>
    %71 = vector.extract_strided_slice %19 {offsets = [0, 16], sizes = [4, 8], strides = [1, 1]} : vector<4x32xf32> to vector<4x8xf32>
    %cst_38 = arith.constant dense<0.000000e+00> : vector<4x4xf32>
    %72 = tpu.matmul %70, %71, %cst_38 {dimension_numbers = #tpu.dot_dimension_numbers<[1], [1], [0], [0], [0, 0, 1, 0], [], []>} : vector<4x8xf32>, vector<4x8xf32>, vector<4x4xf32> -> vector<4x4xf32>
    %cst_39 = arith.constant 0.353553385 : f32
    %73 = vector.broadcast %cst_39 : f32 to vector<4x4xf32>
    %74 = arith.mulf %72, %73 : vector<4x4xf32>
    %75 = vector.broadcast %3 : vector<1x4xf32> to vector<4x4xf32>
    %76 = arith.addf %74, %75 : vector<4x4xf32>
    %cst_40 = arith.constant dense<0xFF800000> : vector<4xf32>
    %77 = vector.multi_reduction <maximumf>, %76, %cst_40 [1] : vector<4x4xf32> to vector<4xf32>
    %78 = vector.shape_cast %77 : vector<4xf32> to vector<4x1xf32>
    %79 = vector.broadcast %78 : vector<4x1xf32> to vector<4x4xf32>
    %80 = arith.subf %76, %79 : vector<4x4xf32>
    %81 = math.exp %80 : vector<4x4xf32>
    %cst_41 = arith.constant dense<0.000000e+00> : vector<4xf32>
    %82 = vector.multi_reduction <add>, %81, %cst_41 [1] : vector<4x4xf32> to vector<4xf32>
    %83 = vector.shape_cast %82 : vector<4xf32> to vector<4x1xf32>
    %84 = tpu.reciprocal %83 {approx = true} : vector<4x1xf32> -> vector<4x1xf32>
    %85 = vector.broadcast %84 : vector<4x1xf32> to vector<4x4xf32>
    %86 = arith.mulf %81, %85 : vector<4x4xf32>
    %87 = vector.extract_strided_slice %20 {offsets = [0, 16], sizes = [4, 8], strides = [1, 1]} : vector<4x32xf32> to vector<4x8xf32>
    %cst_42 = arith.constant dense<0.000000e+00> : vector<4x8xf32>
    %88 = tpu.matmul %86, %87, %cst_42 {dimension_numbers = #tpu.dot_dimension_numbers<[1], [0], [0], [1], [0, 0, 1, 1], [], []>} : vector<4x4xf32>, vector<4x8xf32>, vector<4x8xf32> -> vector<4x8xf32>
    %89 = vector.extract_strided_slice %22 {offsets = [16, 0], sizes = [8, 32], strides = [1, 1]} : vector<32x32xf32> to vector<8x32xf32>
    %cst_43 = arith.constant dense<0.000000e+00> : vector<4x32xf32>
    %90 = tpu.matmul %88, %89, %cst_43 {dimension_numbers = #tpu.dot_dimension_numbers<[1], [0], [0], [1], [0, 0, 1, 1], [], []>} : vector<4x8xf32>, vector<8x32xf32>, vector<4x32xf32> -> vector<4x32xf32>
    %91 = arith.addf %69, %90 : vector<4x32xf32>
    %92 = vector.extract_strided_slice %18 {offsets = [0, 24], sizes = [4, 8], strides = [1, 1]} : vector<4x32xf32> to vector<4x8xf32>
    %93 = vector.extract_strided_slice %19 {offsets = [0, 24], sizes = [4, 8], strides = [1, 1]} : vector<4x32xf32> to vector<4x8xf32>
    %cst_44 = arith.constant dense<0.000000e+00> : vector<4x4xf32>
    %94 = tpu.matmul %92, %93, %cst_44 {dimension_numbers = #tpu.dot_dimension_numbers<[1], [1], [0], [0], [0, 0, 1, 0], [], []>} : vector<4x8xf32>, vector<4x8xf32>, vector<4x4xf32> -> vector<4x4xf32>
    %cst_45 = arith.constant 0.353553385 : f32
    %95 = vector.broadcast %cst_45 : f32 to vector<4x4xf32>
    %96 = arith.mulf %94, %95 : vector<4x4xf32>
    %97 = vector.broadcast %3 : vector<1x4xf32> to vector<4x4xf32>
    %98 = arith.addf %96, %97 : vector<4x4xf32>
    %cst_46 = arith.constant dense<0xFF800000> : vector<4xf32>
    %99 = vector.multi_reduction <maximumf>, %98, %cst_46 [1] : vector<4x4xf32> to vector<4xf32>
    %100 = vector.shape_cast %99 : vector<4xf32> to vector<4x1xf32>
    %101 = vector.broadcast %100 : vector<4x1xf32> to vector<4x4xf32>
    %102 = arith.subf %98, %101 : vector<4x4xf32>
    %103 = math.exp %102 : vector<4x4xf32>
    %cst_47 = arith.constant dense<0.000000e+00> : vector<4xf32>
    %104 = vector.multi_reduction <add>, %103, %cst_47 [1] : vector<4x4xf32> to vector<4xf32>
    %105 = vector.shape_cast %104 : vector<4xf32> to vector<4x1xf32>
    %106 = tpu.reciprocal %105 {approx = true} : vector<4x1xf32> -> vector<4x1xf32>
    %107 = vector.broadcast %106 : vector<4x1xf32> to vector<4x4xf32>
    %108 = arith.mulf %103, %107 : vector<4x4xf32>
    %109 = vector.extract_strided_slice %20 {offsets = [0, 24], sizes = [4, 8], strides = [1, 1]} : vector<4x32xf32> to vector<4x8xf32>
    %cst_48 = arith.constant dense<0.000000e+00> : vector<4x8xf32>
    %110 = tpu.matmul %108, %109, %cst_48 {dimension_numbers = #tpu.dot_dimension_numbers<[1], [0], [0], [1], [0, 0, 1, 1], [], []>} : vector<4x4xf32>, vector<4x8xf32>, vector<4x8xf32> -> vector<4x8xf32>
    %111 = vector.extract_strided_slice %22 {offsets = [24, 0], sizes = [8, 32], strides = [1, 1]} : vector<32x32xf32> to vector<8x32xf32>
    %cst_49 = arith.constant dense<0.000000e+00> : vector<4x32xf32>
    %112 = tpu.matmul %110, %111, %cst_49 {dimension_numbers = #tpu.dot_dimension_numbers<[1], [0], [0], [1], [0, 0, 1, 1], [], []>} : vector<4x8xf32>, vector<8x32xf32>, vector<4x32xf32> -> vector<4x32xf32>
    %113 = arith.addf %91, %112 : vector<4x32xf32>
    %114 = vector.broadcast %24 : vector<1x32xf32> to vector<4x32xf32>
    %115 = arith.addf %113, %114 : vector<4x32xf32>
    %116 = arith.addf %1, %115 : vector<4x32xf32>
    %c0_50 = arith.constant 0 : index
    %c0_51 = arith.constant 0 : index
    %c0_52 = arith.constant 0 : index
    %117 = vector.load %arg31[%c0_50, %c0_51, %c0_52] : memref<2x1x32xf32, #tpu.memory_space<vmem>>, vector<1x1x32xf32>
    %118 = vector.shape_cast %117 : vector<1x1x32xf32> to vector<1x32xf32>
    %c0_53 = arith.constant 0 : index
    %c0_54 = arith.constant 0 : index
    %c0_55 = arith.constant 0 : index
    %119 = vector.load %arg30[%c0_53, %c0_54, %c0_55] : memref<2x1x32xf32, #tpu.memory_space<vmem>>, vector<1x1x32xf32>
    %120 = vector.shape_cast %119 : vector<1x1x32xf32> to vector<1x32xf32>
    %cst_56 = arith.constant dense<0.000000e+00> : vector<4xf32>
    %121 = vector.multi_reduction <add>, %116, %cst_56 [1] : vector<4x32xf32> to vector<4xf32>
    %122 = vector.shape_cast %121 : vector<4xf32> to vector<4x1xf32>
    %cst_57 = arith.constant 3.200000e+01 : f32
    %123 = vector.broadcast %cst_57 : f32 to vector<4x1xf32>
    %124 = arith.divf %122, %123 : vector<4x1xf32>
    %125 = vector.broadcast %124 : vector<4x1xf32> to vector<4x32xf32>
    %126 = arith.subf %116, %125 : vector<4x32xf32>
    %127 = arith.mulf %126, %126 : vector<4x32xf32>
    %cst_58 = arith.constant dense<0.000000e+00> : vector<4xf32>
    %128 = vector.multi_reduction <add>, %127, %cst_58 [1] : vector<4x32xf32> to vector<4xf32>
    %129 = vector.shape_cast %128 : vector<4xf32> to vector<4x1xf32>
    %cst_59 = arith.constant 3.200000e+01 : f32
    %130 = vector.broadcast %cst_59 : f32 to vector<4x1xf32>
    %131 = arith.divf %129, %130 : vector<4x1xf32>
    %132 = vector.broadcast %124 : vector<4x1xf32> to vector<4x32xf32>
    %133 = arith.subf %116, %132 : vector<4x32xf32>
    %cst_60 = arith.constant 9.99999974E-6 : f32
    %134 = vector.broadcast %cst_60 : f32 to vector<4x1xf32>
    %135 = arith.addf %131, %134 : vector<4x1xf32>
    %136 = math.rsqrt %135 : vector<4x1xf32>
    %137 = vector.broadcast %136 : vector<4x1xf32> to vector<4x32xf32>
    %138 = arith.mulf %133, %137 : vector<4x32xf32>
    %139 = vector.broadcast %118 : vector<1x32xf32> to vector<4x32xf32>
    %140 = arith.mulf %138, %139 : vector<4x32xf32>
    %141 = vector.broadcast %120 : vector<1x32xf32> to vector<4x32xf32>
    %142 = arith.addf %140, %141 : vector<4x32xf32>
    %c0_61 = arith.constant 0 : index
    %c0_62 = arith.constant 0 : index
    %c0_63 = arith.constant 0 : index
    %143 = vector.load %arg28[%c0_61, %c0_62, %c0_63] : memref<2x32x128xf32, #tpu.memory_space<vmem>>, vector<1x32x128xf32>
    %144 = vector.shape_cast %143 : vector<1x32x128xf32> to vector<32x128xf32>
    %c0_64 = arith.constant 0 : index
    %c0_65 = arith.constant 0 : index
    %c0_66 = arith.constant 0 : index
    %145 = vector.load %arg26[%c0_64, %c0_65, %c0_66] : memref<2x1x128xf32, #tpu.memory_space<vmem>>, vector<1x1x128xf32>
    %146 = vector.shape_cast %145 : vector<1x1x128xf32> to vector<1x128xf32>
    %cst_67 = arith.constant dense<0.000000e+00> : vector<4x128xf32>
    %147 = tpu.matmul %142, %144, %cst_67 {dimension_numbers = #tpu.dot_dimension_numbers<[1], [0], [0], [1], [0, 0, 1, 1], [], []>} : vector<4x32xf32>, vector<32x128xf32>, vector<4x128xf32> -> vector<4x128xf32>
    %148 = vector.broadcast %146 : vector<1x128xf32> to vector<4x128xf32>
    %149 = arith.addf %147, %148 : vector<4x128xf32>
    %cst_68 = arith.constant 0.000000e+00 : f32
    %150 = vector.broadcast %cst_68 : f32 to vector<4x128xf32>
    %151 = arith.maximumf %149, %150 : vector<4x128xf32>
    %c0_69 = arith.constant 0 : index
    %c0_70 = arith.constant 0 : index
    %c0_71 = arith.constant 0 : index
    %152 = vector.load %arg29[%c0_69, %c0_70, %c0_71] : memref<2x128x32xf32, #tpu.memory_space<vmem>>, vector<1x128x32xf32>
    %153 = vector.shape_cast %152 : vector<1x128x32xf32> to vector<128x32xf32>
    %c0_72 = arith.constant 0 : index
    %c0_73 = arith.constant 0 : index
    %c0_74 = arith.constant 0 : index
    %154 = vector.load %arg27[%c0_72, %c0_73, %c0_74] : memref<2x1x32xf32, #tpu.memory_space<vmem>>, vector<1x1x32xf32>
    %155 = vector.shape_cast %154 : vector<1x1x32xf32> to vector<1x32xf32>
    %cst_75 = arith.constant dense<0.000000e+00> : vector<4x32xf32>
    %156 = tpu.matmul %151, %153, %cst_75 {dimension_numbers = #tpu.dot_dimension_numbers<[1], [0], [0], [1], [0, 0, 1, 1], [], []>} : vector<4x128xf32>, vector<128x32xf32>, vector<4x32xf32> -> vector<4x32xf32>
    %157 = vector.broadcast %155 : vector<1x32xf32> to vector<4x32xf32>
    %158 = arith.addf %156, %157 : vector<4x32xf32>
    %159 = arith.addf %142, %158 : vector<4x32xf32>
    %c0_76 = arith.constant 0 : index
    %c0_77 = arith.constant 0 : index
    %c0_78 = arith.constant 0 : index
    %160 = vector.load %arg33[%c0_76, %c0_77, %c0_78] : memref<2x1x32xf32, #tpu.memory_space<vmem>>, vector<1x1x32xf32>
    %161 = vector.shape_cast %160 : vector<1x1x32xf32> to vector<1x32xf32>
    %c0_79 = arith.constant 0 : index
    %c0_80 = arith.constant 0 : index
    %c0_81 = arith.constant 0 : index
    %162 = vector.load %arg32[%c0_79, %c0_80, %c0_81] : memref<2x1x32xf32, #tpu.memory_space<vmem>>, vector<1x1x32xf32>
    %163 = vector.shape_cast %162 : vector<1x1x32xf32> to vector<1x32xf32>
    %cst_82 = arith.constant dense<0.000000e+00> : vector<4xf32>
    %164 = vector.multi_reduction <add>, %159, %cst_82 [1] : vector<4x32xf32> to vector<4xf32>
    %165 = vector.shape_cast %164 : vector<4xf32> to vector<4x1xf32>
    %cst_83 = arith.constant 3.200000e+01 : f32
    %166 = vector.broadcast %cst_83 : f32 to vector<4x1xf32>
    %167 = arith.divf %165, %166 : vector<4x1xf32>
    %168 = vector.broadcast %167 : vector<4x1xf32> to vector<4x32xf32>
    %169 = arith.subf %159, %168 : vector<4x32xf32>
    %170 = arith.mulf %169, %169 : vector<4x32xf32>
    %cst_84 = arith.constant dense<0.000000e+00> : vector<4xf32>
    %171 = vector.multi_reduction <add>, %170, %cst_84 [1] : vector<4x32xf32> to vector<4xf32>
    %172 = vector.shape_cast %171 : vector<4xf32> to vector<4x1xf32>
    %cst_85 = arith.constant 3.200000e+01 : f32
    %173 = vector.broadcast %cst_85 : f32 to vector<4x1xf32>
    %174 = arith.divf %172, %173 : vector<4x1xf32>
    %175 = vector.broadcast %167 : vector<4x1xf32> to vector<4x32xf32>
    %176 = arith.subf %159, %175 : vector<4x32xf32>
    %cst_86 = arith.constant 9.99999974E-6 : f32
    %177 = vector.broadcast %cst_86 : f32 to vector<4x1xf32>
    %178 = arith.addf %174, %177 : vector<4x1xf32>
    %179 = math.rsqrt %178 : vector<4x1xf32>
    %180 = vector.broadcast %179 : vector<4x1xf32> to vector<4x32xf32>
    %181 = arith.mulf %176, %180 : vector<4x32xf32>
    %182 = vector.broadcast %161 : vector<1x32xf32> to vector<4x32xf32>
    %183 = arith.mulf %181, %182 : vector<4x32xf32>
    %184 = vector.broadcast %163 : vector<1x32xf32> to vector<4x32xf32>
    %185 = arith.addf %183, %184 : vector<4x32xf32>
    %c1 = arith.constant 1 : index
    %c0_87 = arith.constant 0 : index
    %c0_88 = arith.constant 0 : index
    %186 = vector.load %arg37[%c1, %c0_87, %c0_88] : memref<2x32x96xf32, #tpu.memory_space<vmem>>, vector<1x32x96xf32>
    %187 = vector.shape_cast %186 : vector<1x32x96xf32> to vector<32x96xf32>
    %cst_89 = arith.constant dense<0.000000e+00> : vector<4x96xf32>
    %188 = tpu.matmul %185, %187, %cst_89 {dimension_numbers = #tpu.dot_dimension_numbers<[1], [0], [0], [1], [0, 0, 1, 1], [], []>} : vector<4x32xf32>, vector<32x96xf32>, vector<4x96xf32> -> vector<4x96xf32>
    %c1_90 = arith.constant 1 : index
    %c0_91 = arith.constant 0 : index
    %c0_92 = arith.constant 0 : index
    %189 = vector.load %arg36[%c1_90, %c0_91, %c0_92] : memref<2x1x96xf32, #tpu.memory_space<vmem>>, vector<1x1x96xf32>
    %190 = vector.shape_cast %189 : vector<1x1x96xf32> to vector<1x96xf32>
    %191 = vector.broadcast %190 : vector<1x96xf32> to vector<4x96xf32>
    %192 = arith.addf %188, %191 : vector<4x96xf32>
    %193 = vector.extract_strided_slice %192 {offsets = [0, 0], sizes = [4, 32], strides = [1, 1]} : vector<4x96xf32> to vector<4x32xf32>
    %194 = vector.extract_strided_slice %192 {offsets = [0, 32], sizes = [4, 32], strides = [1, 1]} : vector<4x96xf32> to vector<4x32xf32>
    %195 = vector.extract_strided_slice %192 {offsets = [0, 64], sizes = [4, 32], strides = [1, 1]} : vector<4x96xf32> to vector<4x32xf32>
    %c1_93 = arith.constant 1 : index
    %c0_94 = arith.constant 0 : index
    %c0_95 = arith.constant 0 : index
    %196 = vector.load %arg35[%c1_93, %c0_94, %c0_95] : memref<2x32x32xf32, #tpu.memory_space<vmem>>, vector<1x32x32xf32>
    %197 = vector.shape_cast %196 : vector<1x32x32xf32> to vector<32x32xf32>
    %c1_96 = arith.constant 1 : index
    %c0_97 = arith.constant 0 : index
    %c0_98 = arith.constant 0 : index
    %198 = vector.load %arg34[%c1_96, %c0_97, %c0_98] : memref<2x1x32xf32, #tpu.memory_space<vmem>>, vector<1x1x32xf32>
    %199 = vector.shape_cast %198 : vector<1x1x32xf32> to vector<1x32xf32>
    %cst_99 = arith.constant 0.000000e+00 : f32
    %200 = vector.broadcast %cst_99 : f32 to vector<4x32xf32>
    %201 = vector.extract_strided_slice %193 {offsets = [0, 0], sizes = [4, 8], strides = [1, 1]} : vector<4x32xf32> to vector<4x8xf32>
    %202 = vector.extract_strided_slice %194 {offsets = [0, 0], sizes = [4, 8], strides = [1, 1]} : vector<4x32xf32> to vector<4x8xf32>
    %cst_100 = arith.constant dense<0.000000e+00> : vector<4x4xf32>
    %203 = tpu.matmul %201, %202, %cst_100 {dimension_numbers = #tpu.dot_dimension_numbers<[1], [1], [0], [0], [0, 0, 1, 0], [], []>} : vector<4x8xf32>, vector<4x8xf32>, vector<4x4xf32> -> vector<4x4xf32>
    %cst_101 = arith.constant 0.353553385 : f32
    %204 = vector.broadcast %cst_101 : f32 to vector<4x4xf32>
    %205 = arith.mulf %203, %204 : vector<4x4xf32>
    %206 = vector.broadcast %3 : vector<1x4xf32> to vector<4x4xf32>
    %207 = arith.addf %205, %206 : vector<4x4xf32>
    %cst_102 = arith.constant dense<0xFF800000> : vector<4xf32>
    %208 = vector.multi_reduction <maximumf>, %207, %cst_102 [1] : vector<4x4xf32> to vector<4xf32>
    %209 = vector.shape_cast %208 : vector<4xf32> to vector<4x1xf32>
    %210 = vector.broadcast %209 : vector<4x1xf32> to vector<4x4xf32>
    %211 = arith.subf %207, %210 : vector<4x4xf32>
    %212 = math.exp %211 : vector<4x4xf32>
    %cst_103 = arith.constant dense<0.000000e+00> : vector<4xf32>
    %213 = vector.multi_reduction <add>, %212, %cst_103 [1] : vector<4x4xf32> to vector<4xf32>
    %214 = vector.shape_cast %213 : vector<4xf32> to vector<4x1xf32>
    %215 = tpu.reciprocal %214 {approx = true} : vector<4x1xf32> -> vector<4x1xf32>
    %216 = vector.broadcast %215 : vector<4x1xf32> to vector<4x4xf32>
    %217 = arith.mulf %212, %216 : vector<4x4xf32>
    %218 = vector.extract_strided_slice %195 {offsets = [0, 0], sizes = [4, 8], strides = [1, 1]} : vector<4x32xf32> to vector<4x8xf32>
    %cst_104 = arith.constant dense<0.000000e+00> : vector<4x8xf32>
    %219 = tpu.matmul %217, %218, %cst_104 {dimension_numbers = #tpu.dot_dimension_numbers<[1], [0], [0], [1], [0, 0, 1, 1], [], []>} : vector<4x4xf32>, vector<4x8xf32>, vector<4x8xf32> -> vector<4x8xf32>
    %220 = vector.extract_strided_slice %197 {offsets = [0, 0], sizes = [8, 32], strides = [1, 1]} : vector<32x32xf32> to vector<8x32xf32>
    %cst_105 = arith.constant dense<0.000000e+00> : vector<4x32xf32>
    %221 = tpu.matmul %219, %220, %cst_105 {dimension_numbers = #tpu.dot_dimension_numbers<[1], [0], [0], [1], [0, 0, 1, 1], [], []>} : vector<4x8xf32>, vector<8x32xf32>, vector<4x32xf32> -> vector<4x32xf32>
    %222 = arith.addf %200, %221 : vector<4x32xf32>
    %223 = vector.extract_strided_slice %193 {offsets = [0, 8], sizes = [4, 8], strides = [1, 1]} : vector<4x32xf32> to vector<4x8xf32>
    %224 = vector.extract_strided_slice %194 {offsets = [0, 8], sizes = [4, 8], strides = [1, 1]} : vector<4x32xf32> to vector<4x8xf32>
    %cst_106 = arith.constant dense<0.000000e+00> : vector<4x4xf32>
    %225 = tpu.matmul %223, %224, %cst_106 {dimension_numbers = #tpu.dot_dimension_numbers<[1], [1], [0], [0], [0, 0, 1, 0], [], []>} : vector<4x8xf32>, vector<4x8xf32>, vector<4x4xf32> -> vector<4x4xf32>
    %cst_107 = arith.constant 0.353553385 : f32
    %226 = vector.broadcast %cst_107 : f32 to vector<4x4xf32>
    %227 = arith.mulf %225, %226 : vector<4x4xf32>
    %228 = vector.broadcast %3 : vector<1x4xf32> to vector<4x4xf32>
    %229 = arith.addf %227, %228 : vector<4x4xf32>
    %cst_108 = arith.constant dense<0xFF800000> : vector<4xf32>
    %230 = vector.multi_reduction <maximumf>, %229, %cst_108 [1] : vector<4x4xf32> to vector<4xf32>
    %231 = vector.shape_cast %230 : vector<4xf32> to vector<4x1xf32>
    %232 = vector.broadcast %231 : vector<4x1xf32> to vector<4x4xf32>
    %233 = arith.subf %229, %232 : vector<4x4xf32>
    %234 = math.exp %233 : vector<4x4xf32>
    %cst_109 = arith.constant dense<0.000000e+00> : vector<4xf32>
    %235 = vector.multi_reduction <add>, %234, %cst_109 [1] : vector<4x4xf32> to vector<4xf32>
    %236 = vector.shape_cast %235 : vector<4xf32> to vector<4x1xf32>
    %237 = tpu.reciprocal %236 {approx = true} : vector<4x1xf32> -> vector<4x1xf32>
    %238 = vector.broadcast %237 : vector<4x1xf32> to vector<4x4xf32>
    %239 = arith.mulf %234, %238 : vector<4x4xf32>
    %240 = vector.extract_strided_slice %195 {offsets = [0, 8], sizes = [4, 8], strides = [1, 1]} : vector<4x32xf32> to vector<4x8xf32>
    %cst_110 = arith.constant dense<0.000000e+00> : vector<4x8xf32>
    %241 = tpu.matmul %239, %240, %cst_110 {dimension_numbers = #tpu.dot_dimension_numbers<[1], [0], [0], [1], [0, 0, 1, 1], [], []>} : vector<4x4xf32>, vector<4x8xf32>, vector<4x8xf32> -> vector<4x8xf32>
    %242 = vector.extract_strided_slice %197 {offsets = [8, 0], sizes = [8, 32], strides = [1, 1]} : vector<32x32xf32> to vector<8x32xf32>
    %cst_111 = arith.constant dense<0.000000e+00> : vector<4x32xf32>
    %243 = tpu.matmul %241, %242, %cst_111 {dimension_numbers = #tpu.dot_dimension_numbers<[1], [0], [0], [1], [0, 0, 1, 1], [], []>} : vector<4x8xf32>, vector<8x32xf32>, vector<4x32xf32> -> vector<4x32xf32>
    %244 = arith.addf %222, %243 : vector<4x32xf32>
    %245 = vector.extract_strided_slice %193 {offsets = [0, 16], sizes = [4, 8], strides = [1, 1]} : vector<4x32xf32> to vector<4x8xf32>
    %246 = vector.extract_strided_slice %194 {offsets = [0, 16], sizes = [4, 8], strides = [1, 1]} : vector<4x32xf32> to vector<4x8xf32>
    %cst_112 = arith.constant dense<0.000000e+00> : vector<4x4xf32>
    %247 = tpu.matmul %245, %246, %cst_112 {dimension_numbers = #tpu.dot_dimension_numbers<[1], [1], [0], [0], [0, 0, 1, 0], [], []>} : vector<4x8xf32>, vector<4x8xf32>, vector<4x4xf32> -> vector<4x4xf32>
    %cst_113 = arith.constant 0.353553385 : f32
    %248 = vector.broadcast %cst_113 : f32 to vector<4x4xf32>
    %249 = arith.mulf %247, %248 : vector<4x4xf32>
    %250 = vector.broadcast %3 : vector<1x4xf32> to vector<4x4xf32>
    %251 = arith.addf %249, %250 : vector<4x4xf32>
    %cst_114 = arith.constant dense<0xFF800000> : vector<4xf32>
    %252 = vector.multi_reduction <maximumf>, %251, %cst_114 [1] : vector<4x4xf32> to vector<4xf32>
    %253 = vector.shape_cast %252 : vector<4xf32> to vector<4x1xf32>
    %254 = vector.broadcast %253 : vector<4x1xf32> to vector<4x4xf32>
    %255 = arith.subf %251, %254 : vector<4x4xf32>
    %256 = math.exp %255 : vector<4x4xf32>
    %cst_115 = arith.constant dense<0.000000e+00> : vector<4xf32>
    %257 = vector.multi_reduction <add>, %256, %cst_115 [1] : vector<4x4xf32> to vector<4xf32>
    %258 = vector.shape_cast %257 : vector<4xf32> to vector<4x1xf32>
    %259 = tpu.reciprocal %258 {approx = true} : vector<4x1xf32> -> vector<4x1xf32>
    %260 = vector.broadcast %259 : vector<4x1xf32> to vector<4x4xf32>
    %261 = arith.mulf %256, %260 : vector<4x4xf32>
    %262 = vector.extract_strided_slice %195 {offsets = [0, 16], sizes = [4, 8], strides = [1, 1]} : vector<4x32xf32> to vector<4x8xf32>
    %cst_116 = arith.constant dense<0.000000e+00> : vector<4x8xf32>
    %263 = tpu.matmul %261, %262, %cst_116 {dimension_numbers = #tpu.dot_dimension_numbers<[1], [0], [0], [1], [0, 0, 1, 1], [], []>} : vector<4x4xf32>, vector<4x8xf32>, vector<4x8xf32> -> vector<4x8xf32>
    %264 = vector.extract_strided_slice %197 {offsets = [16, 0], sizes = [8, 32], strides = [1, 1]} : vector<32x32xf32> to vector<8x32xf32>
    %cst_117 = arith.constant dense<0.000000e+00> : vector<4x32xf32>
    %265 = tpu.matmul %263, %264, %cst_117 {dimension_numbers = #tpu.dot_dimension_numbers<[1], [0], [0], [1], [0, 0, 1, 1], [], []>} : vector<4x8xf32>, vector<8x32xf32>, vector<4x32xf32> -> vector<4x32xf32>
    %266 = arith.addf %244, %265 : vector<4x32xf32>
    %267 = vector.extract_strided_slice %193 {offsets = [0, 24], sizes = [4, 8], strides = [1, 1]} : vector<4x32xf32> to vector<4x8xf32>
    %268 = vector.extract_strided_slice %194 {offsets = [0, 24], sizes = [4, 8], strides = [1, 1]} : vector<4x32xf32> to vector<4x8xf32>
    %cst_118 = arith.constant dense<0.000000e+00> : vector<4x4xf32>
    %269 = tpu.matmul %267, %268, %cst_118 {dimension_numbers = #tpu.dot_dimension_numbers<[1], [1], [0], [0], [0, 0, 1, 0], [], []>} : vector<4x8xf32>, vector<4x8xf32>, vector<4x4xf32> -> vector<4x4xf32>
    %cst_119 = arith.constant 0.353553385 : f32
    %270 = vector.broadcast %cst_119 : f32 to vector<4x4xf32>
    %271 = arith.mulf %269, %270 : vector<4x4xf32>
    %272 = vector.broadcast %3 : vector<1x4xf32> to vector<4x4xf32>
    %273 = arith.addf %271, %272 : vector<4x4xf32>
    %cst_120 = arith.constant dense<0xFF800000> : vector<4xf32>
    %274 = vector.multi_reduction <maximumf>, %273, %cst_120 [1] : vector<4x4xf32> to vector<4xf32>
    %275 = vector.shape_cast %274 : vector<4xf32> to vector<4x1xf32>
    %276 = vector.broadcast %275 : vector<4x1xf32> to vector<4x4xf32>
    %277 = arith.subf %273, %276 : vector<4x4xf32>
    %278 = math.exp %277 : vector<4x4xf32>
    %cst_121 = arith.constant dense<0.000000e+00> : vector<4xf32>
    %279 = vector.multi_reduction <add>, %278, %cst_121 [1] : vector<4x4xf32> to vector<4xf32>
    %280 = vector.shape_cast %279 : vector<4xf32> to vector<4x1xf32>
    %281 = tpu.reciprocal %280 {approx = true} : vector<4x1xf32> -> vector<4x1xf32>
    %282 = vector.broadcast %281 : vector<4x1xf32> to vector<4x4xf32>
    %283 = arith.mulf %278, %282 : vector<4x4xf32>
    %284 = vector.extract_strided_slice %195 {offsets = [0, 24], sizes = [4, 8], strides = [1, 1]} : vector<4x32xf32> to vector<4x8xf32>
    %cst_122 = arith.constant dense<0.000000e+00> : vector<4x8xf32>
    %285 = tpu.matmul %283, %284, %cst_122 {dimension_numbers = #tpu.dot_dimension_numbers<[1], [0], [0], [1], [0, 0, 1, 1], [], []>} : vector<4x4xf32>, vector<4x8xf32>, vector<4x8xf32> -> vector<4x8xf32>
    %286 = vector.extract_strided_slice %197 {offsets = [24, 0], sizes = [8, 32], strides = [1, 1]} : vector<32x32xf32> to vector<8x32xf32>
    %cst_123 = arith.constant dense<0.000000e+00> : vector<4x32xf32>
    %287 = tpu.matmul %285, %286, %cst_123 {dimension_numbers = #tpu.dot_dimension_numbers<[1], [0], [0], [1], [0, 0, 1, 1], [], []>} : vector<4x8xf32>, vector<8x32xf32>, vector<4x32xf32> -> vector<4x32xf32>
    %288 = arith.addf %266, %287 : vector<4x32xf32>
    %289 = vector.broadcast %199 : vector<1x32xf32> to vector<4x32xf32>
    %290 = arith.addf %288, %289 : vector<4x32xf32>
    %291 = arith.addf %185, %290 : vector<4x32xf32>
    %c1_124 = arith.constant 1 : index
    %c0_125 = arith.constant 0 : index
    %c0_126 = arith.constant 0 : index
    %292 = vector.load %arg31[%c1_124, %c0_125, %c0_126] : memref<2x1x32xf32, #tpu.memory_space<vmem>>, vector<1x1x32xf32>
    %293 = vector.shape_cast %292 : vector<1x1x32xf32> to vector<1x32xf32>
    %c1_127 = arith.constant 1 : index
    %c0_128 = arith.constant 0 : index
    %c0_129 = arith.constant 0 : index
    %294 = vector.load %arg30[%c1_127, %c0_128, %c0_129] : memref<2x1x32xf32, #tpu.memory_space<vmem>>, vector<1x1x32xf32>
    %295 = vector.shape_cast %294 : vector<1x1x32xf32> to vector<1x32xf32>
    %cst_130 = arith.constant dense<0.000000e+00> : vector<4xf32>
    %296 = vector.multi_reduction <add>, %291, %cst_130 [1] : vector<4x32xf32> to vector<4xf32>
    %297 = vector.shape_cast %296 : vector<4xf32> to vector<4x1xf32>
    %cst_131 = arith.constant 3.200000e+01 : f32
    %298 = vector.broadcast %cst_131 : f32 to vector<4x1xf32>
    %299 = arith.divf %297, %298 : vector<4x1xf32>
    %300 = vector.broadcast %299 : vector<4x1xf32> to vector<4x32xf32>
    %301 = arith.subf %291, %300 : vector<4x32xf32>
    %302 = arith.mulf %301, %301 : vector<4x32xf32>
    %cst_132 = arith.constant dense<0.000000e+00> : vector<4xf32>
    %303 = vector.multi_reduction <add>, %302, %cst_132 [1] : vector<4x32xf32> to vector<4xf32>
    %304 = vector.shape_cast %303 : vector<4xf32> to vector<4x1xf32>
    %cst_133 = arith.constant 3.200000e+01 : f32
    %305 = vector.broadcast %cst_133 : f32 to vector<4x1xf32>
    %306 = arith.divf %304, %305 : vector<4x1xf32>
    %307 = vector.broadcast %299 : vector<4x1xf32> to vector<4x32xf32>
    %308 = arith.subf %291, %307 : vector<4x32xf32>
    %cst_134 = arith.constant 9.99999974E-6 : f32
    %309 = vector.broadcast %cst_134 : f32 to vector<4x1xf32>
    %310 = arith.addf %306, %309 : vector<4x1xf32>
    %311 = math.rsqrt %310 : vector<4x1xf32>
    %312 = vector.broadcast %311 : vector<4x1xf32> to vector<4x32xf32>
    %313 = arith.mulf %308, %312 : vector<4x32xf32>
    %314 = vector.broadcast %293 : vector<1x32xf32> to vector<4x32xf32>
    %315 = arith.mulf %313, %314 : vector<4x32xf32>
    %316 = vector.broadcast %295 : vector<1x32xf32> to vector<4x32xf32>
    %317 = arith.addf %315, %316 : vector<4x32xf32>
    %c1_135 = arith.constant 1 : index
    %c0_136 = arith.constant 0 : index
    %c0_137 = arith.constant 0 : index
    %318 = vector.load %arg28[%c1_135, %c0_136, %c0_137] : memref<2x32x128xf32, #tpu.memory_space<vmem>>, vector<1x32x128xf32>
    %319 = vector.shape_cast %318 : vector<1x32x128xf32> to vector<32x128xf32>
    %c1_138 = arith.constant 1 : index
    %c0_139 = arith.constant 0 : index
    %c0_140 = arith.constant 0 : index
    %320 = vector.load %arg26[%c1_138, %c0_139, %c0_140] : memref<2x1x128xf32, #tpu.memory_space<vmem>>, vector<1x1x128xf32>
    %321 = vector.shape_cast %320 : vector<1x1x128xf32> to vector<1x128xf32>
    %cst_141 = arith.constant dense<0.000000e+00> : vector<4x128xf32>
    %322 = tpu.matmul %317, %319, %cst_141 {dimension_numbers = #tpu.dot_dimension_numbers<[1], [0], [0], [1], [0, 0, 1, 1], [], []>} : vector<4x32xf32>, vector<32x128xf32>, vector<4x128xf32> -> vector<4x128xf32>
    %323 = vector.broadcast %321 : vector<1x128xf32> to vector<4x128xf32>
    %324 = arith.addf %322, %323 : vector<4x128xf32>
    %cst_142 = arith.constant 0.000000e+00 : f32
    %325 = vector.broadcast %cst_142 : f32 to vector<4x128xf32>
    %326 = arith.maximumf %324, %325 : vector<4x128xf32>
    %c1_143 = arith.constant 1 : index
    %c0_144 = arith.constant 0 : index
    %c0_145 = arith.constant 0 : index
    %327 = vector.load %arg29[%c1_143, %c0_144, %c0_145] : memref<2x128x32xf32, #tpu.memory_space<vmem>>, vector<1x128x32xf32>
    %328 = vector.shape_cast %327 : vector<1x128x32xf32> to vector<128x32xf32>
    %c1_146 = arith.constant 1 : index
    %c0_147 = arith.constant 0 : index
    %c0_148 = arith.constant 0 : index
    %329 = vector.load %arg27[%c1_146, %c0_147, %c0_148] : memref<2x1x32xf32, #tpu.memory_space<vmem>>, vector<1x1x32xf32>
    %330 = vector.shape_cast %329 : vector<1x1x32xf32> to vector<1x32xf32>
    %cst_149 = arith.constant dense<0.000000e+00> : vector<4x32xf32>
    %331 = tpu.matmul %326, %328, %cst_149 {dimension_numbers = #tpu.dot_dimension_numbers<[1], [0], [0], [1], [0, 0, 1, 1], [], []>} : vector<4x128xf32>, vector<128x32xf32>, vector<4x32xf32> -> vector<4x32xf32>
    %332 = vector.broadcast %330 : vector<1x32xf32> to vector<4x32xf32>
    %333 = arith.addf %331, %332 : vector<4x32xf32>
    %334 = arith.addf %317, %333 : vector<4x32xf32>
    %c1_150 = arith.constant 1 : index
    %c0_151 = arith.constant 0 : index
    %c0_152 = arith.constant 0 : index
    %335 = vector.load %arg33[%c1_150, %c0_151, %c0_152] : memref<2x1x32xf32, #tpu.memory_space<vmem>>, vector<1x1x32xf32>
    %336 = vector.shape_cast %335 : vector<1x1x32xf32> to vector<1x32xf32>
    %c1_153 = arith.constant 1 : index
    %c0_154 = arith.constant 0 : index
    %c0_155 = arith.constant 0 : index
    %337 = vector.load %arg32[%c1_153, %c0_154, %c0_155] : memref<2x1x32xf32, #tpu.memory_space<vmem>>, vector<1x1x32xf32>
    %338 = vector.shape_cast %337 : vector<1x1x32xf32> to vector<1x32xf32>
    %cst_156 = arith.constant dense<0.000000e+00> : vector<4xf32>
    %339 = vector.multi_reduction <add>, %334, %cst_156 [1] : vector<4x32xf32> to vector<4xf32>
    %340 = vector.shape_cast %339 : vector<4xf32> to vector<4x1xf32>
    %cst_157 = arith.constant 3.200000e+01 : f32
    %341 = vector.broadcast %cst_157 : f32 to vector<4x1xf32>
    %342 = arith.divf %340, %341 : vector<4x1xf32>
    %343 = vector.broadcast %342 : vector<4x1xf32> to vector<4x32xf32>
    %344 = arith.subf %334, %343 : vector<4x32xf32>
    %345 = arith.mulf %344, %344 : vector<4x32xf32>
    %cst_158 = arith.constant dense<0.000000e+00> : vector<4xf32>
    %346 = vector.multi_reduction <add>, %345, %cst_158 [1] : vector<4x32xf32> to vector<4xf32>
    %347 = vector.shape_cast %346 : vector<4xf32> to vector<4x1xf32>
    %cst_159 = arith.constant 3.200000e+01 : f32
    %348 = vector.broadcast %cst_159 : f32 to vector<4x1xf32>
    %349 = arith.divf %347, %348 : vector<4x1xf32>
    %350 = vector.broadcast %342 : vector<4x1xf32> to vector<4x32xf32>
    %351 = arith.subf %334, %350 : vector<4x32xf32>
    %cst_160 = arith.constant 9.99999974E-6 : f32
    %352 = vector.broadcast %cst_160 : f32 to vector<4x1xf32>
    %353 = arith.addf %349, %352 : vector<4x1xf32>
    %354 = math.rsqrt %353 : vector<4x1xf32>
    %355 = vector.broadcast %354 : vector<4x1xf32> to vector<4x32xf32>
    %356 = arith.mulf %351, %355 : vector<4x32xf32>
    %357 = vector.broadcast %336 : vector<1x32xf32> to vector<4x32xf32>
    %358 = arith.mulf %356, %357 : vector<4x32xf32>
    %359 = vector.broadcast %338 : vector<1x32xf32> to vector<4x32xf32>
    %360 = arith.addf %358, %359 : vector<4x32xf32>
    %c0_161 = arith.constant 0 : index
    %c0_162 = arith.constant 0 : index
    %361 = vector.load %arg39[%c0_161, %c0_162] : memref<1x32xf32, #tpu.memory_space<vmem>>, vector<1x32xf32>
    %c0_163 = arith.constant 0 : index
    %c0_164 = arith.constant 0 : index
    %362 = vector.load %arg38[%c0_163, %c0_164] : memref<1x32xf32, #tpu.memory_space<vmem>>, vector<1x32xf32>
    %cst_165 = arith.constant dense<0.000000e+00> : vector<4xf32>
    %363 = vector.multi_reduction <add>, %360, %cst_165 [1] : vector<4x32xf32> to vector<4xf32>
    %364 = vector.shape_cast %363 : vector<4xf32> to vector<4x1xf32>
    %cst_166 = arith.constant 3.200000e+01 : f32
    %365 = vector.broadcast %cst_166 : f32 to vector<4x1xf32>
    %366 = arith.divf %364, %365 : vector<4x1xf32>
    %367 = vector.broadcast %366 : vector<4x1xf32> to vector<4x32xf32>
    %368 = arith.subf %360, %367 : vector<4x32xf32>
    %369 = arith.mulf %368, %368 : vector<4x32xf32>
    %cst_167 = arith.constant dense<0.000000e+00> : vector<4xf32>
    %370 = vector.multi_reduction <add>, %369, %cst_167 [1] : vector<4x32xf32> to vector<4xf32>
    %371 = vector.shape_cast %370 : vector<4xf32> to vector<4x1xf32>
    %cst_168 = arith.constant 3.200000e+01 : f32
    %372 = vector.broadcast %cst_168 : f32 to vector<4x1xf32>
    %373 = arith.divf %371, %372 : vector<4x1xf32>
    %374 = vector.broadcast %366 : vector<4x1xf32> to vector<4x32xf32>
    %375 = arith.subf %360, %374 : vector<4x32xf32>
    %cst_169 = arith.constant 9.99999974E-6 : f32
    %376 = vector.broadcast %cst_169 : f32 to vector<4x1xf32>
    %377 = arith.addf %373, %376 : vector<4x1xf32>
    %378 = math.rsqrt %377 : vector<4x1xf32>
    %379 = vector.broadcast %378 : vector<4x1xf32> to vector<4x32xf32>
    %380 = arith.mulf %375, %379 : vector<4x32xf32>
    %381 = vector.broadcast %361 : vector<1x32xf32> to vector<4x32xf32>
    %382 = arith.mulf %380, %381 : vector<4x32xf32>
    %383 = vector.broadcast %362 : vector<1x32xf32> to vector<4x32xf32>
    %384 = arith.addf %382, %383 : vector<4x32xf32>
    %c0_170 = arith.constant 0 : index
    %c0_171 = arith.constant 0 : index
    %c0_172 = arith.constant 0 : index
    %385 = vector.load %arg23[%c0_170, %c0_171, %c0_172] : memref<2x32x96xf32, #tpu.memory_space<vmem>>, vector<1x32x96xf32>
    %386 = vector.shape_cast %385 : vector<1x32x96xf32> to vector<32x96xf32>
    %cst_173 = arith.constant dense<0.000000e+00> : vector<5x96xf32>
    %387 = tpu.matmul %10, %386, %cst_173 {dimension_numbers = #tpu.dot_dimension_numbers<[1], [0], [0], [1], [0, 0, 1, 1], [], []>} : vector<5x32xf32>, vector<32x96xf32>, vector<5x96xf32> -> vector<5x96xf32>
    %c0_174 = arith.constant 0 : index
    %c0_175 = arith.constant 0 : index
    %c0_176 = arith.constant 0 : index
    %388 = vector.load %arg22[%c0_174, %c0_175, %c0_176] : memref<2x1x96xf32, #tpu.memory_space<vmem>>, vector<1x1x96xf32>
    %389 = vector.shape_cast %388 : vector<1x1x96xf32> to vector<1x96xf32>
    %390 = vector.broadcast %389 : vector<1x96xf32> to vector<5x96xf32>
    %391 = arith.addf %387, %390 : vector<5x96xf32>
    %392 = vector.extract_strided_slice %391 {offsets = [0, 0], sizes = [5, 32], strides = [1, 1]} : vector<5x96xf32> to vector<5x32xf32>
    %393 = vector.extract_strided_slice %391 {offsets = [0, 32], sizes = [5, 32], strides = [1, 1]} : vector<5x96xf32> to vector<5x32xf32>
    %394 = vector.extract_strided_slice %391 {offsets = [0, 64], sizes = [5, 32], strides = [1, 1]} : vector<5x96xf32> to vector<5x32xf32>
    %c0_177 = arith.constant 0 : index
    %c0_178 = arith.constant 0 : index
    %c0_179 = arith.constant 0 : index
    %395 = vector.load %arg21[%c0_177, %c0_178, %c0_179] : memref<2x32x32xf32, #tpu.memory_space<vmem>>, vector<1x32x32xf32>
    %396 = vector.shape_cast %395 : vector<1x32x32xf32> to vector<32x32xf32>
    %c0_180 = arith.constant 0 : index
    %c0_181 = arith.constant 0 : index
    %c0_182 = arith.constant 0 : index
    %397 = vector.load %arg20[%c0_180, %c0_181, %c0_182] : memref<2x1x32xf32, #tpu.memory_space<vmem>>, vector<1x1x32xf32>
    %398 = vector.shape_cast %397 : vector<1x1x32xf32> to vector<1x32xf32>
    %cst_183 = arith.constant 0.000000e+00 : f32
    %399 = vector.broadcast %cst_183 : f32 to vector<5x32xf32>
    %400 = vector.extract_strided_slice %392 {offsets = [0, 0], sizes = [5, 8], strides = [1, 1]} : vector<5x32xf32> to vector<5x8xf32>
    %401 = vector.extract_strided_slice %393 {offsets = [0, 0], sizes = [5, 8], strides = [1, 1]} : vector<5x32xf32> to vector<5x8xf32>
    %cst_184 = arith.constant dense<0.000000e+00> : vector<5x5xf32>
    %402 = tpu.matmul %400, %401, %cst_184 {dimension_numbers = #tpu.dot_dimension_numbers<[1], [1], [0], [0], [0, 0, 1, 0], [], []>} : vector<5x8xf32>, vector<5x8xf32>, vector<5x5xf32> -> vector<5x5xf32>
    %cst_185 = arith.constant 0.353553385 : f32
    %403 = vector.broadcast %cst_185 : f32 to vector<5x5xf32>
    %404 = arith.mulf %402, %403 : vector<5x5xf32>
    %cst_186 = arith.constant dense<0xFF800000> : vector<5xf32>
    %405 = vector.multi_reduction <maximumf>, %404, %cst_186 [1] : vector<5x5xf32> to vector<5xf32>
    %406 = vector.shape_cast %405 : vector<5xf32> to vector<5x1xf32>
    %407 = vector.broadcast %406 : vector<5x1xf32> to vector<5x5xf32>
    %408 = arith.subf %404, %407 : vector<5x5xf32>
    %409 = math.exp %408 : vector<5x5xf32>
    %cst_187 = arith.constant dense<0.000000e+00> : vector<5xf32>
    %410 = vector.multi_reduction <add>, %409, %cst_187 [1] : vector<5x5xf32> to vector<5xf32>
    %411 = vector.shape_cast %410 : vector<5xf32> to vector<5x1xf32>
    %412 = tpu.reciprocal %411 {approx = true} : vector<5x1xf32> -> vector<5x1xf32>
    %413 = vector.broadcast %412 : vector<5x1xf32> to vector<5x5xf32>
    %414 = arith.mulf %409, %413 : vector<5x5xf32>
    %415 = vector.extract_strided_slice %394 {offsets = [0, 0], sizes = [5, 8], strides = [1, 1]} : vector<5x32xf32> to vector<5x8xf32>
    %cst_188 = arith.constant dense<0.000000e+00> : vector<5x8xf32>
    %416 = tpu.matmul %414, %415, %cst_188 {dimension_numbers = #tpu.dot_dimension_numbers<[1], [0], [0], [1], [0, 0, 1, 1], [], []>} : vector<5x5xf32>, vector<5x8xf32>, vector<5x8xf32> -> vector<5x8xf32>
    %417 = vector.extract_strided_slice %396 {offsets = [0, 0], sizes = [8, 32], strides = [1, 1]} : vector<32x32xf32> to vector<8x32xf32>
    %cst_189 = arith.constant dense<0.000000e+00> : vector<5x32xf32>
    %418 = tpu.matmul %416, %417, %cst_189 {dimension_numbers = #tpu.dot_dimension_numbers<[1], [0], [0], [1], [0, 0, 1, 1], [], []>} : vector<5x8xf32>, vector<8x32xf32>, vector<5x32xf32> -> vector<5x32xf32>
    %419 = arith.addf %399, %418 : vector<5x32xf32>
    %420 = vector.extract_strided_slice %392 {offsets = [0, 8], sizes = [5, 8], strides = [1, 1]} : vector<5x32xf32> to vector<5x8xf32>
    %421 = vector.extract_strided_slice %393 {offsets = [0, 8], sizes = [5, 8], strides = [1, 1]} : vector<5x32xf32> to vector<5x8xf32>
    %cst_190 = arith.constant dense<0.000000e+00> : vector<5x5xf32>
    %422 = tpu.matmul %420, %421, %cst_190 {dimension_numbers = #tpu.dot_dimension_numbers<[1], [1], [0], [0], [0, 0, 1, 0], [], []>} : vector<5x8xf32>, vector<5x8xf32>, vector<5x5xf32> -> vector<5x5xf32>
    %cst_191 = arith.constant 0.353553385 : f32
    %423 = vector.broadcast %cst_191 : f32 to vector<5x5xf32>
    %424 = arith.mulf %422, %423 : vector<5x5xf32>
    %cst_192 = arith.constant dense<0xFF800000> : vector<5xf32>
    %425 = vector.multi_reduction <maximumf>, %424, %cst_192 [1] : vector<5x5xf32> to vector<5xf32>
    %426 = vector.shape_cast %425 : vector<5xf32> to vector<5x1xf32>
    %427 = vector.broadcast %426 : vector<5x1xf32> to vector<5x5xf32>
    %428 = arith.subf %424, %427 : vector<5x5xf32>
    %429 = math.exp %428 : vector<5x5xf32>
    %cst_193 = arith.constant dense<0.000000e+00> : vector<5xf32>
    %430 = vector.multi_reduction <add>, %429, %cst_193 [1] : vector<5x5xf32> to vector<5xf32>
    %431 = vector.shape_cast %430 : vector<5xf32> to vector<5x1xf32>
    %432 = tpu.reciprocal %431 {approx = true} : vector<5x1xf32> -> vector<5x1xf32>
    %433 = vector.broadcast %432 : vector<5x1xf32> to vector<5x5xf32>
    %434 = arith.mulf %429, %433 : vector<5x5xf32>
    %435 = vector.extract_strided_slice %394 {offsets = [0, 8], sizes = [5, 8], strides = [1, 1]} : vector<5x32xf32> to vector<5x8xf32>
    %cst_194 = arith.constant dense<0.000000e+00> : vector<5x8xf32>
    %436 = tpu.matmul %434, %435, %cst_194 {dimension_numbers = #tpu.dot_dimension_numbers<[1], [0], [0], [1], [0, 0, 1, 1], [], []>} : vector<5x5xf32>, vector<5x8xf32>, vector<5x8xf32> -> vector<5x8xf32>
    %437 = vector.extract_strided_slice %396 {offsets = [8, 0], sizes = [8, 32], strides = [1, 1]} : vector<32x32xf32> to vector<8x32xf32>
    %cst_195 = arith.constant dense<0.000000e+00> : vector<5x32xf32>
    %438 = tpu.matmul %436, %437, %cst_195 {dimension_numbers = #tpu.dot_dimension_numbers<[1], [0], [0], [1], [0, 0, 1, 1], [], []>} : vector<5x8xf32>, vector<8x32xf32>, vector<5x32xf32> -> vector<5x32xf32>
    %439 = arith.addf %419, %438 : vector<5x32xf32>
    %440 = vector.extract_strided_slice %392 {offsets = [0, 16], sizes = [5, 8], strides = [1, 1]} : vector<5x32xf32> to vector<5x8xf32>
    %441 = vector.extract_strided_slice %393 {offsets = [0, 16], sizes = [5, 8], strides = [1, 1]} : vector<5x32xf32> to vector<5x8xf32>
    %cst_196 = arith.constant dense<0.000000e+00> : vector<5x5xf32>
    %442 = tpu.matmul %440, %441, %cst_196 {dimension_numbers = #tpu.dot_dimension_numbers<[1], [1], [0], [0], [0, 0, 1, 0], [], []>} : vector<5x8xf32>, vector<5x8xf32>, vector<5x5xf32> -> vector<5x5xf32>
    %cst_197 = arith.constant 0.353553385 : f32
    %443 = vector.broadcast %cst_197 : f32 to vector<5x5xf32>
    %444 = arith.mulf %442, %443 : vector<5x5xf32>
    %cst_198 = arith.constant dense<0xFF800000> : vector<5xf32>
    %445 = vector.multi_reduction <maximumf>, %444, %cst_198 [1] : vector<5x5xf32> to vector<5xf32>
    %446 = vector.shape_cast %445 : vector<5xf32> to vector<5x1xf32>
    %447 = vector.broadcast %446 : vector<5x1xf32> to vector<5x5xf32>
    %448 = arith.subf %444, %447 : vector<5x5xf32>
    %449 = math.exp %448 : vector<5x5xf32>
    %cst_199 = arith.constant dense<0.000000e+00> : vector<5xf32>
    %450 = vector.multi_reduction <add>, %449, %cst_199 [1] : vector<5x5xf32> to vector<5xf32>
    %451 = vector.shape_cast %450 : vector<5xf32> to vector<5x1xf32>
    %452 = tpu.reciprocal %451 {approx = true} : vector<5x1xf32> -> vector<5x1xf32>
    %453 = vector.broadcast %452 : vector<5x1xf32> to vector<5x5xf32>
    %454 = arith.mulf %449, %453 : vector<5x5xf32>
    %455 = vector.extract_strided_slice %394 {offsets = [0, 16], sizes = [5, 8], strides = [1, 1]} : vector<5x32xf32> to vector<5x8xf32>
    %cst_200 = arith.constant dense<0.000000e+00> : vector<5x8xf32>
    %456 = tpu.matmul %454, %455, %cst_200 {dimension_numbers = #tpu.dot_dimension_numbers<[1], [0], [0], [1], [0, 0, 1, 1], [], []>} : vector<5x5xf32>, vector<5x8xf32>, vector<5x8xf32> -> vector<5x8xf32>
    %457 = vector.extract_strided_slice %396 {offsets = [16, 0], sizes = [8, 32], strides = [1, 1]} : vector<32x32xf32> to vector<8x32xf32>
    %cst_201 = arith.constant dense<0.000000e+00> : vector<5x32xf32>
    %458 = tpu.matmul %456, %457, %cst_201 {dimension_numbers = #tpu.dot_dimension_numbers<[1], [0], [0], [1], [0, 0, 1, 1], [], []>} : vector<5x8xf32>, vector<8x32xf32>, vector<5x32xf32> -> vector<5x32xf32>
    %459 = arith.addf %439, %458 : vector<5x32xf32>
    %460 = vector.extract_strided_slice %392 {offsets = [0, 24], sizes = [5, 8], strides = [1, 1]} : vector<5x32xf32> to vector<5x8xf32>
    %461 = vector.extract_strided_slice %393 {offsets = [0, 24], sizes = [5, 8], strides = [1, 1]} : vector<5x32xf32> to vector<5x8xf32>
    %cst_202 = arith.constant dense<0.000000e+00> : vector<5x5xf32>
    %462 = tpu.matmul %460, %461, %cst_202 {dimension_numbers = #tpu.dot_dimension_numbers<[1], [1], [0], [0], [0, 0, 1, 0], [], []>} : vector<5x8xf32>, vector<5x8xf32>, vector<5x5xf32> -> vector<5x5xf32>
    %cst_203 = arith.constant 0.353553385 : f32
    %463 = vector.broadcast %cst_203 : f32 to vector<5x5xf32>
    %464 = arith.mulf %462, %463 : vector<5x5xf32>
    %cst_204 = arith.constant dense<0xFF800000> : vector<5xf32>
    %465 = vector.multi_reduction <maximumf>, %464, %cst_204 [1] : vector<5x5xf32> to vector<5xf32>
    %466 = vector.shape_cast %465 : vector<5xf32> to vector<5x1xf32>
    %467 = vector.broadcast %466 : vector<5x1xf32> to vector<5x5xf32>
    %468 = arith.subf %464, %467 : vector<5x5xf32>
    %469 = math.exp %468 : vector<5x5xf32>
    %cst_205 = arith.constant dense<0.000000e+00> : vector<5xf32>
    %470 = vector.multi_reduction <add>, %469, %cst_205 [1] : vector<5x5xf32> to vector<5xf32>
    %471 = vector.shape_cast %470 : vector<5xf32> to vector<5x1xf32>
    %472 = tpu.reciprocal %471 {approx = true} : vector<5x1xf32> -> vector<5x1xf32>
    %473 = vector.broadcast %472 : vector<5x1xf32> to vector<5x5xf32>
    %474 = arith.mulf %469, %473 : vector<5x5xf32>
    %475 = vector.extract_strided_slice %394 {offsets = [0, 24], sizes = [5, 8], strides = [1, 1]} : vector<5x32xf32> to vector<5x8xf32>
    %cst_206 = arith.constant dense<0.000000e+00> : vector<5x8xf32>
    %476 = tpu.matmul %474, %475, %cst_206 {dimension_numbers = #tpu.dot_dimension_numbers<[1], [0], [0], [1], [0, 0, 1, 1], [], []>} : vector<5x5xf32>, vector<5x8xf32>, vector<5x8xf32> -> vector<5x8xf32>
    %477 = vector.extract_strided_slice %396 {offsets = [24, 0], sizes = [8, 32], strides = [1, 1]} : vector<32x32xf32> to vector<8x32xf32>
    %cst_207 = arith.constant dense<0.000000e+00> : vector<5x32xf32>
    %478 = tpu.matmul %476, %477, %cst_207 {dimension_numbers = #tpu.dot_dimension_numbers<[1], [0], [0], [1], [0, 0, 1, 1], [], []>} : vector<5x8xf32>, vector<8x32xf32>, vector<5x32xf32> -> vector<5x32xf32>
    %479 = arith.addf %459, %478 : vector<5x32xf32>
    %480 = vector.broadcast %398 : vector<1x32xf32> to vector<5x32xf32>
    %481 = arith.addf %479, %480 : vector<5x32xf32>
    %482 = arith.addf %10, %481 : vector<5x32xf32>
    %c0_208 = arith.constant 0 : index
    %c0_209 = arith.constant 0 : index
    %c0_210 = arith.constant 0 : index
    %483 = vector.load %arg15[%c0_208, %c0_209, %c0_210] : memref<2x1x32xf32, #tpu.memory_space<vmem>>, vector<1x1x32xf32>
    %484 = vector.shape_cast %483 : vector<1x1x32xf32> to vector<1x32xf32>
    %c0_211 = arith.constant 0 : index
    %c0_212 = arith.constant 0 : index
    %c0_213 = arith.constant 0 : index
    %485 = vector.load %arg14[%c0_211, %c0_212, %c0_213] : memref<2x1x32xf32, #tpu.memory_space<vmem>>, vector<1x1x32xf32>
    %486 = vector.shape_cast %485 : vector<1x1x32xf32> to vector<1x32xf32>
    %cst_214 = arith.constant dense<0.000000e+00> : vector<5xf32>
    %487 = vector.multi_reduction <add>, %482, %cst_214 [1] : vector<5x32xf32> to vector<5xf32>
    %488 = vector.shape_cast %487 : vector<5xf32> to vector<5x1xf32>
    %cst_215 = arith.constant 3.200000e+01 : f32
    %489 = vector.broadcast %cst_215 : f32 to vector<5x1xf32>
    %490 = arith.divf %488, %489 : vector<5x1xf32>
    %491 = vector.broadcast %490 : vector<5x1xf32> to vector<5x32xf32>
    %492 = arith.subf %482, %491 : vector<5x32xf32>
    %493 = arith.mulf %492, %492 : vector<5x32xf32>
    %cst_216 = arith.constant dense<0.000000e+00> : vector<5xf32>
    %494 = vector.multi_reduction <add>, %493, %cst_216 [1] : vector<5x32xf32> to vector<5xf32>
    %495 = vector.shape_cast %494 : vector<5xf32> to vector<5x1xf32>
    %cst_217 = arith.constant 3.200000e+01 : f32
    %496 = vector.broadcast %cst_217 : f32 to vector<5x1xf32>
    %497 = arith.divf %495, %496 : vector<5x1xf32>
    %498 = vector.broadcast %490 : vector<5x1xf32> to vector<5x32xf32>
    %499 = arith.subf %482, %498 : vector<5x32xf32>
    %cst_218 = arith.constant 9.99999974E-6 : f32
    %500 = vector.broadcast %cst_218 : f32 to vector<5x1xf32>
    %501 = arith.addf %497, %500 : vector<5x1xf32>
    %502 = math.rsqrt %501 : vector<5x1xf32>
    %503 = vector.broadcast %502 : vector<5x1xf32> to vector<5x32xf32>
    %504 = arith.mulf %499, %503 : vector<5x32xf32>
    %505 = vector.broadcast %484 : vector<1x32xf32> to vector<5x32xf32>
    %506 = arith.mulf %504, %505 : vector<5x32xf32>
    %507 = vector.broadcast %486 : vector<1x32xf32> to vector<5x32xf32>
    %508 = arith.addf %506, %507 : vector<5x32xf32>
    %c0_219 = arith.constant 0 : index
    %c0_220 = arith.constant 0 : index
    %c0_221 = arith.constant 0 : index
    %509 = vector.load %arg9[%c0_219, %c0_220, %c0_221] : memref<2x32x32xf32, #tpu.memory_space<vmem>>, vector<1x32x32xf32>
    %510 = vector.shape_cast %509 : vector<1x32x32xf32> to vector<32x32xf32>
    %cst_222 = arith.constant dense<0.000000e+00> : vector<5x32xf32>
    %511 = tpu.matmul %508, %510, %cst_222 {dimension_numbers = #tpu.dot_dimension_numbers<[1], [0], [0], [1], [0, 0, 1, 1], [], []>} : vector<5x32xf32>, vector<32x32xf32>, vector<5x32xf32> -> vector<5x32xf32>
    %c0_223 = arith.constant 0 : index
    %c0_224 = arith.constant 0 : index
    %c0_225 = arith.constant 0 : index
    %512 = vector.load %arg8[%c0_223, %c0_224, %c0_225] : memref<2x1x32xf32, #tpu.memory_space<vmem>>, vector<1x1x32xf32>
    %513 = vector.shape_cast %512 : vector<1x1x32xf32> to vector<1x32xf32>
    %514 = vector.broadcast %513 : vector<1x32xf32> to vector<5x32xf32>
    %515 = arith.addf %511, %514 : vector<5x32xf32>
    %c0_226 = arith.constant 0 : index
    %c0_227 = arith.constant 0 : index
    %c0_228 = arith.constant 0 : index
    %516 = vector.load %arg5[%c0_226, %c0_227, %c0_228] : memref<2x32x64xf32, #tpu.memory_space<vmem>>, vector<1x32x64xf32>
    %517 = vector.shape_cast %516 : vector<1x32x64xf32> to vector<32x64xf32>
    %cst_229 = arith.constant dense<0.000000e+00> : vector<4x64xf32>
    %518 = tpu.matmul %384, %517, %cst_229 {dimension_numbers = #tpu.dot_dimension_numbers<[1], [0], [0], [1], [0, 0, 1, 1], [], []>} : vector<4x32xf32>, vector<32x64xf32>, vector<4x64xf32> -> vector<4x64xf32>
    %c0_230 = arith.constant 0 : index
    %c0_231 = arith.constant 0 : index
    %c0_232 = arith.constant 0 : index
    %519 = vector.load %arg4[%c0_230, %c0_231, %c0_232] : memref<2x1x64xf32, #tpu.memory_space<vmem>>, vector<1x1x64xf32>
    %520 = vector.shape_cast %519 : vector<1x1x64xf32> to vector<1x64xf32>
    %521 = vector.broadcast %520 : vector<1x64xf32> to vector<4x64xf32>
    %522 = arith.addf %518, %521 : vector<4x64xf32>
    %523 = vector.extract_strided_slice %522 {offsets = [0, 0], sizes = [4, 32], strides = [1, 1]} : vector<4x64xf32> to vector<4x32xf32>
    %524 = vector.extract_strided_slice %522 {offsets = [0, 32], sizes = [4, 32], strides = [1, 1]} : vector<4x64xf32> to vector<4x32xf32>
    %c0_233 = arith.constant 0 : index
    %c0_234 = arith.constant 0 : index
    %c0_235 = arith.constant 0 : index
    %525 = vector.load %arg7[%c0_233, %c0_234, %c0_235] : memref<2x32x32xf32, #tpu.memory_space<vmem>>, vector<1x32x32xf32>
    %526 = vector.shape_cast %525 : vector<1x32x32xf32> to vector<32x32xf32>
    %c0_236 = arith.constant 0 : index
    %c0_237 = arith.constant 0 : index
    %c0_238 = arith.constant 0 : index
    %527 = vector.load %arg6[%c0_236, %c0_237, %c0_238] : memref<2x1x32xf32, #tpu.memory_space<vmem>>, vector<1x1x32xf32>
    %528 = vector.shape_cast %527 : vector<1x1x32xf32> to vector<1x32xf32>
    %cst_239 = arith.constant 0.000000e+00 : f32
    %529 = vector.broadcast %cst_239 : f32 to vector<5x32xf32>
    %530 = vector.extract_strided_slice %515 {offsets = [0, 0], sizes = [5, 8], strides = [1, 1]} : vector<5x32xf32> to vector<5x8xf32>
    %531 = vector.extract_strided_slice %523 {offsets = [0, 0], sizes = [4, 8], strides = [1, 1]} : vector<4x32xf32> to vector<4x8xf32>
    %cst_240 = arith.constant dense<0.000000e+00> : vector<5x4xf32>
    %532 = tpu.matmul %530, %531, %cst_240 {dimension_numbers = #tpu.dot_dimension_numbers<[1], [1], [0], [0], [0, 0, 1, 0], [], []>} : vector<5x8xf32>, vector<4x8xf32>, vector<5x4xf32> -> vector<5x4xf32>
    %cst_241 = arith.constant 0.353553385 : f32
    %533 = vector.broadcast %cst_241 : f32 to vector<5x4xf32>
    %534 = arith.mulf %532, %533 : vector<5x4xf32>
    %535 = vector.broadcast %3 : vector<1x4xf32> to vector<5x4xf32>
    %536 = arith.addf %534, %535 : vector<5x4xf32>
    %cst_242 = arith.constant dense<0xFF800000> : vector<5xf32>
    %537 = vector.multi_reduction <maximumf>, %536, %cst_242 [1] : vector<5x4xf32> to vector<5xf32>
    %538 = vector.shape_cast %537 : vector<5xf32> to vector<5x1xf32>
    %539 = vector.broadcast %538 : vector<5x1xf32> to vector<5x4xf32>
    %540 = arith.subf %536, %539 : vector<5x4xf32>
    %541 = math.exp %540 : vector<5x4xf32>
    %cst_243 = arith.constant dense<0.000000e+00> : vector<5xf32>
    %542 = vector.multi_reduction <add>, %541, %cst_243 [1] : vector<5x4xf32> to vector<5xf32>
    %543 = vector.shape_cast %542 : vector<5xf32> to vector<5x1xf32>
    %544 = tpu.reciprocal %543 {approx = true} : vector<5x1xf32> -> vector<5x1xf32>
    %545 = vector.broadcast %544 : vector<5x1xf32> to vector<5x4xf32>
    %546 = arith.mulf %541, %545 : vector<5x4xf32>
    %547 = vector.extract_strided_slice %524 {offsets = [0, 0], sizes = [4, 8], strides = [1, 1]} : vector<4x32xf32> to vector<4x8xf32>
    %cst_244 = arith.constant dense<0.000000e+00> : vector<5x8xf32>
    %548 = tpu.matmul %546, %547, %cst_244 {dimension_numbers = #tpu.dot_dimension_numbers<[1], [0], [0], [1], [0, 0, 1, 1], [], []>} : vector<5x4xf32>, vector<4x8xf32>, vector<5x8xf32> -> vector<5x8xf32>
    %549 = vector.extract_strided_slice %526 {offsets = [0, 0], sizes = [8, 32], strides = [1, 1]} : vector<32x32xf32> to vector<8x32xf32>
    %cst_245 = arith.constant dense<0.000000e+00> : vector<5x32xf32>
    %550 = tpu.matmul %548, %549, %cst_245 {dimension_numbers = #tpu.dot_dimension_numbers<[1], [0], [0], [1], [0, 0, 1, 1], [], []>} : vector<5x8xf32>, vector<8x32xf32>, vector<5x32xf32> -> vector<5x32xf32>
    %551 = arith.addf %529, %550 : vector<5x32xf32>
    %552 = vector.extract_strided_slice %515 {offsets = [0, 8], sizes = [5, 8], strides = [1, 1]} : vector<5x32xf32> to vector<5x8xf32>
    %553 = vector.extract_strided_slice %523 {offsets = [0, 8], sizes = [4, 8], strides = [1, 1]} : vector<4x32xf32> to vector<4x8xf32>
    %cst_246 = arith.constant dense<0.000000e+00> : vector<5x4xf32>
    %554 = tpu.matmul %552, %553, %cst_246 {dimension_numbers = #tpu.dot_dimension_numbers<[1], [1], [0], [0], [0, 0, 1, 0], [], []>} : vector<5x8xf32>, vector<4x8xf32>, vector<5x4xf32> -> vector<5x4xf32>
    %cst_247 = arith.constant 0.353553385 : f32
    %555 = vector.broadcast %cst_247 : f32 to vector<5x4xf32>
    %556 = arith.mulf %554, %555 : vector<5x4xf32>
    %557 = vector.broadcast %3 : vector<1x4xf32> to vector<5x4xf32>
    %558 = arith.addf %556, %557 : vector<5x4xf32>
    %cst_248 = arith.constant dense<0xFF800000> : vector<5xf32>
    %559 = vector.multi_reduction <maximumf>, %558, %cst_248 [1] : vector<5x4xf32> to vector<5xf32>
    %560 = vector.shape_cast %559 : vector<5xf32> to vector<5x1xf32>
    %561 = vector.broadcast %560 : vector<5x1xf32> to vector<5x4xf32>
    %562 = arith.subf %558, %561 : vector<5x4xf32>
    %563 = math.exp %562 : vector<5x4xf32>
    %cst_249 = arith.constant dense<0.000000e+00> : vector<5xf32>
    %564 = vector.multi_reduction <add>, %563, %cst_249 [1] : vector<5x4xf32> to vector<5xf32>
    %565 = vector.shape_cast %564 : vector<5xf32> to vector<5x1xf32>
    %566 = tpu.reciprocal %565 {approx = true} : vector<5x1xf32> -> vector<5x1xf32>
    %567 = vector.broadcast %566 : vector<5x1xf32> to vector<5x4xf32>
    %568 = arith.mulf %563, %567 : vector<5x4xf32>
    %569 = vector.extract_strided_slice %524 {offsets = [0, 8], sizes = [4, 8], strides = [1, 1]} : vector<4x32xf32> to vector<4x8xf32>
    %cst_250 = arith.constant dense<0.000000e+00> : vector<5x8xf32>
    %570 = tpu.matmul %568, %569, %cst_250 {dimension_numbers = #tpu.dot_dimension_numbers<[1], [0], [0], [1], [0, 0, 1, 1], [], []>} : vector<5x4xf32>, vector<4x8xf32>, vector<5x8xf32> -> vector<5x8xf32>
    %571 = vector.extract_strided_slice %526 {offsets = [8, 0], sizes = [8, 32], strides = [1, 1]} : vector<32x32xf32> to vector<8x32xf32>
    %cst_251 = arith.constant dense<0.000000e+00> : vector<5x32xf32>
    %572 = tpu.matmul %570, %571, %cst_251 {dimension_numbers = #tpu.dot_dimension_numbers<[1], [0], [0], [1], [0, 0, 1, 1], [], []>} : vector<5x8xf32>, vector<8x32xf32>, vector<5x32xf32> -> vector<5x32xf32>
    %573 = arith.addf %551, %572 : vector<5x32xf32>
    %574 = vector.extract_strided_slice %515 {offsets = [0, 16], sizes = [5, 8], strides = [1, 1]} : vector<5x32xf32> to vector<5x8xf32>
    %575 = vector.extract_strided_slice %523 {offsets = [0, 16], sizes = [4, 8], strides = [1, 1]} : vector<4x32xf32> to vector<4x8xf32>
    %cst_252 = arith.constant dense<0.000000e+00> : vector<5x4xf32>
    %576 = tpu.matmul %574, %575, %cst_252 {dimension_numbers = #tpu.dot_dimension_numbers<[1], [1], [0], [0], [0, 0, 1, 0], [], []>} : vector<5x8xf32>, vector<4x8xf32>, vector<5x4xf32> -> vector<5x4xf32>
    %cst_253 = arith.constant 0.353553385 : f32
    %577 = vector.broadcast %cst_253 : f32 to vector<5x4xf32>
    %578 = arith.mulf %576, %577 : vector<5x4xf32>
    %579 = vector.broadcast %3 : vector<1x4xf32> to vector<5x4xf32>
    %580 = arith.addf %578, %579 : vector<5x4xf32>
    %cst_254 = arith.constant dense<0xFF800000> : vector<5xf32>
    %581 = vector.multi_reduction <maximumf>, %580, %cst_254 [1] : vector<5x4xf32> to vector<5xf32>
    %582 = vector.shape_cast %581 : vector<5xf32> to vector<5x1xf32>
    %583 = vector.broadcast %582 : vector<5x1xf32> to vector<5x4xf32>
    %584 = arith.subf %580, %583 : vector<5x4xf32>
    %585 = math.exp %584 : vector<5x4xf32>
    %cst_255 = arith.constant dense<0.000000e+00> : vector<5xf32>
    %586 = vector.multi_reduction <add>, %585, %cst_255 [1] : vector<5x4xf32> to vector<5xf32>
    %587 = vector.shape_cast %586 : vector<5xf32> to vector<5x1xf32>
    %588 = tpu.reciprocal %587 {approx = true} : vector<5x1xf32> -> vector<5x1xf32>
    %589 = vector.broadcast %588 : vector<5x1xf32> to vector<5x4xf32>
    %590 = arith.mulf %585, %589 : vector<5x4xf32>
    %591 = vector.extract_strided_slice %524 {offsets = [0, 16], sizes = [4, 8], strides = [1, 1]} : vector<4x32xf32> to vector<4x8xf32>
    %cst_256 = arith.constant dense<0.000000e+00> : vector<5x8xf32>
    %592 = tpu.matmul %590, %591, %cst_256 {dimension_numbers = #tpu.dot_dimension_numbers<[1], [0], [0], [1], [0, 0, 1, 1], [], []>} : vector<5x4xf32>, vector<4x8xf32>, vector<5x8xf32> -> vector<5x8xf32>
    %593 = vector.extract_strided_slice %526 {offsets = [16, 0], sizes = [8, 32], strides = [1, 1]} : vector<32x32xf32> to vector<8x32xf32>
    %cst_257 = arith.constant dense<0.000000e+00> : vector<5x32xf32>
    %594 = tpu.matmul %592, %593, %cst_257 {dimension_numbers = #tpu.dot_dimension_numbers<[1], [0], [0], [1], [0, 0, 1, 1], [], []>} : vector<5x8xf32>, vector<8x32xf32>, vector<5x32xf32> -> vector<5x32xf32>
    %595 = arith.addf %573, %594 : vector<5x32xf32>
    %596 = vector.extract_strided_slice %515 {offsets = [0, 24], sizes = [5, 8], strides = [1, 1]} : vector<5x32xf32> to vector<5x8xf32>
    %597 = vector.extract_strided_slice %523 {offsets = [0, 24], sizes = [4, 8], strides = [1, 1]} : vector<4x32xf32> to vector<4x8xf32>
    %cst_258 = arith.constant dense<0.000000e+00> : vector<5x4xf32>
    %598 = tpu.matmul %596, %597, %cst_258 {dimension_numbers = #tpu.dot_dimension_numbers<[1], [1], [0], [0], [0, 0, 1, 0], [], []>} : vector<5x8xf32>, vector<4x8xf32>, vector<5x4xf32> -> vector<5x4xf32>
    %cst_259 = arith.constant 0.353553385 : f32
    %599 = vector.broadcast %cst_259 : f32 to vector<5x4xf32>
    %600 = arith.mulf %598, %599 : vector<5x4xf32>
    %601 = vector.broadcast %3 : vector<1x4xf32> to vector<5x4xf32>
    %602 = arith.addf %600, %601 : vector<5x4xf32>
    %cst_260 = arith.constant dense<0xFF800000> : vector<5xf32>
    %603 = vector.multi_reduction <maximumf>, %602, %cst_260 [1] : vector<5x4xf32> to vector<5xf32>
    %604 = vector.shape_cast %603 : vector<5xf32> to vector<5x1xf32>
    %605 = vector.broadcast %604 : vector<5x1xf32> to vector<5x4xf32>
    %606 = arith.subf %602, %605 : vector<5x4xf32>
    %607 = math.exp %606 : vector<5x4xf32>
    %cst_261 = arith.constant dense<0.000000e+00> : vector<5xf32>
    %608 = vector.multi_reduction <add>, %607, %cst_261 [1] : vector<5x4xf32> to vector<5xf32>
    %609 = vector.shape_cast %608 : vector<5xf32> to vector<5x1xf32>
    %610 = tpu.reciprocal %609 {approx = true} : vector<5x1xf32> -> vector<5x1xf32>
    %611 = vector.broadcast %610 : vector<5x1xf32> to vector<5x4xf32>
    %612 = arith.mulf %607, %611 : vector<5x4xf32>
    %613 = vector.extract_strided_slice %524 {offsets = [0, 24], sizes = [4, 8], strides = [1, 1]} : vector<4x32xf32> to vector<4x8xf32>
    %cst_262 = arith.constant dense<0.000000e+00> : vector<5x8xf32>
    %614 = tpu.matmul %612, %613, %cst_262 {dimension_numbers = #tpu.dot_dimension_numbers<[1], [0], [0], [1], [0, 0, 1, 1], [], []>} : vector<5x4xf32>, vector<4x8xf32>, vector<5x8xf32> -> vector<5x8xf32>
    %615 = vector.extract_strided_slice %526 {offsets = [24, 0], sizes = [8, 32], strides = [1, 1]} : vector<32x32xf32> to vector<8x32xf32>
    %cst_263 = arith.constant dense<0.000000e+00> : vector<5x32xf32>
    %616 = tpu.matmul %614, %615, %cst_263 {dimension_numbers = #tpu.dot_dimension_numbers<[1], [0], [0], [1], [0, 0, 1, 1], [], []>} : vector<5x8xf32>, vector<8x32xf32>, vector<5x32xf32> -> vector<5x32xf32>
    %617 = arith.addf %595, %616 : vector<5x32xf32>
    %618 = vector.broadcast %528 : vector<1x32xf32> to vector<5x32xf32>
    %619 = arith.addf %617, %618 : vector<5x32xf32>
    %620 = arith.addf %508, %619 : vector<5x32xf32>
    %c0_264 = arith.constant 0 : index
    %c0_265 = arith.constant 0 : index
    %c0_266 = arith.constant 0 : index
    %621 = vector.load %arg17[%c0_264, %c0_265, %c0_266] : memref<2x1x32xf32, #tpu.memory_space<vmem>>, vector<1x1x32xf32>
    %622 = vector.shape_cast %621 : vector<1x1x32xf32> to vector<1x32xf32>
    %c0_267 = arith.constant 0 : index
    %c0_268 = arith.constant 0 : index
    %c0_269 = arith.constant 0 : index
    %623 = vector.load %arg16[%c0_267, %c0_268, %c0_269] : memref<2x1x32xf32, #tpu.memory_space<vmem>>, vector<1x1x32xf32>
    %624 = vector.shape_cast %623 : vector<1x1x32xf32> to vector<1x32xf32>
    %cst_270 = arith.constant dense<0.000000e+00> : vector<5xf32>
    %625 = vector.multi_reduction <add>, %620, %cst_270 [1] : vector<5x32xf32> to vector<5xf32>
    %626 = vector.shape_cast %625 : vector<5xf32> to vector<5x1xf32>
    %cst_271 = arith.constant 3.200000e+01 : f32
    %627 = vector.broadcast %cst_271 : f32 to vector<5x1xf32>
    %628 = arith.divf %626, %627 : vector<5x1xf32>
    %629 = vector.broadcast %628 : vector<5x1xf32> to vector<5x32xf32>
    %630 = arith.subf %620, %629 : vector<5x32xf32>
    %631 = arith.mulf %630, %630 : vector<5x32xf32>
    %cst_272 = arith.constant dense<0.000000e+00> : vector<5xf32>
    %632 = vector.multi_reduction <add>, %631, %cst_272 [1] : vector<5x32xf32> to vector<5xf32>
    %633 = vector.shape_cast %632 : vector<5xf32> to vector<5x1xf32>
    %cst_273 = arith.constant 3.200000e+01 : f32
    %634 = vector.broadcast %cst_273 : f32 to vector<5x1xf32>
    %635 = arith.divf %633, %634 : vector<5x1xf32>
    %636 = vector.broadcast %628 : vector<5x1xf32> to vector<5x32xf32>
    %637 = arith.subf %620, %636 : vector<5x32xf32>
    %cst_274 = arith.constant 9.99999974E-6 : f32
    %638 = vector.broadcast %cst_274 : f32 to vector<5x1xf32>
    %639 = arith.addf %635, %638 : vector<5x1xf32>
    %640 = math.rsqrt %639 : vector<5x1xf32>
    %641 = vector.broadcast %640 : vector<5x1xf32> to vector<5x32xf32>
    %642 = arith.mulf %637, %641 : vector<5x32xf32>
    %643 = vector.broadcast %622 : vector<1x32xf32> to vector<5x32xf32>
    %644 = arith.mulf %642, %643 : vector<5x32xf32>
    %645 = vector.broadcast %624 : vector<1x32xf32> to vector<5x32xf32>
    %646 = arith.addf %644, %645 : vector<5x32xf32>
    %c0_275 = arith.constant 0 : index
    %c0_276 = arith.constant 0 : index
    %c0_277 = arith.constant 0 : index
    %647 = vector.load %arg12[%c0_275, %c0_276, %c0_277] : memref<2x32x128xf32, #tpu.memory_space<vmem>>, vector<1x32x128xf32>
    %648 = vector.shape_cast %647 : vector<1x32x128xf32> to vector<32x128xf32>
    %c0_278 = arith.constant 0 : index
    %c0_279 = arith.constant 0 : index
    %c0_280 = arith.constant 0 : index
    %649 = vector.load %arg10[%c0_278, %c0_279, %c0_280] : memref<2x1x128xf32, #tpu.memory_space<vmem>>, vector<1x1x128xf32>
    %650 = vector.shape_cast %649 : vector<1x1x128xf32> to vector<1x128xf32>
    %cst_281 = arith.constant dense<0.000000e+00> : vector<5x128xf32>
    %651 = tpu.matmul %646, %648, %cst_281 {dimension_numbers = #tpu.dot_dimension_numbers<[1], [0], [0], [1], [0, 0, 1, 1], [], []>} : vector<5x32xf32>, vector<32x128xf32>, vector<5x128xf32> -> vector<5x128xf32>
    %652 = vector.broadcast %650 : vector<1x128xf32> to vector<5x128xf32>
    %653 = arith.addf %651, %652 : vector<5x128xf32>
    %cst_282 = arith.constant 0.000000e+00 : f32
    %654 = vector.broadcast %cst_282 : f32 to vector<5x128xf32>
    %655 = arith.maximumf %653, %654 : vector<5x128xf32>
    %c0_283 = arith.constant 0 : index
    %c0_284 = arith.constant 0 : index
    %c0_285 = arith.constant 0 : index
    %656 = vector.load %arg13[%c0_283, %c0_284, %c0_285] : memref<2x128x32xf32, #tpu.memory_space<vmem>>, vector<1x128x32xf32>
    %657 = vector.shape_cast %656 : vector<1x128x32xf32> to vector<128x32xf32>
    %c0_286 = arith.constant 0 : index
    %c0_287 = arith.constant 0 : index
    %c0_288 = arith.constant 0 : index
    %658 = vector.load %arg11[%c0_286, %c0_287, %c0_288] : memref<2x1x32xf32, #tpu.memory_space<vmem>>, vector<1x1x32xf32>
    %659 = vector.shape_cast %658 : vector<1x1x32xf32> to vector<1x32xf32>
    %cst_289 = arith.constant dense<0.000000e+00> : vector<5x32xf32>
    %660 = tpu.matmul %655, %657, %cst_289 {dimension_numbers = #tpu.dot_dimension_numbers<[1], [0], [0], [1], [0, 0, 1, 1], [], []>} : vector<5x128xf32>, vector<128x32xf32>, vector<5x32xf32> -> vector<5x32xf32>
    %661 = vector.broadcast %659 : vector<1x32xf32> to vector<5x32xf32>
    %662 = arith.addf %660, %661 : vector<5x32xf32>
    %663 = arith.addf %646, %662 : vector<5x32xf32>
    %c0_290 = arith.constant 0 : index
    %c0_291 = arith.constant 0 : index
    %c0_292 = arith.constant 0 : index
    %664 = vector.load %arg19[%c0_290, %c0_291, %c0_292] : memref<2x1x32xf32, #tpu.memory_space<vmem>>, vector<1x1x32xf32>
    %665 = vector.shape_cast %664 : vector<1x1x32xf32> to vector<1x32xf32>
    %c0_293 = arith.constant 0 : index
    %c0_294 = arith.constant 0 : index
    %c0_295 = arith.constant 0 : index
    %666 = vector.load %arg18[%c0_293, %c0_294, %c0_295] : memref<2x1x32xf32, #tpu.memory_space<vmem>>, vector<1x1x32xf32>
    %667 = vector.shape_cast %666 : vector<1x1x32xf32> to vector<1x32xf32>
    %cst_296 = arith.constant dense<0.000000e+00> : vector<5xf32>
    %668 = vector.multi_reduction <add>, %663, %cst_296 [1] : vector<5x32xf32> to vector<5xf32>
    %669 = vector.shape_cast %668 : vector<5xf32> to vector<5x1xf32>
    %cst_297 = arith.constant 3.200000e+01 : f32
    %670 = vector.broadcast %cst_297 : f32 to vector<5x1xf32>
    %671 = arith.divf %669, %670 : vector<5x1xf32>
    %672 = vector.broadcast %671 : vector<5x1xf32> to vector<5x32xf32>
    %673 = arith.subf %663, %672 : vector<5x32xf32>
    %674 = arith.mulf %673, %673 : vector<5x32xf32>
    %cst_298 = arith.constant dense<0.000000e+00> : vector<5xf32>
    %675 = vector.multi_reduction <add>, %674, %cst_298 [1] : vector<5x32xf32> to vector<5xf32>
    %676 = vector.shape_cast %675 : vector<5xf32> to vector<5x1xf32>
    %cst_299 = arith.constant 3.200000e+01 : f32
    %677 = vector.broadcast %cst_299 : f32 to vector<5x1xf32>
    %678 = arith.divf %676, %677 : vector<5x1xf32>
    %679 = vector.broadcast %671 : vector<5x1xf32> to vector<5x32xf32>
    %680 = arith.subf %663, %679 : vector<5x32xf32>
    %cst_300 = arith.constant 9.99999974E-6 : f32
    %681 = vector.broadcast %cst_300 : f32 to vector<5x1xf32>
    %682 = arith.addf %678, %681 : vector<5x1xf32>
    %683 = math.rsqrt %682 : vector<5x1xf32>
    %684 = vector.broadcast %683 : vector<5x1xf32> to vector<5x32xf32>
    %685 = arith.mulf %680, %684 : vector<5x32xf32>
    %686 = vector.broadcast %665 : vector<1x32xf32> to vector<5x32xf32>
    %687 = arith.mulf %685, %686 : vector<5x32xf32>
    %688 = vector.broadcast %667 : vector<1x32xf32> to vector<5x32xf32>
    %689 = arith.addf %687, %688 : vector<5x32xf32>
    %c1_301 = arith.constant 1 : index
    %c0_302 = arith.constant 0 : index
    %c0_303 = arith.constant 0 : index
    %690 = vector.load %arg23[%c1_301, %c0_302, %c0_303] : memref<2x32x96xf32, #tpu.memory_space<vmem>>, vector<1x32x96xf32>
    %691 = vector.shape_cast %690 : vector<1x32x96xf32> to vector<32x96xf32>
    %cst_304 = arith.constant dense<0.000000e+00> : vector<5x96xf32>
    %692 = tpu.matmul %689, %691, %cst_304 {dimension_numbers = #tpu.dot_dimension_numbers<[1], [0], [0], [1], [0, 0, 1, 1], [], []>} : vector<5x32xf32>, vector<32x96xf32>, vector<5x96xf32> -> vector<5x96xf32>
    %c1_305 = arith.constant 1 : index
    %c0_306 = arith.constant 0 : index
    %c0_307 = arith.constant 0 : index
    %693 = vector.load %arg22[%c1_305, %c0_306, %c0_307] : memref<2x1x96xf32, #tpu.memory_space<vmem>>, vector<1x1x96xf32>
    %694 = vector.shape_cast %693 : vector<1x1x96xf32> to vector<1x96xf32>
    %695 = vector.broadcast %694 : vector<1x96xf32> to vector<5x96xf32>
    %696 = arith.addf %692, %695 : vector<5x96xf32>
    %697 = vector.extract_strided_slice %696 {offsets = [0, 0], sizes = [5, 32], strides = [1, 1]} : vector<5x96xf32> to vector<5x32xf32>
    %698 = vector.extract_strided_slice %696 {offsets = [0, 32], sizes = [5, 32], strides = [1, 1]} : vector<5x96xf32> to vector<5x32xf32>
    %699 = vector.extract_strided_slice %696 {offsets = [0, 64], sizes = [5, 32], strides = [1, 1]} : vector<5x96xf32> to vector<5x32xf32>
    %c1_308 = arith.constant 1 : index
    %c0_309 = arith.constant 0 : index
    %c0_310 = arith.constant 0 : index
    %700 = vector.load %arg21[%c1_308, %c0_309, %c0_310] : memref<2x32x32xf32, #tpu.memory_space<vmem>>, vector<1x32x32xf32>
    %701 = vector.shape_cast %700 : vector<1x32x32xf32> to vector<32x32xf32>
    %c1_311 = arith.constant 1 : index
    %c0_312 = arith.constant 0 : index
    %c0_313 = arith.constant 0 : index
    %702 = vector.load %arg20[%c1_311, %c0_312, %c0_313] : memref<2x1x32xf32, #tpu.memory_space<vmem>>, vector<1x1x32xf32>
    %703 = vector.shape_cast %702 : vector<1x1x32xf32> to vector<1x32xf32>
    %cst_314 = arith.constant 0.000000e+00 : f32
    %704 = vector.broadcast %cst_314 : f32 to vector<5x32xf32>
    %705 = vector.extract_strided_slice %697 {offsets = [0, 0], sizes = [5, 8], strides = [1, 1]} : vector<5x32xf32> to vector<5x8xf32>
    %706 = vector.extract_strided_slice %698 {offsets = [0, 0], sizes = [5, 8], strides = [1, 1]} : vector<5x32xf32> to vector<5x8xf32>
    %cst_315 = arith.constant dense<0.000000e+00> : vector<5x5xf32>
    %707 = tpu.matmul %705, %706, %cst_315 {dimension_numbers = #tpu.dot_dimension_numbers<[1], [1], [0], [0], [0, 0, 1, 0], [], []>} : vector<5x8xf32>, vector<5x8xf32>, vector<5x5xf32> -> vector<5x5xf32>
    %cst_316 = arith.constant 0.353553385 : f32
    %708 = vector.broadcast %cst_316 : f32 to vector<5x5xf32>
    %709 = arith.mulf %707, %708 : vector<5x5xf32>
    %cst_317 = arith.constant dense<0xFF800000> : vector<5xf32>
    %710 = vector.multi_reduction <maximumf>, %709, %cst_317 [1] : vector<5x5xf32> to vector<5xf32>
    %711 = vector.shape_cast %710 : vector<5xf32> to vector<5x1xf32>
    %712 = vector.broadcast %711 : vector<5x1xf32> to vector<5x5xf32>
    %713 = arith.subf %709, %712 : vector<5x5xf32>
    %714 = math.exp %713 : vector<5x5xf32>
    %cst_318 = arith.constant dense<0.000000e+00> : vector<5xf32>
    %715 = vector.multi_reduction <add>, %714, %cst_318 [1] : vector<5x5xf32> to vector<5xf32>
    %716 = vector.shape_cast %715 : vector<5xf32> to vector<5x1xf32>
    %717 = tpu.reciprocal %716 {approx = true} : vector<5x1xf32> -> vector<5x1xf32>
    %718 = vector.broadcast %717 : vector<5x1xf32> to vector<5x5xf32>
    %719 = arith.mulf %714, %718 : vector<5x5xf32>
    %720 = vector.extract_strided_slice %699 {offsets = [0, 0], sizes = [5, 8], strides = [1, 1]} : vector<5x32xf32> to vector<5x8xf32>
    %cst_319 = arith.constant dense<0.000000e+00> : vector<5x8xf32>
    %721 = tpu.matmul %719, %720, %cst_319 {dimension_numbers = #tpu.dot_dimension_numbers<[1], [0], [0], [1], [0, 0, 1, 1], [], []>} : vector<5x5xf32>, vector<5x8xf32>, vector<5x8xf32> -> vector<5x8xf32>
    %722 = vector.extract_strided_slice %701 {offsets = [0, 0], sizes = [8, 32], strides = [1, 1]} : vector<32x32xf32> to vector<8x32xf32>
    %cst_320 = arith.constant dense<0.000000e+00> : vector<5x32xf32>
    %723 = tpu.matmul %721, %722, %cst_320 {dimension_numbers = #tpu.dot_dimension_numbers<[1], [0], [0], [1], [0, 0, 1, 1], [], []>} : vector<5x8xf32>, vector<8x32xf32>, vector<5x32xf32> -> vector<5x32xf32>
    %724 = arith.addf %704, %723 : vector<5x32xf32>
    %725 = vector.extract_strided_slice %697 {offsets = [0, 8], sizes = [5, 8], strides = [1, 1]} : vector<5x32xf32> to vector<5x8xf32>
    %726 = vector.extract_strided_slice %698 {offsets = [0, 8], sizes = [5, 8], strides = [1, 1]} : vector<5x32xf32> to vector<5x8xf32>
    %cst_321 = arith.constant dense<0.000000e+00> : vector<5x5xf32>
    %727 = tpu.matmul %725, %726, %cst_321 {dimension_numbers = #tpu.dot_dimension_numbers<[1], [1], [0], [0], [0, 0, 1, 0], [], []>} : vector<5x8xf32>, vector<5x8xf32>, vector<5x5xf32> -> vector<5x5xf32>
    %cst_322 = arith.constant 0.353553385 : f32
    %728 = vector.broadcast %cst_322 : f32 to vector<5x5xf32>
    %729 = arith.mulf %727, %728 : vector<5x5xf32>
    %cst_323 = arith.constant dense<0xFF800000> : vector<5xf32>
    %730 = vector.multi_reduction <maximumf>, %729, %cst_323 [1] : vector<5x5xf32> to vector<5xf32>
    %731 = vector.shape_cast %730 : vector<5xf32> to vector<5x1xf32>
    %732 = vector.broadcast %731 : vector<5x1xf32> to vector<5x5xf32>
    %733 = arith.subf %729, %732 : vector<5x5xf32>
    %734 = math.exp %733 : vector<5x5xf32>
    %cst_324 = arith.constant dense<0.000000e+00> : vector<5xf32>
    %735 = vector.multi_reduction <add>, %734, %cst_324 [1] : vector<5x5xf32> to vector<5xf32>
    %736 = vector.shape_cast %735 : vector<5xf32> to vector<5x1xf32>
    %737 = tpu.reciprocal %736 {approx = true} : vector<5x1xf32> -> vector<5x1xf32>
    %738 = vector.broadcast %737 : vector<5x1xf32> to vector<5x5xf32>
    %739 = arith.mulf %734, %738 : vector<5x5xf32>
    %740 = vector.extract_strided_slice %699 {offsets = [0, 8], sizes = [5, 8], strides = [1, 1]} : vector<5x32xf32> to vector<5x8xf32>
    %cst_325 = arith.constant dense<0.000000e+00> : vector<5x8xf32>
    %741 = tpu.matmul %739, %740, %cst_325 {dimension_numbers = #tpu.dot_dimension_numbers<[1], [0], [0], [1], [0, 0, 1, 1], [], []>} : vector<5x5xf32>, vector<5x8xf32>, vector<5x8xf32> -> vector<5x8xf32>
    %742 = vector.extract_strided_slice %701 {offsets = [8, 0], sizes = [8, 32], strides = [1, 1]} : vector<32x32xf32> to vector<8x32xf32>
    %cst_326 = arith.constant dense<0.000000e+00> : vector<5x32xf32>
    %743 = tpu.matmul %741, %742, %cst_326 {dimension_numbers = #tpu.dot_dimension_numbers<[1], [0], [0], [1], [0, 0, 1, 1], [], []>} : vector<5x8xf32>, vector<8x32xf32>, vector<5x32xf32> -> vector<5x32xf32>
    %744 = arith.addf %724, %743 : vector<5x32xf32>
    %745 = vector.extract_strided_slice %697 {offsets = [0, 16], sizes = [5, 8], strides = [1, 1]} : vector<5x32xf32> to vector<5x8xf32>
    %746 = vector.extract_strided_slice %698 {offsets = [0, 16], sizes = [5, 8], strides = [1, 1]} : vector<5x32xf32> to vector<5x8xf32>
    %cst_327 = arith.constant dense<0.000000e+00> : vector<5x5xf32>
    %747 = tpu.matmul %745, %746, %cst_327 {dimension_numbers = #tpu.dot_dimension_numbers<[1], [1], [0], [0], [0, 0, 1, 0], [], []>} : vector<5x8xf32>, vector<5x8xf32>, vector<5x5xf32> -> vector<5x5xf32>
    %cst_328 = arith.constant 0.353553385 : f32
    %748 = vector.broadcast %cst_328 : f32 to vector<5x5xf32>
    %749 = arith.mulf %747, %748 : vector<5x5xf32>
    %cst_329 = arith.constant dense<0xFF800000> : vector<5xf32>
    %750 = vector.multi_reduction <maximumf>, %749, %cst_329 [1] : vector<5x5xf32> to vector<5xf32>
    %751 = vector.shape_cast %750 : vector<5xf32> to vector<5x1xf32>
    %752 = vector.broadcast %751 : vector<5x1xf32> to vector<5x5xf32>
    %753 = arith.subf %749, %752 : vector<5x5xf32>
    %754 = math.exp %753 : vector<5x5xf32>
    %cst_330 = arith.constant dense<0.000000e+00> : vector<5xf32>
    %755 = vector.multi_reduction <add>, %754, %cst_330 [1] : vector<5x5xf32> to vector<5xf32>
    %756 = vector.shape_cast %755 : vector<5xf32> to vector<5x1xf32>
    %757 = tpu.reciprocal %756 {approx = true} : vector<5x1xf32> -> vector<5x1xf32>
    %758 = vector.broadcast %757 : vector<5x1xf32> to vector<5x5xf32>
    %759 = arith.mulf %754, %758 : vector<5x5xf32>
    %760 = vector.extract_strided_slice %699 {offsets = [0, 16], sizes = [5, 8], strides = [1, 1]} : vector<5x32xf32> to vector<5x8xf32>
    %cst_331 = arith.constant dense<0.000000e+00> : vector<5x8xf32>
    %761 = tpu.matmul %759, %760, %cst_331 {dimension_numbers = #tpu.dot_dimension_numbers<[1], [0], [0], [1], [0, 0, 1, 1], [], []>} : vector<5x5xf32>, vector<5x8xf32>, vector<5x8xf32> -> vector<5x8xf32>
    %762 = vector.extract_strided_slice %701 {offsets = [16, 0], sizes = [8, 32], strides = [1, 1]} : vector<32x32xf32> to vector<8x32xf32>
    %cst_332 = arith.constant dense<0.000000e+00> : vector<5x32xf32>
    %763 = tpu.matmul %761, %762, %cst_332 {dimension_numbers = #tpu.dot_dimension_numbers<[1], [0], [0], [1], [0, 0, 1, 1], [], []>} : vector<5x8xf32>, vector<8x32xf32>, vector<5x32xf32> -> vector<5x32xf32>
    %764 = arith.addf %744, %763 : vector<5x32xf32>
    %765 = vector.extract_strided_slice %697 {offsets = [0, 24], sizes = [5, 8], strides = [1, 1]} : vector<5x32xf32> to vector<5x8xf32>
    %766 = vector.extract_strided_slice %698 {offsets = [0, 24], sizes = [5, 8], strides = [1, 1]} : vector<5x32xf32> to vector<5x8xf32>
    %cst_333 = arith.constant dense<0.000000e+00> : vector<5x5xf32>
    %767 = tpu.matmul %765, %766, %cst_333 {dimension_numbers = #tpu.dot_dimension_numbers<[1], [1], [0], [0], [0, 0, 1, 0], [], []>} : vector<5x8xf32>, vector<5x8xf32>, vector<5x5xf32> -> vector<5x5xf32>
    %cst_334 = arith.constant 0.353553385 : f32
    %768 = vector.broadcast %cst_334 : f32 to vector<5x5xf32>
    %769 = arith.mulf %767, %768 : vector<5x5xf32>
    %cst_335 = arith.constant dense<0xFF800000> : vector<5xf32>
    %770 = vector.multi_reduction <maximumf>, %769, %cst_335 [1] : vector<5x5xf32> to vector<5xf32>
    %771 = vector.shape_cast %770 : vector<5xf32> to vector<5x1xf32>
    %772 = vector.broadcast %771 : vector<5x1xf32> to vector<5x5xf32>
    %773 = arith.subf %769, %772 : vector<5x5xf32>
    %774 = math.exp %773 : vector<5x5xf32>
    %cst_336 = arith.constant dense<0.000000e+00> : vector<5xf32>
    %775 = vector.multi_reduction <add>, %774, %cst_336 [1] : vector<5x5xf32> to vector<5xf32>
    %776 = vector.shape_cast %775 : vector<5xf32> to vector<5x1xf32>
    %777 = tpu.reciprocal %776 {approx = true} : vector<5x1xf32> -> vector<5x1xf32>
    %778 = vector.broadcast %777 : vector<5x1xf32> to vector<5x5xf32>
    %779 = arith.mulf %774, %778 : vector<5x5xf32>
    %780 = vector.extract_strided_slice %699 {offsets = [0, 24], sizes = [5, 8], strides = [1, 1]} : vector<5x32xf32> to vector<5x8xf32>
    %cst_337 = arith.constant dense<0.000000e+00> : vector<5x8xf32>
    %781 = tpu.matmul %779, %780, %cst_337 {dimension_numbers = #tpu.dot_dimension_numbers<[1], [0], [0], [1], [0, 0, 1, 1], [], []>} : vector<5x5xf32>, vector<5x8xf32>, vector<5x8xf32> -> vector<5x8xf32>
    %782 = vector.extract_strided_slice %701 {offsets = [24, 0], sizes = [8, 32], strides = [1, 1]} : vector<32x32xf32> to vector<8x32xf32>
    %cst_338 = arith.constant dense<0.000000e+00> : vector<5x32xf32>
    %783 = tpu.matmul %781, %782, %cst_338 {dimension_numbers = #tpu.dot_dimension_numbers<[1], [0], [0], [1], [0, 0, 1, 1], [], []>} : vector<5x8xf32>, vector<8x32xf32>, vector<5x32xf32> -> vector<5x32xf32>
    %784 = arith.addf %764, %783 : vector<5x32xf32>
    %785 = vector.broadcast %703 : vector<1x32xf32> to vector<5x32xf32>
    %786 = arith.addf %784, %785 : vector<5x32xf32>
    %787 = arith.addf %689, %786 : vector<5x32xf32>
    %c1_339 = arith.constant 1 : index
    %c0_340 = arith.constant 0 : index
    %c0_341 = arith.constant 0 : index
    %788 = vector.load %arg15[%c1_339, %c0_340, %c0_341] : memref<2x1x32xf32, #tpu.memory_space<vmem>>, vector<1x1x32xf32>
    %789 = vector.shape_cast %788 : vector<1x1x32xf32> to vector<1x32xf32>
    %c1_342 = arith.constant 1 : index
    %c0_343 = arith.constant 0 : index
    %c0_344 = arith.constant 0 : index
    %790 = vector.load %arg14[%c1_342, %c0_343, %c0_344] : memref<2x1x32xf32, #tpu.memory_space<vmem>>, vector<1x1x32xf32>
    %791 = vector.shape_cast %790 : vector<1x1x32xf32> to vector<1x32xf32>
    %cst_345 = arith.constant dense<0.000000e+00> : vector<5xf32>
    %792 = vector.multi_reduction <add>, %787, %cst_345 [1] : vector<5x32xf32> to vector<5xf32>
    %793 = vector.shape_cast %792 : vector<5xf32> to vector<5x1xf32>
    %cst_346 = arith.constant 3.200000e+01 : f32
    %794 = vector.broadcast %cst_346 : f32 to vector<5x1xf32>
    %795 = arith.divf %793, %794 : vector<5x1xf32>
    %796 = vector.broadcast %795 : vector<5x1xf32> to vector<5x32xf32>
    %797 = arith.subf %787, %796 : vector<5x32xf32>
    %798 = arith.mulf %797, %797 : vector<5x32xf32>
    %cst_347 = arith.constant dense<0.000000e+00> : vector<5xf32>
    %799 = vector.multi_reduction <add>, %798, %cst_347 [1] : vector<5x32xf32> to vector<5xf32>
    %800 = vector.shape_cast %799 : vector<5xf32> to vector<5x1xf32>
    %cst_348 = arith.constant 3.200000e+01 : f32
    %801 = vector.broadcast %cst_348 : f32 to vector<5x1xf32>
    %802 = arith.divf %800, %801 : vector<5x1xf32>
    %803 = vector.broadcast %795 : vector<5x1xf32> to vector<5x32xf32>
    %804 = arith.subf %787, %803 : vector<5x32xf32>
    %cst_349 = arith.constant 9.99999974E-6 : f32
    %805 = vector.broadcast %cst_349 : f32 to vector<5x1xf32>
    %806 = arith.addf %802, %805 : vector<5x1xf32>
    %807 = math.rsqrt %806 : vector<5x1xf32>
    %808 = vector.broadcast %807 : vector<5x1xf32> to vector<5x32xf32>
    %809 = arith.mulf %804, %808 : vector<5x32xf32>
    %810 = vector.broadcast %789 : vector<1x32xf32> to vector<5x32xf32>
    %811 = arith.mulf %809, %810 : vector<5x32xf32>
    %812 = vector.broadcast %791 : vector<1x32xf32> to vector<5x32xf32>
    %813 = arith.addf %811, %812 : vector<5x32xf32>
    %c1_350 = arith.constant 1 : index
    %c0_351 = arith.constant 0 : index
    %c0_352 = arith.constant 0 : index
    %814 = vector.load %arg9[%c1_350, %c0_351, %c0_352] : memref<2x32x32xf32, #tpu.memory_space<vmem>>, vector<1x32x32xf32>
    %815 = vector.shape_cast %814 : vector<1x32x32xf32> to vector<32x32xf32>
    %cst_353 = arith.constant dense<0.000000e+00> : vector<5x32xf32>
    %816 = tpu.matmul %813, %815, %cst_353 {dimension_numbers = #tpu.dot_dimension_numbers<[1], [0], [0], [1], [0, 0, 1, 1], [], []>} : vector<5x32xf32>, vector<32x32xf32>, vector<5x32xf32> -> vector<5x32xf32>
    %c1_354 = arith.constant 1 : index
    %c0_355 = arith.constant 0 : index
    %c0_356 = arith.constant 0 : index
    %817 = vector.load %arg8[%c1_354, %c0_355, %c0_356] : memref<2x1x32xf32, #tpu.memory_space<vmem>>, vector<1x1x32xf32>
    %818 = vector.shape_cast %817 : vector<1x1x32xf32> to vector<1x32xf32>
    %819 = vector.broadcast %818 : vector<1x32xf32> to vector<5x32xf32>
    %820 = arith.addf %816, %819 : vector<5x32xf32>
    %c1_357 = arith.constant 1 : index
    %c0_358 = arith.constant 0 : index
    %c0_359 = arith.constant 0 : index
    %821 = vector.load %arg5[%c1_357, %c0_358, %c0_359] : memref<2x32x64xf32, #tpu.memory_space<vmem>>, vector<1x32x64xf32>
    %822 = vector.shape_cast %821 : vector<1x32x64xf32> to vector<32x64xf32>
    %cst_360 = arith.constant dense<0.000000e+00> : vector<4x64xf32>
    %823 = tpu.matmul %384, %822, %cst_360 {dimension_numbers = #tpu.dot_dimension_numbers<[1], [0], [0], [1], [0, 0, 1, 1], [], []>} : vector<4x32xf32>, vector<32x64xf32>, vector<4x64xf32> -> vector<4x64xf32>
    %c1_361 = arith.constant 1 : index
    %c0_362 = arith.constant 0 : index
    %c0_363 = arith.constant 0 : index
    %824 = vector.load %arg4[%c1_361, %c0_362, %c0_363] : memref<2x1x64xf32, #tpu.memory_space<vmem>>, vector<1x1x64xf32>
    %825 = vector.shape_cast %824 : vector<1x1x64xf32> to vector<1x64xf32>
    %826 = vector.broadcast %825 : vector<1x64xf32> to vector<4x64xf32>
    %827 = arith.addf %823, %826 : vector<4x64xf32>
    %828 = vector.extract_strided_slice %827 {offsets = [0, 0], sizes = [4, 32], strides = [1, 1]} : vector<4x64xf32> to vector<4x32xf32>
    %829 = vector.extract_strided_slice %827 {offsets = [0, 32], sizes = [4, 32], strides = [1, 1]} : vector<4x64xf32> to vector<4x32xf32>
    %c1_364 = arith.constant 1 : index
    %c0_365 = arith.constant 0 : index
    %c0_366 = arith.constant 0 : index
    %830 = vector.load %arg7[%c1_364, %c0_365, %c0_366] : memref<2x32x32xf32, #tpu.memory_space<vmem>>, vector<1x32x32xf32>
    %831 = vector.shape_cast %830 : vector<1x32x32xf32> to vector<32x32xf32>
    %c1_367 = arith.constant 1 : index
    %c0_368 = arith.constant 0 : index
    %c0_369 = arith.constant 0 : index
    %832 = vector.load %arg6[%c1_367, %c0_368, %c0_369] : memref<2x1x32xf32, #tpu.memory_space<vmem>>, vector<1x1x32xf32>
    %833 = vector.shape_cast %832 : vector<1x1x32xf32> to vector<1x32xf32>
    %cst_370 = arith.constant 0.000000e+00 : f32
    %834 = vector.broadcast %cst_370 : f32 to vector<5x32xf32>
    %835 = vector.extract_strided_slice %820 {offsets = [0, 0], sizes = [5, 8], strides = [1, 1]} : vector<5x32xf32> to vector<5x8xf32>
    %836 = vector.extract_strided_slice %828 {offsets = [0, 0], sizes = [4, 8], strides = [1, 1]} : vector<4x32xf32> to vector<4x8xf32>
    %cst_371 = arith.constant dense<0.000000e+00> : vector<5x4xf32>
    %837 = tpu.matmul %835, %836, %cst_371 {dimension_numbers = #tpu.dot_dimension_numbers<[1], [1], [0], [0], [0, 0, 1, 0], [], []>} : vector<5x8xf32>, vector<4x8xf32>, vector<5x4xf32> -> vector<5x4xf32>
    %cst_372 = arith.constant 0.353553385 : f32
    %838 = vector.broadcast %cst_372 : f32 to vector<5x4xf32>
    %839 = arith.mulf %837, %838 : vector<5x4xf32>
    %840 = vector.broadcast %3 : vector<1x4xf32> to vector<5x4xf32>
    %841 = arith.addf %839, %840 : vector<5x4xf32>
    %cst_373 = arith.constant dense<0xFF800000> : vector<5xf32>
    %842 = vector.multi_reduction <maximumf>, %841, %cst_373 [1] : vector<5x4xf32> to vector<5xf32>
    %843 = vector.shape_cast %842 : vector<5xf32> to vector<5x1xf32>
    %844 = vector.broadcast %843 : vector<5x1xf32> to vector<5x4xf32>
    %845 = arith.subf %841, %844 : vector<5x4xf32>
    %846 = math.exp %845 : vector<5x4xf32>
    %cst_374 = arith.constant dense<0.000000e+00> : vector<5xf32>
    %847 = vector.multi_reduction <add>, %846, %cst_374 [1] : vector<5x4xf32> to vector<5xf32>
    %848 = vector.shape_cast %847 : vector<5xf32> to vector<5x1xf32>
    %849 = tpu.reciprocal %848 {approx = true} : vector<5x1xf32> -> vector<5x1xf32>
    %850 = vector.broadcast %849 : vector<5x1xf32> to vector<5x4xf32>
    %851 = arith.mulf %846, %850 : vector<5x4xf32>
    %852 = vector.extract_strided_slice %829 {offsets = [0, 0], sizes = [4, 8], strides = [1, 1]} : vector<4x32xf32> to vector<4x8xf32>
    %cst_375 = arith.constant dense<0.000000e+00> : vector<5x8xf32>
    %853 = tpu.matmul %851, %852, %cst_375 {dimension_numbers = #tpu.dot_dimension_numbers<[1], [0], [0], [1], [0, 0, 1, 1], [], []>} : vector<5x4xf32>, vector<4x8xf32>, vector<5x8xf32> -> vector<5x8xf32>
    %854 = vector.extract_strided_slice %831 {offsets = [0, 0], sizes = [8, 32], strides = [1, 1]} : vector<32x32xf32> to vector<8x32xf32>
    %cst_376 = arith.constant dense<0.000000e+00> : vector<5x32xf32>
    %855 = tpu.matmul %853, %854, %cst_376 {dimension_numbers = #tpu.dot_dimension_numbers<[1], [0], [0], [1], [0, 0, 1, 1], [], []>} : vector<5x8xf32>, vector<8x32xf32>, vector<5x32xf32> -> vector<5x32xf32>
    %856 = arith.addf %834, %855 : vector<5x32xf32>
    %857 = vector.extract_strided_slice %820 {offsets = [0, 8], sizes = [5, 8], strides = [1, 1]} : vector<5x32xf32> to vector<5x8xf32>
    %858 = vector.extract_strided_slice %828 {offsets = [0, 8], sizes = [4, 8], strides = [1, 1]} : vector<4x32xf32> to vector<4x8xf32>
    %cst_377 = arith.constant dense<0.000000e+00> : vector<5x4xf32>
    %859 = tpu.matmul %857, %858, %cst_377 {dimension_numbers = #tpu.dot_dimension_numbers<[1], [1], [0], [0], [0, 0, 1, 0], [], []>} : vector<5x8xf32>, vector<4x8xf32>, vector<5x4xf32> -> vector<5x4xf32>
    %cst_378 = arith.constant 0.353553385 : f32
    %860 = vector.broadcast %cst_378 : f32 to vector<5x4xf32>
    %861 = arith.mulf %859, %860 : vector<5x4xf32>
    %862 = vector.broadcast %3 : vector<1x4xf32> to vector<5x4xf32>
    %863 = arith.addf %861, %862 : vector<5x4xf32>
    %cst_379 = arith.constant dense<0xFF800000> : vector<5xf32>
    %864 = vector.multi_reduction <maximumf>, %863, %cst_379 [1] : vector<5x4xf32> to vector<5xf32>
    %865 = vector.shape_cast %864 : vector<5xf32> to vector<5x1xf32>
    %866 = vector.broadcast %865 : vector<5x1xf32> to vector<5x4xf32>
    %867 = arith.subf %863, %866 : vector<5x4xf32>
    %868 = math.exp %867 : vector<5x4xf32>
    %cst_380 = arith.constant dense<0.000000e+00> : vector<5xf32>
    %869 = vector.multi_reduction <add>, %868, %cst_380 [1] : vector<5x4xf32> to vector<5xf32>
    %870 = vector.shape_cast %869 : vector<5xf32> to vector<5x1xf32>
    %871 = tpu.reciprocal %870 {approx = true} : vector<5x1xf32> -> vector<5x1xf32>
    %872 = vector.broadcast %871 : vector<5x1xf32> to vector<5x4xf32>
    %873 = arith.mulf %868, %872 : vector<5x4xf32>
    %874 = vector.extract_strided_slice %829 {offsets = [0, 8], sizes = [4, 8], strides = [1, 1]} : vector<4x32xf32> to vector<4x8xf32>
    %cst_381 = arith.constant dense<0.000000e+00> : vector<5x8xf32>
    %875 = tpu.matmul %873, %874, %cst_381 {dimension_numbers = #tpu.dot_dimension_numbers<[1], [0], [0], [1], [0, 0, 1, 1], [], []>} : vector<5x4xf32>, vector<4x8xf32>, vector<5x8xf32> -> vector<5x8xf32>
    %876 = vector.extract_strided_slice %831 {offsets = [8, 0], sizes = [8, 32], strides = [1, 1]} : vector<32x32xf32> to vector<8x32xf32>
    %cst_382 = arith.constant dense<0.000000e+00> : vector<5x32xf32>
    %877 = tpu.matmul %875, %876, %cst_382 {dimension_numbers = #tpu.dot_dimension_numbers<[1], [0], [0], [1], [0, 0, 1, 1], [], []>} : vector<5x8xf32>, vector<8x32xf32>, vector<5x32xf32> -> vector<5x32xf32>
    %878 = arith.addf %856, %877 : vector<5x32xf32>
    %879 = vector.extract_strided_slice %820 {offsets = [0, 16], sizes = [5, 8], strides = [1, 1]} : vector<5x32xf32> to vector<5x8xf32>
    %880 = vector.extract_strided_slice %828 {offsets = [0, 16], sizes = [4, 8], strides = [1, 1]} : vector<4x32xf32> to vector<4x8xf32>
    %cst_383 = arith.constant dense<0.000000e+00> : vector<5x4xf32>
    %881 = tpu.matmul %879, %880, %cst_383 {dimension_numbers = #tpu.dot_dimension_numbers<[1], [1], [0], [0], [0, 0, 1, 0], [], []>} : vector<5x8xf32>, vector<4x8xf32>, vector<5x4xf32> -> vector<5x4xf32>
    %cst_384 = arith.constant 0.353553385 : f32
    %882 = vector.broadcast %cst_384 : f32 to vector<5x4xf32>
    %883 = arith.mulf %881, %882 : vector<5x4xf32>
    %884 = vector.broadcast %3 : vector<1x4xf32> to vector<5x4xf32>
    %885 = arith.addf %883, %884 : vector<5x4xf32>
    %cst_385 = arith.constant dense<0xFF800000> : vector<5xf32>
    %886 = vector.multi_reduction <maximumf>, %885, %cst_385 [1] : vector<5x4xf32> to vector<5xf32>
    %887 = vector.shape_cast %886 : vector<5xf32> to vector<5x1xf32>
    %888 = vector.broadcast %887 : vector<5x1xf32> to vector<5x4xf32>
    %889 = arith.subf %885, %888 : vector<5x4xf32>
    %890 = math.exp %889 : vector<5x4xf32>
    %cst_386 = arith.constant dense<0.000000e+00> : vector<5xf32>
    %891 = vector.multi_reduction <add>, %890, %cst_386 [1] : vector<5x4xf32> to vector<5xf32>
    %892 = vector.shape_cast %891 : vector<5xf32> to vector<5x1xf32>
    %893 = tpu.reciprocal %892 {approx = true} : vector<5x1xf32> -> vector<5x1xf32>
    %894 = vector.broadcast %893 : vector<5x1xf32> to vector<5x4xf32>
    %895 = arith.mulf %890, %894 : vector<5x4xf32>
    %896 = vector.extract_strided_slice %829 {offsets = [0, 16], sizes = [4, 8], strides = [1, 1]} : vector<4x32xf32> to vector<4x8xf32>
    %cst_387 = arith.constant dense<0.000000e+00> : vector<5x8xf32>
    %897 = tpu.matmul %895, %896, %cst_387 {dimension_numbers = #tpu.dot_dimension_numbers<[1], [0], [0], [1], [0, 0, 1, 1], [], []>} : vector<5x4xf32>, vector<4x8xf32>, vector<5x8xf32> -> vector<5x8xf32>
    %898 = vector.extract_strided_slice %831 {offsets = [16, 0], sizes = [8, 32], strides = [1, 1]} : vector<32x32xf32> to vector<8x32xf32>
    %cst_388 = arith.constant dense<0.000000e+00> : vector<5x32xf32>
    %899 = tpu.matmul %897, %898, %cst_388 {dimension_numbers = #tpu.dot_dimension_numbers<[1], [0], [0], [1], [0, 0, 1, 1], [], []>} : vector<5x8xf32>, vector<8x32xf32>, vector<5x32xf32> -> vector<5x32xf32>
    %900 = arith.addf %878, %899 : vector<5x32xf32>
    %901 = vector.extract_strided_slice %820 {offsets = [0, 24], sizes = [5, 8], strides = [1, 1]} : vector<5x32xf32> to vector<5x8xf32>
    %902 = vector.extract_strided_slice %828 {offsets = [0, 24], sizes = [4, 8], strides = [1, 1]} : vector<4x32xf32> to vector<4x8xf32>
    %cst_389 = arith.constant dense<0.000000e+00> : vector<5x4xf32>
    %903 = tpu.matmul %901, %902, %cst_389 {dimension_numbers = #tpu.dot_dimension_numbers<[1], [1], [0], [0], [0, 0, 1, 0], [], []>} : vector<5x8xf32>, vector<4x8xf32>, vector<5x4xf32> -> vector<5x4xf32>
    %cst_390 = arith.constant 0.353553385 : f32
    %904 = vector.broadcast %cst_390 : f32 to vector<5x4xf32>
    %905 = arith.mulf %903, %904 : vector<5x4xf32>
    %906 = vector.broadcast %3 : vector<1x4xf32> to vector<5x4xf32>
    %907 = arith.addf %905, %906 : vector<5x4xf32>
    %cst_391 = arith.constant dense<0xFF800000> : vector<5xf32>
    %908 = vector.multi_reduction <maximumf>, %907, %cst_391 [1] : vector<5x4xf32> to vector<5xf32>
    %909 = vector.shape_cast %908 : vector<5xf32> to vector<5x1xf32>
    %910 = vector.broadcast %909 : vector<5x1xf32> to vector<5x4xf32>
    %911 = arith.subf %907, %910 : vector<5x4xf32>
    %912 = math.exp %911 : vector<5x4xf32>
    %cst_392 = arith.constant dense<0.000000e+00> : vector<5xf32>
    %913 = vector.multi_reduction <add>, %912, %cst_392 [1] : vector<5x4xf32> to vector<5xf32>
    %914 = vector.shape_cast %913 : vector<5xf32> to vector<5x1xf32>
    %915 = tpu.reciprocal %914 {approx = true} : vector<5x1xf32> -> vector<5x1xf32>
    %916 = vector.broadcast %915 : vector<5x1xf32> to vector<5x4xf32>
    %917 = arith.mulf %912, %916 : vector<5x4xf32>
    %918 = vector.extract_strided_slice %829 {offsets = [0, 24], sizes = [4, 8], strides = [1, 1]} : vector<4x32xf32> to vector<4x8xf32>
    %cst_393 = arith.constant dense<0.000000e+00> : vector<5x8xf32>
    %919 = tpu.matmul %917, %918, %cst_393 {dimension_numbers = #tpu.dot_dimension_numbers<[1], [0], [0], [1], [0, 0, 1, 1], [], []>} : vector<5x4xf32>, vector<4x8xf32>, vector<5x8xf32> -> vector<5x8xf32>
    %920 = vector.extract_strided_slice %831 {offsets = [24, 0], sizes = [8, 32], strides = [1, 1]} : vector<32x32xf32> to vector<8x32xf32>
    %cst_394 = arith.constant dense<0.000000e+00> : vector<5x32xf32>
    %921 = tpu.matmul %919, %920, %cst_394 {dimension_numbers = #tpu.dot_dimension_numbers<[1], [0], [0], [1], [0, 0, 1, 1], [], []>} : vector<5x8xf32>, vector<8x32xf32>, vector<5x32xf32> -> vector<5x32xf32>
    %922 = arith.addf %900, %921 : vector<5x32xf32>
    %923 = vector.broadcast %833 : vector<1x32xf32> to vector<5x32xf32>
    %924 = arith.addf %922, %923 : vector<5x32xf32>
    %925 = arith.addf %813, %924 : vector<5x32xf32>
    %c1_395 = arith.constant 1 : index
    %c0_396 = arith.constant 0 : index
    %c0_397 = arith.constant 0 : index
    %926 = vector.load %arg17[%c1_395, %c0_396, %c0_397] : memref<2x1x32xf32, #tpu.memory_space<vmem>>, vector<1x1x32xf32>
    %927 = vector.shape_cast %926 : vector<1x1x32xf32> to vector<1x32xf32>
    %c1_398 = arith.constant 1 : index
    %c0_399 = arith.constant 0 : index
    %c0_400 = arith.constant 0 : index
    %928 = vector.load %arg16[%c1_398, %c0_399, %c0_400] : memref<2x1x32xf32, #tpu.memory_space<vmem>>, vector<1x1x32xf32>
    %929 = vector.shape_cast %928 : vector<1x1x32xf32> to vector<1x32xf32>
    %cst_401 = arith.constant dense<0.000000e+00> : vector<5xf32>
    %930 = vector.multi_reduction <add>, %925, %cst_401 [1] : vector<5x32xf32> to vector<5xf32>
    %931 = vector.shape_cast %930 : vector<5xf32> to vector<5x1xf32>
    %cst_402 = arith.constant 3.200000e+01 : f32
    %932 = vector.broadcast %cst_402 : f32 to vector<5x1xf32>
    %933 = arith.divf %931, %932 : vector<5x1xf32>
    %934 = vector.broadcast %933 : vector<5x1xf32> to vector<5x32xf32>
    %935 = arith.subf %925, %934 : vector<5x32xf32>
    %936 = arith.mulf %935, %935 : vector<5x32xf32>
    %cst_403 = arith.constant dense<0.000000e+00> : vector<5xf32>
    %937 = vector.multi_reduction <add>, %936, %cst_403 [1] : vector<5x32xf32> to vector<5xf32>
    %938 = vector.shape_cast %937 : vector<5xf32> to vector<5x1xf32>
    %cst_404 = arith.constant 3.200000e+01 : f32
    %939 = vector.broadcast %cst_404 : f32 to vector<5x1xf32>
    %940 = arith.divf %938, %939 : vector<5x1xf32>
    %941 = vector.broadcast %933 : vector<5x1xf32> to vector<5x32xf32>
    %942 = arith.subf %925, %941 : vector<5x32xf32>
    %cst_405 = arith.constant 9.99999974E-6 : f32
    %943 = vector.broadcast %cst_405 : f32 to vector<5x1xf32>
    %944 = arith.addf %940, %943 : vector<5x1xf32>
    %945 = math.rsqrt %944 : vector<5x1xf32>
    %946 = vector.broadcast %945 : vector<5x1xf32> to vector<5x32xf32>
    %947 = arith.mulf %942, %946 : vector<5x32xf32>
    %948 = vector.broadcast %927 : vector<1x32xf32> to vector<5x32xf32>
    %949 = arith.mulf %947, %948 : vector<5x32xf32>
    %950 = vector.broadcast %929 : vector<1x32xf32> to vector<5x32xf32>
    %951 = arith.addf %949, %950 : vector<5x32xf32>
    %c1_406 = arith.constant 1 : index
    %c0_407 = arith.constant 0 : index
    %c0_408 = arith.constant 0 : index
    %952 = vector.load %arg12[%c1_406, %c0_407, %c0_408] : memref<2x32x128xf32, #tpu.memory_space<vmem>>, vector<1x32x128xf32>
    %953 = vector.shape_cast %952 : vector<1x32x128xf32> to vector<32x128xf32>
    %c1_409 = arith.constant 1 : index
    %c0_410 = arith.constant 0 : index
    %c0_411 = arith.constant 0 : index
    %954 = vector.load %arg10[%c1_409, %c0_410, %c0_411] : memref<2x1x128xf32, #tpu.memory_space<vmem>>, vector<1x1x128xf32>
    %955 = vector.shape_cast %954 : vector<1x1x128xf32> to vector<1x128xf32>
    %cst_412 = arith.constant dense<0.000000e+00> : vector<5x128xf32>
    %956 = tpu.matmul %951, %953, %cst_412 {dimension_numbers = #tpu.dot_dimension_numbers<[1], [0], [0], [1], [0, 0, 1, 1], [], []>} : vector<5x32xf32>, vector<32x128xf32>, vector<5x128xf32> -> vector<5x128xf32>
    %957 = vector.broadcast %955 : vector<1x128xf32> to vector<5x128xf32>
    %958 = arith.addf %956, %957 : vector<5x128xf32>
    %cst_413 = arith.constant 0.000000e+00 : f32
    %959 = vector.broadcast %cst_413 : f32 to vector<5x128xf32>
    %960 = arith.maximumf %958, %959 : vector<5x128xf32>
    %c1_414 = arith.constant 1 : index
    %c0_415 = arith.constant 0 : index
    %c0_416 = arith.constant 0 : index
    %961 = vector.load %arg13[%c1_414, %c0_415, %c0_416] : memref<2x128x32xf32, #tpu.memory_space<vmem>>, vector<1x128x32xf32>
    %962 = vector.shape_cast %961 : vector<1x128x32xf32> to vector<128x32xf32>
    %c1_417 = arith.constant 1 : index
    %c0_418 = arith.constant 0 : index
    %c0_419 = arith.constant 0 : index
    %963 = vector.load %arg11[%c1_417, %c0_418, %c0_419] : memref<2x1x32xf32, #tpu.memory_space<vmem>>, vector<1x1x32xf32>
    %964 = vector.shape_cast %963 : vector<1x1x32xf32> to vector<1x32xf32>
    %cst_420 = arith.constant dense<0.000000e+00> : vector<5x32xf32>
    %965 = tpu.matmul %960, %962, %cst_420 {dimension_numbers = #tpu.dot_dimension_numbers<[1], [0], [0], [1], [0, 0, 1, 1], [], []>} : vector<5x128xf32>, vector<128x32xf32>, vector<5x32xf32> -> vector<5x32xf32>
    %966 = vector.broadcast %964 : vector<1x32xf32> to vector<5x32xf32>
    %967 = arith.addf %965, %966 : vector<5x32xf32>
    %968 = arith.addf %951, %967 : vector<5x32xf32>
    %c1_421 = arith.constant 1 : index
    %c0_422 = arith.constant 0 : index
    %c0_423 = arith.constant 0 : index
    %969 = vector.load %arg19[%c1_421, %c0_422, %c0_423] : memref<2x1x32xf32, #tpu.memory_space<vmem>>, vector<1x1x32xf32>
    %970 = vector.shape_cast %969 : vector<1x1x32xf32> to vector<1x32xf32>
    %c1_424 = arith.constant 1 : index
    %c0_425 = arith.constant 0 : index
    %c0_426 = arith.constant 0 : index
    %971 = vector.load %arg18[%c1_424, %c0_425, %c0_426] : memref<2x1x32xf32, #tpu.memory_space<vmem>>, vector<1x1x32xf32>
    %972 = vector.shape_cast %971 : vector<1x1x32xf32> to vector<1x32xf32>
    %cst_427 = arith.constant dense<0.000000e+00> : vector<5xf32>
    %973 = vector.multi_reduction <add>, %968, %cst_427 [1] : vector<5x32xf32> to vector<5xf32>
    %974 = vector.shape_cast %973 : vector<5xf32> to vector<5x1xf32>
    %cst_428 = arith.constant 3.200000e+01 : f32
    %975 = vector.broadcast %cst_428 : f32 to vector<5x1xf32>
    %976 = arith.divf %974, %975 : vector<5x1xf32>
    %977 = vector.broadcast %976 : vector<5x1xf32> to vector<5x32xf32>
    %978 = arith.subf %968, %977 : vector<5x32xf32>
    %979 = arith.mulf %978, %978 : vector<5x32xf32>
    %cst_429 = arith.constant dense<0.000000e+00> : vector<5xf32>
    %980 = vector.multi_reduction <add>, %979, %cst_429 [1] : vector<5x32xf32> to vector<5xf32>
    %981 = vector.shape_cast %980 : vector<5xf32> to vector<5x1xf32>
    %cst_430 = arith.constant 3.200000e+01 : f32
    %982 = vector.broadcast %cst_430 : f32 to vector<5x1xf32>
    %983 = arith.divf %981, %982 : vector<5x1xf32>
    %984 = vector.broadcast %976 : vector<5x1xf32> to vector<5x32xf32>
    %985 = arith.subf %968, %984 : vector<5x32xf32>
    %cst_431 = arith.constant 9.99999974E-6 : f32
    %986 = vector.broadcast %cst_431 : f32 to vector<5x1xf32>
    %987 = arith.addf %983, %986 : vector<5x1xf32>
    %988 = math.rsqrt %987 : vector<5x1xf32>
    %989 = vector.broadcast %988 : vector<5x1xf32> to vector<5x32xf32>
    %990 = arith.mulf %985, %989 : vector<5x32xf32>
    %991 = vector.broadcast %970 : vector<1x32xf32> to vector<5x32xf32>
    %992 = arith.mulf %990, %991 : vector<5x32xf32>
    %993 = vector.broadcast %972 : vector<1x32xf32> to vector<5x32xf32>
    %994 = arith.addf %992, %993 : vector<5x32xf32>
    %c0_432 = arith.constant 0 : index
    %c0_433 = arith.constant 0 : index
    %995 = vector.load %arg25[%c0_432, %c0_433] : memref<1x32xf32, #tpu.memory_space<vmem>>, vector<1x32xf32>
    %c0_434 = arith.constant 0 : index
    %c0_435 = arith.constant 0 : index
    %996 = vector.load %arg24[%c0_434, %c0_435] : memref<1x32xf32, #tpu.memory_space<vmem>>, vector<1x32xf32>
    %cst_436 = arith.constant dense<0.000000e+00> : vector<5xf32>
    %997 = vector.multi_reduction <add>, %994, %cst_436 [1] : vector<5x32xf32> to vector<5xf32>
    %998 = vector.shape_cast %997 : vector<5xf32> to vector<5x1xf32>
    %cst_437 = arith.constant 3.200000e+01 : f32
    %999 = vector.broadcast %cst_437 : f32 to vector<5x1xf32>
    %1000 = arith.divf %998, %999 : vector<5x1xf32>
    %1001 = vector.broadcast %1000 : vector<5x1xf32> to vector<5x32xf32>
    %1002 = arith.subf %994, %1001 : vector<5x32xf32>
    %1003 = arith.mulf %1002, %1002 : vector<5x32xf32>
    %cst_438 = arith.constant dense<0.000000e+00> : vector<5xf32>
    %1004 = vector.multi_reduction <add>, %1003, %cst_438 [1] : vector<5x32xf32> to vector<5xf32>
    %1005 = vector.shape_cast %1004 : vector<5xf32> to vector<5x1xf32>
    %cst_439 = arith.constant 3.200000e+01 : f32
    %1006 = vector.broadcast %cst_439 : f32 to vector<5x1xf32>
    %1007 = arith.divf %1005, %1006 : vector<5x1xf32>
    %1008 = vector.broadcast %1000 : vector<5x1xf32> to vector<5x32xf32>
    %1009 = arith.subf %994, %1008 : vector<5x32xf32>
    %cst_440 = arith.constant 9.99999974E-6 : f32
    %1010 = vector.broadcast %cst_440 : f32 to vector<5x1xf32>
    %1011 = arith.addf %1007, %1010 : vector<5x1xf32>
    %1012 = math.rsqrt %1011 : vector<5x1xf32>
    %1013 = vector.broadcast %1012 : vector<5x1xf32> to vector<5x32xf32>
    %1014 = arith.mulf %1009, %1013 : vector<5x32xf32>
    %1015 = vector.broadcast %995 : vector<1x32xf32> to vector<5x32xf32>
    %1016 = arith.mulf %1014, %1015 : vector<5x32xf32>
    %1017 = vector.broadcast %996 : vector<1x32xf32> to vector<5x32xf32>
    %1018 = arith.addf %1016, %1017 : vector<5x32xf32>
    %c0_441 = arith.constant 0 : index
    %c0_442 = arith.constant 0 : index
    %1019 = vector.load %arg41[%c0_441, %c0_442] : memref<32x5xf32, #tpu.memory_space<vmem>>, vector<32x5xf32>
    %c0_443 = arith.constant 0 : index
    %c0_444 = arith.constant 0 : index
    %1020 = vector.load %arg40[%c0_443, %c0_444] : memref<1x5xf32, #tpu.memory_space<vmem>>, vector<1x5xf32>
    %cst_445 = arith.constant dense<0.000000e+00> : vector<5x5xf32>
    %1021 = tpu.matmul %1018, %1019, %cst_445 {dimension_numbers = #tpu.dot_dimension_numbers<[1], [0], [0], [1], [0, 0, 1, 1], [], []>} : vector<5x32xf32>, vector<32x5xf32>, vector<5x5xf32> -> vector<5x5xf32>
    %1022 = vector.broadcast %1020 : vector<1x5xf32> to vector<5x5xf32>
    %1023 = arith.addf %1021, %1022 : vector<5x5xf32>
    %cst_446 = arith.constant dense<0xFF800000> : vector<5xf32>
    %1024 = vector.multi_reduction <maximumf>, %1023, %cst_446 [1] : vector<5x5xf32> to vector<5xf32>
    %1025 = vector.shape_cast %1024 : vector<5xf32> to vector<5x1xf32>
    %1026 = vector.broadcast %1025 : vector<5x1xf32> to vector<5x5xf32>
    %1027 = arith.subf %1023, %1026 : vector<5x5xf32>
    %1028 = math.exp %1027 : vector<5x5xf32>
    %cst_447 = arith.constant dense<0.000000e+00> : vector<5xf32>
    %1029 = vector.multi_reduction <add>, %1028, %cst_447 [1] : vector<5x5xf32> to vector<5xf32>
    %1030 = vector.shape_cast %1029 : vector<5xf32> to vector<5x1xf32>
    %1031 = vector.broadcast %1030 : vector<5x1xf32> to vector<5x5xf32>
    %1032 = arith.divf %1028, %1031 : vector<5x5xf32>
    %c0_448 = arith.constant 0 : index
    %c0_449 = arith.constant 0 : index
    %c0_450 = arith.constant 0 : index
    %1033 = vector.load %arg44[%c0_448, %c0_449, %c0_450] : memref<1x5x5xf32, #tpu.memory_space<vmem>>, vector<1x5x5xf32>
    %1034 = vector.shape_cast %1033 : vector<1x5x5xf32> to vector<5x5xf32>
    %1035 = vector.shape_cast %1032 : vector<5x5xf32> to vector<1x5x5xf32>
    tpu.vector_store %arg44[%c0_448, %c0_449, %c0_450], %1035 {strides = array<i32>} : memref<1x5x5xf32, #tpu.memory_space<vmem>>, vector<1x5x5xf32>,
    return
  }
  func.func @transform_0(%arg0: i32) -> (i32, i32, i32) {
    %c0_i32 = arith.constant 0 : i32
    %c0_i32_0 = arith.constant 0 : i32
    %c0_i32_1 = arith.constant 0 : i32
    return %arg0, %c0_i32, %c0_i32_0 : i32, i32, i32
  }
  func.func @transform_1(%arg0: i32) -> (i32, i32, i32) {
    %c0_i32 = arith.constant 0 : i32
    %c0_i32_0 = arith.constant 0 : i32
    %c0_i32_1 = arith.constant 0 : i32
    return %arg0, %c0_i32, %c0_i32_0 : i32, i32, i32
  }
  func.func @transform_2(%arg0: i32) -> (i32, i32, i32) {
    %c0_i32 = arith.constant 0 : i32
    %c0_i32_0 = arith.constant 0 : i32
    %c0_i32_1 = arith.constant 0 : i32
    return %arg0, %c0_i32, %c0_i32_0 : i32, i32, i32
  }
  func.func @transform_3(%arg0: i32) -> (i32, i32, i32) {
    %c0_i32 = arith.constant 0 : i32
    %c0_i32_0 = arith.constant 0 : i32
    %c0_i32_1 = arith.constant 0 : i32
    %c0_i32_2 = arith.constant 0 : i32
    return %c0_i32, %c0_i32_0, %c0_i32_1 : i32, i32, i32
  }
  func.func @transform_4(%arg0: i32) -> (i32, i32, i32) {
    %c0_i32 = arith.constant 0 : i32
    %c0_i32_0 = arith.constant 0 : i32
    %c0_i32_1 = arith.constant 0 : i32
    %c0_i32_2 = arith.constant 0 : i32
    return %c0_i32, %c0_i32_0, %c0_i32_1 : i32, i32, i32
  }
  func.func @transform_5(%arg0: i32) -> (i32, i32, i32) {
    %c0_i32 = arith.constant 0 : i32
    %c0_i32_0 = arith.constant 0 : i32
    %c0_i32_1 = arith.constant 0 : i32
    %c0_i32_2 = arith.constant 0 : i32
    return %c0_i32, %c0_i32_0, %c0_i32_1 : i32, i32, i32
  }
  func.func @transform_6(%arg0: i32) -> (i32, i32, i32) {
    %c0_i32 = arith.constant 0 : i32
    %c0_i32_0 = arith.constant 0 : i32
    %c0_i32_1 = arith.constant 0 : i32
    %c0_i32_2 = arith.constant 0 : i32
    return %c0_i32, %c0_i32_0, %c0_i32_1 : i32, i32, i32
  }
  func.func @transform_7(%arg0: i32) -> (i32, i32, i32) {
    %c0_i32 = arith.constant 0 : i32
    %c0_i32_0 = arith.constant 0 : i32
    %c0_i32_1 = arith.constant 0 : i32
    %c0_i32_2 = arith.constant 0 : i32
    return %c0_i32, %c0_i32_0, %c0_i32_1 : i32, i32, i32
  }
  func.func @transform_8(%arg0: i32) -> (i32, i32, i32) {
    %c0_i32 = arith.constant 0 : i32
    %c0_i32_0 = arith.constant 0 : i32
    %c0_i32_1 = arith.constant 0 : i32
    %c0_i32_2 = arith.constant 0 : i32
    return %c0_i32, %c0_i32_0, %c0_i32_1 : i32, i32, i32
  }
  func.func @transform_9(%arg0: i32) -> (i32, i32, i32) {
    %c0_i32 = arith.constant 0 : i32
    %c0_i32_0 = arith.constant 0 : i32
    %c0_i32_1 = arith.constant 0 : i32
    %c0_i32_2 = arith.constant 0 : i32
    return %c0_i32, %c0_i32_0, %c0_i32_1 : i32, i32, i32
  }
  func.func @transform_10(%arg0: i32) -> (i32, i32, i32) {
    %c0_i32 = arith.constant 0 : i32
    %c0_i32_0 = arith.constant 0 : i32
    %c0_i32_1 = arith.constant 0 : i32
    %c0_i32_2 = arith.constant 0 : i32
    return %c0_i32, %c0_i32_0, %c0_i32_1 : i32, i32, i32
  }
  func.func @transform_11(%arg0: i32) -> (i32, i32, i32) {
    %c0_i32 = arith.constant 0 : i32
    %c0_i32_0 = arith.constant 0 : i32
    %c0_i32_1 = arith.constant 0 : i32
    %c0_i32_2 = arith.constant 0 : i32
    return %c0_i32, %c0_i32_0, %c0_i32_1 : i32, i32, i32
  }
  func.func @transform_12(%arg0: i32) -> (i32, i32, i32) {
    %c0_i32 = arith.constant 0 : i32
    %c0_i32_0 = arith.constant 0 : i32
    %c0_i32_1 = arith.constant 0 : i32
    %c0_i32_2 = arith.constant 0 : i32
    return %c0_i32, %c0_i32_0, %c0_i32_1 : i32, i32, i32
  }
  func.func @transform_13(%arg0: i32) -> (i32, i32, i32) {
    %c0_i32 = arith.constant 0 : i32
    %c0_i32_0 = arith.constant 0 : i32
    %c0_i32_1 = arith.constant 0 : i32
    %c0_i32_2 = arith.constant 0 : i32
    return %c0_i32, %c0_i32_0, %c0_i32_1 : i32, i32, i32
  }
  func.func @transform_14(%arg0: i32) -> (i32, i32, i32) {
    %c0_i32 = arith.constant 0 : i32
    %c0_i32_0 = arith.constant 0 : i32
    %c0_i32_1 = arith.constant 0 : i32
    %c0_i32_2 = arith.constant 0 : i32
    return %c0_i32, %c0_i32_0, %c0_i32_1 : i32, i32, i32
  }
  func.func @transform_15(%arg0: i32) -> (i32, i32, i32) {
    %c0_i32 = arith.constant 0 : i32
    %c0_i32_0 = arith.constant 0 : i32
    %c0_i32_1 = arith.constant 0 : i32
    %c0_i32_2 = arith.constant 0 : i32
    return %c0_i32, %c0_i32_0, %c0_i32_1 : i32, i32, i32
  }
  func.func @transform_16(%arg0: i32) -> (i32, i32, i32) {
    %c0_i32 = arith.constant 0 : i32
    %c0_i32_0 = arith.constant 0 : i32
    %c0_i32_1 = arith.constant 0 : i32
    %c0_i32_2 = arith.constant 0 : i32
    return %c0_i32, %c0_i32_0, %c0_i32_1 : i32, i32, i32
  }
  func.func @transform_17(%arg0: i32) -> (i32, i32, i32) {
    %c0_i32 = arith.constant 0 : i32
    %c0_i32_0 = arith.constant 0 : i32
    %c0_i32_1 = arith.constant 0 : i32
    %c0_i32_2 = arith.constant 0 : i32
    return %c0_i32, %c0_i32_0, %c0_i32_1 : i32, i32, i32
  }
  func.func @transform_18(%arg0: i32) -> (i32, i32, i32) {
    %c0_i32 = arith.constant 0 : i32
    %c0_i32_0 = arith.constant 0 : i32
    %c0_i32_1 = arith.constant 0 : i32
    %c0_i32_2 = arith.constant 0 : i32
    return %c0_i32, %c0_i32_0, %c0_i32_1 : i32, i32, i32
  }
  func.func @transform_19(%arg0: i32) -> (i32, i32, i32) {
    %c0_i32 = arith.constant 0 : i32
    %c0_i32_0 = arith.constant 0 : i32
    %c0_i32_1 = arith.constant 0 : i32
    %c0_i32_2 = arith.constant 0 : i32
    return %c0_i32, %c0_i32_0, %c0_i32_1 : i32, i32, i32
  }
  func.func @transform_20(%arg0: i32) -> (i32, i32, i32) {
    %c0_i32 = arith.constant 0 : i32
    %c0_i32_0 = arith.constant 0 : i32
    %c0_i32_1 = arith.constant 0 : i32
    %c0_i32_2 = arith.constant 0 : i32
    return %c0_i32, %c0_i32_0, %c0_i32_1 : i32, i32, i32
  }
  func.func @transform_21(%arg0: i32) -> (i32, i32, i32) {
    %c0_i32 = arith.constant 0 : i32
    %c0_i32_0 = arith.constant 0 : i32
    %c0_i32_1 = arith.constant 0 : i32
    %c0_i32_2 = arith.constant 0 : i32
    return %c0_i32, %c0_i32_0, %c0_i32_1 : i32, i32, i32
  }
  func.func @transform_22(%arg0: i32) -> (i32, i32, i32) {
    %c0_i32 = arith.constant 0 : i32
    %c0_i32_0 = arith.constant 0 : i32
    %c0_i32_1 = arith.constant 0 : i32
    %c0_i32_2 = arith.constant 0 : i32
    return %c0_i32, %c0_i32_0, %c0_i32_1 : i32, i32, i32
  }
  func.func @transform_23(%arg0: i32) -> (i32, i32) {
    %c0_i32 = arith.constant 0 : i32
    %c0_i32_0 = arith.constant 0 : i32
    %c0_i32_1 = arith.constant 0 : i32
    return %c0_i32, %c0_i32_0 : i32, i32
  }
  func.func @transform_24(%arg0: i32) -> (i32, i32) {
    %c0_i32 = arith.constant 0 : i32
    %c0_i32_0 = arith.constant 0 : i32
    %c0_i32_1 = arith.constant 0 : i32
    return %c0_i32, %c0_i32_0 : i32, i32
  }
  func.func @transform_25(%arg0: i32) -> (i32, i32, i32) {
    %c0_i32 = arith.constant 0 : i32
    %c0_i32_0 = arith.constant 0 : i32
    %c0_i32_1 = arith.constant 0 : i32
    %c0_i32_2 = arith.constant 0 : i32
    return %c0_i32, %c0_i32_0, %c0_i32_1 : i32, i32, i32
  }
  func.func @transform_26(%arg0: i32) -> (i32, i32, i32) {
    %c0_i32 = arith.constant 0 : i32
    %c0_i32_0 = arith.constant 0 : i32
    %c0_i32_1 = arith.constant 0 : i32
    %c0_i32_2 = arith.constant 0 : i32
    return %c0_i32, %c0_i32_0, %c0_i32_1 : i32, i32, i32
  }
  func.func @transform_27(%arg0: i32) -> (i32, i32, i32) {
    %c0_i32 = arith.constant 0 : i32
    %c0_i32_0 = arith.constant 0 : i32
    %c0_i32_1 = arith.constant 0 : i32
    %c0_i32_2 = arith.constant 0 : i32
    return %c0_i32, %c0_i32_0, %c0_i32_1 : i32, i32, i32
  }
  func.func @transform_28(%arg0: i32) -> (i32, i32, i32) {
    %c0_i32 = arith.constant 0 : i32
    %c0_i32_0 = arith.constant 0 : i32
    %c0_i32_1 = arith.constant 0 : i32
    %c0_i32_2 = arith.constant 0 : i32
    return %c0_i32, %c0_i32_0, %c0_i32_1 : i32, i32, i32
  }
  func.func @transform_29(%arg0: i32) -> (i32, i32, i32) {
    %c0_i32 = arith.constant 0 : i32
    %c0_i32_0 = arith.constant 0 : i32
    %c0_i32_1 = arith.constant 0 : i32
    %c0_i32_2 = arith.constant 0 : i32
    return %c0_i32, %c0_i32_0, %c0_i32_1 : i32, i32, i32
  }
  func.func @transform_30(%arg0: i32) -> (i32, i32, i32) {
    %c0_i32 = arith.constant 0 : i32
    %c0_i32_0 = arith.constant 0 : i32
    %c0_i32_1 = arith.constant 0 : i32
    %c0_i32_2 = arith.constant 0 : i32
    return %c0_i32, %c0_i32_0, %c0_i32_1 : i32, i32, i32
  }
  func.func @transform_31(%arg0: i32) -> (i32, i32, i32) {
    %c0_i32 = arith.constant 0 : i32
    %c0_i32_0 = arith.constant 0 : i32
    %c0_i32_1 = arith.constant 0 : i32
    %c0_i32_2 = arith.constant 0 : i32
    return %c0_i32, %c0_i32_0, %c0_i32_1 : i32, i32, i32
  }
  func.func @transform_32(%arg0: i32) -> (i32, i32, i32) {
    %c0_i32 = arith.constant 0 : i32
    %c0_i32_0 = arith.constant 0 : i32
    %c0_i32_1 = arith.constant 0 : i32
    %c0_i32_2 = arith.constant 0 : i32
    return %c0_i32, %c0_i32_0, %c0_i32_1 : i32, i32, i32
  }
  func.func @transform_33(%arg0: i32) -> (i32, i32, i32) {
    %c0_i32 = arith.constant 0 : i32
    %c0_i32_0 = arith.constant 0 : i32
    %c0_i32_1 = arith.constant 0 : i32
    %c0_i32_2 = arith.constant 0 : i32
    return %c0_i32, %c0_i32_0, %c0_i32_1 : i32, i32, i32
  }
  func.func @transform_34(%arg0: i32) -> (i32, i32, i32) {
    %c0_i32 = arith.constant 0 : i32
    %c0_i32_0 = arith.constant 0 : i32
    %c0_i32_1 = arith.constant 0 : i32
    %c0_i32_2 = arith.constant 0 : i32
    return %c0_i32, %c0_i32_0, %c0_i32_1 : i32, i32, i32
  }
  func.func @transform_35(%arg0: i32) -> (i32, i32, i32) {
    %c0_i32 = arith.constant 0 : i32
    %c0_i32_0 = arith.constant 0 : i32
    %c0_i32_1 = arith.constant 0 : i32
    %c0_i32_2 = arith.constant 0 : i32
    return %c0_i32, %c0_i32_0, %c0_i32_1 : i32, i32, i32
  }
  func.func @transform_36(%arg0: i32) -> (i32, i32, i32) {
    %c0_i32 = arith.constant 0 : i32
    %c0_i32_0 = arith.constant 0 : i32
    %c0_i32_1 = arith.constant 0 : i32
    %c0_i32_2 = arith.constant 0 : i32
    return %c0_i32, %c0_i32_0, %c0_i32_1 : i32, i32, i32
  }
  func.func @transform_37(%arg0: i32) -> (i32, i32) {
    %c0_i32 = arith.constant 0 : i32
    %c0_i32_0 = arith.constant 0 : i32
    %c0_i32_1 = arith.constant 0 : i32
    return %c0_i32, %c0_i32_0 : i32, i32
  }
  func.func @transform_38(%arg0: i32) -> (i32, i32) {
    %c0_i32 = arith.constant 0 : i32
    %c0_i32_0 = arith.constant 0 : i32
    %c0_i32_1 = arith.constant 0 : i32
    return %c0_i32, %c0_i32_0 : i32, i32
  }
  func.func @transform_39(%arg0: i32) -> (i32, i32) {
    %c0_i32 = arith.constant 0 : i32
    %c0_i32_0 = arith.constant 0 : i32
    %c0_i32_1 = arith.constant 0 : i32
    return %c0_i32, %c0_i32_0 : i32, i32
  }
  func.func @transform_40(%arg0: i32) -> (i32, i32) {
    %c0_i32 = arith.constant 0 : i32
    %c0_i32_0 = arith.constant 0 : i32
    %c0_i32_1 = arith.constant 0 : i32
    return %c0_i32, %c0_i32_0 : i32, i32
  }
  func.func @transform_41(%arg0: i32) -> (i32, i32) {
    %c0_i32 = arith.constant 0 : i32
    %c0_i32_0 = arith.constant 0 : i32
    %c0_i32_1 = arith.constant 0 : i32
    return %c0_i32, %c0_i32_0 : i32, i32
  }
  func.func @transform_42(%arg0: i32) -> (i32, i32) {
    %c0_i32 = arith.constant 0 : i32
    %c0_i32_0 = arith.constant 0 : i32
    %c0_i32_1 = arith.constant 0 : i32
    return %c0_i32, %c0_i32_0 : i32, i32
  }
  func.func @transform_43(%arg0: i32) -> (i32, i32, i32) {
    %c0_i32 = arith.constant 0 : i32
    %c0_i32_0 = arith.constant 0 : i32
    %c0_i32_1 = arith.constant 0 : i32
    return %arg0, %c0_i32, %c0_i32_0 : i32, i32, i32
  }
}

</mosaic_0001>

<bundles_post_ra>
// kernel: tpu_custom_call.1
= control target key start
LH: loop header
LB: loop body
LE: loop exit
PB: predicated region body
PF: predicated region fallthrough
CT: control target
= control target key end

     0   :  { %s11019_s6 = smov 1   ;;  %s11020_s10 = smov 2   ;;  %s12320_s0 = inlined_call_operand.smem [shape: u32[44], index: -1, kind: input, shape index: {}] }
   0x1   :  { %s11086_s5 = sld [smem:[%s12320_s0]]   ;;  %s11021_s14 = smov 3  }
   0x2   :  { %s11091_s9 = sld [smem:[%s12320_s0 + %s11019_s6]]   ;;  %s11022_s18 = smov 4  }
   0x3   :  { %s11096_s13 = sld [smem:[%s12320_s0 + %s11020_s10]]   ;;  %s11023_s22 = smov 5  }
   0x4   :  { %s11101_s17 = sld [smem:[%s12320_s0 + %s11021_s14]]   ;;  %s11024_s26 = smov 6  }
   0x5   :  { %s11106_s21 = sld [smem:[%s12320_s0 + %s11022_s18]]   ;;  %s11025_s30 = smov 7  }
   0x6   :  { %s11111_s25 = sld [smem:[%s12320_s0 + %s11023_s22]]   ;;  %s11026_s4 = smov 8  }
   0x7   :  { %12385 = sst [smem:[#allocation8_spill]] %s11086_s5  ;;  %s11027_s10 = smov 9  }
   0x8   :  { %12386 = sst [smem:[#allocation9_spill]] %s11091_s9  ;;  %s11028_s15 = smov 10  }
   0x9   :  { %12387 = sst [smem:[#allocation10_spill]] %s11096_s13  ;;  %s11029_s20 = smov 11  }
   0xa   :  { %12388 = sst [smem:[#allocation11_spill]] %s11101_s17  ;;  %s11031_s1 = smov 13  }
   0xb   :  { %12389 = sst [smem:[#allocation12_spill]] %s11106_s21  ;;  %s11032_s7 = smov 14  }
   0xc   :  { %12390 = sst [smem:[#allocation13_spill]] %s11111_s25  ;;  %s11034_s22 = smov 16  }
   0xd   :  { %s11116_s29 = sld [smem:[%s12320_s0 + %s11024_s26]]   ;;  %s11030_s26 = smov 12  }
   0xe   :  { %s11121_s3 = sld [smem:[%s12320_s0 + %s11025_s30]]   ;;  %s11035_s28 = smov 17  }
   0xf   :  { %s11126_s8 = sld [smem:[%s12320_s0 + %s11026_s4]]  }
  0x10   :  { %s11131_s14 = sld [smem:[%s12320_s0 + %s11027_s10]]  }
  0x11   :  { %s11136_s19 = sld [smem:[%s12320_s0 + %s11028_s15]]   ;;  %s11033_s15 = smov 15  }
  0x12   :  { %s11141_s24 = sld [smem:[%s12320_s0 + %s11029_s20]]  }
  0x13   :  { %12391 = sst [smem:[#allocation14_spill]] %s11116_s29 }
  0x14   :  { %12392 = sst [smem:[#allocation15_spill]] %s11121_s3 }
  0x15   :  { %12393 = sst [smem:[#allocation16_spill]] %s11126_s8 }
  0x16   :  { %12394 = sst [smem:[#allocation17_spill]] %s11131_s14 }
  0x17   :  { %12395 = sst [smem:[#allocation18_spill]] %s11136_s19 }
  0x18   :  { %12396 = sst [smem:[#allocation19_spill]] %s11141_s24 }
  0x19   :  { %s11146_s30 = sld [smem:[%s12320_s0 + %s11030_s26]]  }
  0x1a   :  { %s11151_s6 = sld [smem:[%s12320_s0 + %s11031_s1]]  }
  0x1b   :  { %s11156_s12 = sld [smem:[%s12320_s0 + %s11032_s7]]   ;;  %s11036_s7 = smov 18  }
  0x1c   :  { %s11161_s20 = sld [smem:[%s12320_s0 + %s11033_s15]]   ;;  %s11037_s15 = smov 19  }
  0x1d   :  { %s11166_s27 = sld [smem:[%s12320_s0 + %s11034_s22]]   ;;  %s11038_s22 = smov 20  }
  0x1e   :  { %s11171_s4 = sld [smem:[%s12320_s0 + %s11035_s28]]   ;;  %s11039_s28 = smov 21  }
  0x1f   :  { %12397 = sst [smem:[#allocation20_spill]] %s11146_s30 }
  0x20   :  { %12398 = sst [smem:[#allocation21_spill]] %s11151_s6 }
  0x21   :  { %12399 = sst [smem:[#allocation22_spill]] %s11156_s12 }
  0x22   :  { %12400 = sst [smem:[#allocation23_spill]] %s11161_s20 }
  0x23   :  { %12401 = sst [smem:[#allocation24_spill]] %s11166_s27 }
  0x24   :  { %12402 = sst [smem:[#allocation25_spill]] %s11171_s4 }
  0x25   :  { %s11176_s19 = sld [smem:[%s12320_s0 + %s11036_s7]]   ;;  %s11040_s7 = smov 22  }
  0x26   :  { %s11181_s14 = sld [smem:[%s12320_s0 + %s11037_s15]]   ;;  %s11041_s15 = smov 23  }
  0x27   :  { %s11186_s20 = sld [smem:[%s12320_s0 + %s11038_s22]]   ;;  %s11042_s22 = smov 24  }
  0x28   :  { %s11191_s4 = sld [smem:[%s12320_s0 + %s11039_s28]]   ;;  %s11043_s28 = smov 25  }
  0x29   :  { %s11201_s27 = sld [smem:[%s12320_s0 + %s11041_s15]]   ;;  %s11045_s15 = smov 27  }
  0x2a   :  { %s11206_s30 = sld [smem:[%s12320_s0 + %s11042_s22]]   ;;  %s11046_s22 = smov 28  }
  0x2b   :  { %12403 = sst [smem:[#allocation26_spill]] %s11176_s19 }
  0x2c   :  { %12404 = sst [smem:[#allocation27_spill]] %s11181_s14 }
  0x2d   :  { %12405 = sst [smem:[#allocation28_spill]] %s11186_s20 }
  0x2e   :  { %12406 = sst [smem:[#allocation29_spill]] %s11191_s4 }
  0x2f   :  { %s11196_s19 = sld [smem:[%s12320_s0 + %s11040_s7]]   ;;  %s11044_s7 = smov 26  }
  0x30   :  { %12408 = sst [smem:[#allocation31_spill]] %s11201_s27 }
  0x31   :  { %12409 = sst [smem:[#allocation32_spill]] %s11206_s30 }
  0x32   :  { %s11211_s24 = sld [smem:[%s12320_s0 + %s11043_s28]]   ;;  %s11047_s28 = smov 29  }
  0x33   :  { %s11216_s25 = sld [smem:[%s12320_s0 + %s11044_s7]]   ;;  %s11048_s7 = smov 30  }
  0x34   :  { %s11221_s27 = sld [smem:[%s12320_s0 + %s11045_s15]]   ;;  %s11049_s15 = smov 31  }
  0x35   :  { %12407 = sst [smem:[#allocation30_spill]] %s11196_s19 }
  0x36   :  { %s11226_s30 = sld [smem:[%s12320_s0 + %s11046_s22]]   ;;  %s11050_s22 = smov 32  }
  0x37   :  { %s11231_s29 = sld [smem:[%s12320_s0 + %s11047_s28]]   ;;  %s11051_s28 = smov 33  }
  0x38   :  { %12410 = sst [smem:[#allocation33_spill]] %s11211_s24 }
  0x39   :  { %12411 = sst [smem:[#allocation34_spill]] %s11216_s25 }
  0x3a   :  { %12412 = sst [smem:[#allocation35_spill]] %s11221_s27 }
  0x3b   :  { %s11236_s3 = sld [smem:[%s12320_s0 + %s11048_s7]]   ;;  %s11052_s7 = smov 34  }
  0x3c   :  { %12413 = sst [smem:[#allocation36_spill]] %s11226_s30 }
  0x3d   :  { %12414 = sst [smem:[#allocation37_spill]] %s11231_s29 }
  0x3e   :  { %s11241_s17 = sld [smem:[%s12320_s0 + %s11049_s15]]   ;;  %s11053_s15 = smov 35  }
  0x3f   :  { %s11246_s6 = sld [smem:[%s12320_s0 + %s11050_s22]]   ;;  %s11054_s22 = smov 36  }
  0x40   :  { %s11251_s12 = sld [smem:[%s12320_s0 + %s11051_s28]]   ;;  %s11055_s28 = smov 37  }
  0x41   :  { %12415 = sst [smem:[#allocation38_spill]] %s11236_s3 }
  0x42   :  { %s11256_s8 = sld [smem:[%s12320_s0 + %s11052_s7]]   ;;  %s11056_s7 = smov 38  }
  0x43   :  { %s11261_s21 = sld [smem:[%s12320_s0 + %s11053_s15]]   ;;  %s11057_s15 = smov 39  }
  0x44   :  { %12416 = sst [smem:[#allocation39_spill]] %s11241_s17 }
  0x45   :  { %12417 = sst [smem:[#allocation40_spill]] %s11246_s6 }
  0x46   :  { %12418 = sst [smem:[#allocation41_spill]] %s11251_s12 }
  0x47   :  { %s11266_s14 = sld [smem:[%s12320_s0 + %s11054_s22]]   ;;  %s11058_s22 = smov 40  }
  0x48   :  { %12419 = sst [smem:[#allocation42_spill]] %s11256_s8 }
  0x49   :  { %12420 = sst [smem:[#allocation43_spill]] %s11261_s21 }
  0x4a   :  { %s11271_s20 = sld [smem:[%s12320_s0 + %s11055_s28]]   ;;  %s11059_s28 = smov 41  }
  0x4b   :  { %s11276_s4 = sld [smem:[%s12320_s0 + %s11056_s7]]   ;;  %s11060_s7 = smov 42  }
  0x4c   :  { %s11281_s19 = sld [smem:[%s12320_s0 + %s11057_s15]]   ;;  %s11061_s15 = smov 43  }
  0x4d   :  { %12421 = sst [smem:[#allocation44_spill]] %s11266_s14 }
  0x4e   :  { %s11286_s17 = sld [smem:[%s12320_s0 + %s11058_s22]]  }
  0x4f   :  { %s11301_s6 = sld [smem:[%s12320_s0 + %s11061_s15]]  }
  0x50   :  { %12422 = sst [smem:[#allocation45_spill]] %s11271_s20 }
  0x51   :  { %12423 = sst [smem:[#allocation46_spill]] %s11276_s4 }
  0x52   :  { %12424 = sst [smem:[#allocation47_spill]] %s11281_s19 }
  0x53   :  { %s11291_s20 = sld [smem:[%s12320_s0 + %s11059_s28]]  }
  0x54   :  { %12425 = sst [smem:[#allocation48_spill]] %s11286_s17 }
  0x55   :  { %s11296_s4 = sld [smem:[%s12320_s0 + %s11060_s7]]  }
  0x56   :  { %12428 = sst [smem:[#allocation51_spill]] %s11301_s6 }
  0x59   :  { %12426 = sst [smem:[#allocation49_spill]] %s11291_s20 }
  0x5b   :  { %12427 = sst [smem:[#allocation50_spill]] %s11296_s4 }
  0x5c   :  { %92 = vsyncpa [#allocation3], 0 }
  0x5d   :  { %93 = vsyncpa [#allocation5], 0  ;;  %s11303_s22 = smov 0  }
  0x5e LB: > { %s12429_s30 = sld [smem:[#allocation36_spill]]  ;;  %s12430_s29 = sld [smem:[#allocation37_spill]]  ;;  %s11017_s22 = sphi %s11303_s22, %s99_s22  }
  0x5f   : > { %s12431_s27 = sld [smem:[#allocation35_spill]]  ;;  %s12432_s25 = sld [smem:[#allocation34_spill]] }
  0x60   : > { %s12433_s24 = sld [smem:[#allocation33_spill]]  ;;  %s12434_s21 = sld [smem:[#allocation43_spill]] }
  0x61   : > { %s12435_s20 = sld [smem:[#allocation49_spill]]  ;;  %s12436_s19 = sld [smem:[#allocation47_spill]] }
  0x62   : > { %s12437_s14 = sld [smem:[#allocation44_spill]]  ;;  %s12438_s12 = sld [smem:[#allocation41_spill]] }
  0x63   : > { %s12439_s8 = sld [smem:[#allocation42_spill]]  ;;  %s12441_s3 = sld [smem:[#allocation38_spill]] }
  0x64   : > { %s12440_s4 = sld [smem:[#allocation50_spill]]  ;;  %12442 = sst [smem:[#allocation52_spill]] %s11017_s22 }
  0x65   : > { %s11309_s23 = sadd.s32 4294967295, %s11017_s22   ;;  %p9317_p0 = scmp.ge.s32.totalorder %s11017_s22, 1 }
  0x66   : > { %p1048_p1 = scmp.lt.s32.totalorder %s11017_s22, 3  ;;  %p12343_p2 = scmp.eq.s32.totalorder %s11309_s23, 0 }
  0x67   : > { %s11062_s26 = smov [#allocation2]   ;;  %s11063_s1 = smov [#allocation4]  }
  0x68   : > { %p11314_p3 = pnand %p9317_p0, %p1048_p1  ;;  %s1169_s28 = sshll.u32 %s11062_s26, 4  ;;  %s1170_s28 = int_to_ptr.vmem [resolvable:$true] %s1169_s28 }
  0x69   : > { %s1183_s2 = sshll.u32 %s11063_s1, 4  ;;  %s10947_s10 = scalar_lea.hbm %s12436_s19, 16  ;;  %s11326_s2 = int_to_ptr.vmem [resolvable:$true] %s1183_s2 }
  0x6a   : > { %s12443_s0 = scalar_select %p11314_p3, 1, 0 }
  0x6b   : > { %p10743_p4 = pneg %p11314_p3  ;;  %p10948_p6 = scmp.ne.s32.totalorder %s12436_s19, %s10947_s10 }
  0x6c   : > { %p10954_p10 = scmp.lt.u32.totalorder %s10947_s10, %s12436_s19 }
  0x6d   : > { %p11322_p5 = pnand %p12343_p2, %p10743_p4 }
  0x6f   : > { %p10949_p7 = pneg %p11322_p5 }
  0x71   : > { %p10950_p8 = pnand %p10949_p7, %p10948_p6 }
  0x73   : > { %p10951_p9 = pneg %p10950_p8 }
  0x75   : > { %p10956_p11 = pnand %p10954_p10, %p10951_p9 }
  0x77   : > { %10959 = shalt.err (!%p10956_p11)
}
  0x78   : > { %s10960_s11 = scalar_lea.vmem %s1170_s28, 16  ;;  %s10967_s15 = scalar_lea.vmem %s1170_s28, 32 }
  0x79   : > { %p10961_p12 = scmp.ne.s32.totalorder %s1170_s28, %s10960_s11  ;;  %p10968_p1 = scmp.lt.s32.totalorder %s1170_s28, %s1170_s28 }
  0x7a   : > { %p10969_p4 = scmp.lt.s32.totalorder %s10967_s15, %s10960_s11 }
  0x7b   : > { %p10963_p13 = pnand %p10961_p12, %p10949_p7 }
  0x7c   : > { %p10970_p2 = por %p10969_p4, %p10968_p1 }
  0x7d   : > { %p10964_p0 = pneg %p10963_p13 }
  0x7f   : > { %p10971_p3 = pnand %p10970_p2, %p10964_p0 }
  0x81   : > { %10974 = shalt.err (!%p10971_p3)
}
  0x82   : > { %10746 = dma.hbm_to_vmem [thread:$0]  (!%p11322_p5), %s12436_s19, 16, %s1170_s28, [#allocation3]  }
  0x83   : > { %s10975_s16 = scalar_lea.hbm %s12435_s20, 16 }
  0x84   : > { %p10976_p6 = scmp.ne.s32.totalorder %s12435_s20, %s10975_s16  ;;  %p10982_p10 = scmp.lt.u32.totalorder %s10975_s16, %s12435_s20 }
  0x86   : > { %p10978_p8 = pnand %p10976_p6, %p10949_p7 }
  0x88   : > { %p10979_p9 = pneg %p10978_p8 }
  0x8a   : > { %p10984_p11 = pnand %p10982_p10, %p10979_p9 }
  0x8c   : > { %10987 = shalt.err (!%p10984_p11)
}
  0x8d   : > { %s10988_s18 = scalar_lea.vmem %s11326_s2, 16  ;;  %s10995_s26 = scalar_lea.vmem %s11326_s2, 32 }
  0x8e   : > { %p10989_p2 = scmp.ne.s32.totalorder %s11326_s2, %s10988_s18  ;;  %p10996_p13 = scmp.lt.s32.totalorder %s11326_s2, %s11326_s2 }
  0x8f   : > { %p10997_p0 = scmp.lt.s32.totalorder %s10995_s26, %s10988_s18 }
  0x90   : > { %p10991_p3 = pnand %p10989_p2, %p10949_p7 }
  0x91   : > { %p10998_p1 = por %p10997_p0, %p10996_p13 }
  0x92   : > { %p10992_p12 = pneg %p10991_p3 }
  0x94   : > { %p10999_p4 = pnand %p10998_p1, %p10992_p12 }
  0x96   : > { %11002 = shalt.err (!%p10999_p4)
}
  0x97   : > { %10749 = dma.hbm_to_vmem [thread:$0]  (!%p11322_p5), %s12435_s20, 16, %s11326_s2, [#allocation5]  }
  0x98   : > { %p12445_p6 = scmp.ne.s32.totalorder %s12443_s0, 0 }
  0x9a   : > { %1219 = sbr.rel (%p12445_p6) target bundleno = 22174 (0x569e), region = 192 }
  0xa1   : > { %p12446_p8 = scmp.eq.s32.totalorder %s11309_s23, 0 }
  0xa3   : > { %11008 = dma.done.wait (%p12446_p8), [#allocation3], 16   ;;  %p12447_p7 = pmov %p12446_p8 }
  0xa5   : > { %11010 = vsyncadd (%p12447_p7), [#allocation3], 4294967280  ;;  %p12448_p9 = pmov %p12447_p7 }
  0xa6   : > { %p12449_p10 = pmov %p12447_p7 }
  0xa7   : > { %11012 = dma.done.wait (%p12448_p9), [#allocation5], 16  }
  0xa8   : > { %11014 = vsyncadd (%p12449_p10), [#allocation5], 4294967280  ;;  %v11064_v0 = vmov 0.0|0.0   ;;  %vm11065_vm0 = vmmov 0   ;;  %v11066_v1 = vmov 0.0   ;;  %v1350_v2 = vld [vmem:[%s12440_s4] sm:$0xff] }
  0xa9   : > { %10549 = vmatprep.subr.bf16.mxu0 %v11064_v0  ;;  %9903 = vmatprep.mubr.msk.f32.mxu0 %vm11065_vm0, %v11066_v1  ;;  %v1351_v3 = vld [vmem:[%s12440_s4 + $0x8] sm:$0xff]  ;;  %v1352_v4 = vld [vmem:[%s12440_s4 + $0x10] sm:$0xff]  ;;  %v1353_v6 = vld [vmem:[%s12440_s4 + $0x18] sm:$0xff]  ;;  %p1332_p5 = scmp.lt.s32.totalorder %s11309_s23, 1  ;;  %s12450_s13 = sld [smem:[#allocation10_spill]]  ;;  %vm1365_vm1 = vcmask 523264  }
  0xaa   : > { %9917 = vmatprep.subr.mxu1 %v11066_v1  ;;  %9919 = vmatprep.mubr.msk.f32.mxu1 %vm11065_vm0, %v11066_v1  ;;  %v10550_v5 = vpack.c.bf16 %v1351_v3, %v1350_v2  ;;  %v10553_v7 = vpack.c.bf16 %v1353_v6, %v1352_v4  ;;  %v1354_v8 = vld [vmem:[%s12440_s4 + $0x20] sm:$0xff]  ;;  %v1355_v9 = vld [vmem:[%s12440_s4 + $0x28] sm:$0xff]  ;;  %v1356_v11 = vld [vmem:[%s12440_s4 + $0x30] sm:$0xff]  ;;  %s12452_s5 = sld [smem:[#allocation8_spill]]  ;;  %vm1450_vm2 = vcmask 261120   ;;  %s12366_s7 = smov 120  }
  0xab   : > { %s12500_s23 = smov (!%p1332_p5, %s11309_s23), 1  ;;  %v10556_v10 = vpack.c.bf16 %v1355_v9, %v1354_v8  ;;  %v1357_v12 = vld [vmem:[%s12440_s4 + $0x38] sm:$0xff]  ;;  %v1439_v14 = vld [vmem:[%s12437_s14] sm:$0xff]  ;;  %v1440_v15 = vld [vmem:[%s12437_s14 + $0x8] sm:$0xff]  ;;  %s12362_s10 = smov 96   ;;  %vm1532_vm3 = vcmask 64512  }
  0xac   : > { %10551 = vmatpush3.bf16.msra.mxu0 %v10550_v5  ;;  %12451 = sst [smem:[#allocation53_spill]] %s12500_s23  ;;  %s12345_s0 = sshll.u32 %s12500_s23, 3  ;;  %v10559_v13 = vpack.c.bf16 %v1357_v12, %v1356_v11  ;;  %v10562_v17 = vpack.c.bf16 %v1440_v15, %v1439_v14  ;;  %v1441_v18 = vld [vmem:[%s12437_s14 + $0x10] sm:$0xff]  ;;  %v1442_v19 = vld [vmem:[%s12437_s14 + $0x18] sm:$0xff]  ;;  %v9329_v24 = vld [vmem:[%s12434_s21] ss:$0 sm:$0xff] }
  0xad   : > { %10552 = vmatprep.subr.bf16.mxu0 %v11064_v0  ;;  %s9324_s1 = sshll.u32 %s12500_s23, 2  ;;  %v10565_v20 = vpack.c.bf16 %v1442_v19, %v1441_v18  ;;  %s12453_s9 = sld [smem:[#allocation9_spill]]  ;;  %vm1615_vm4 = vcmask 27648   ;;  %v1525_v52 = vld [vmem:[%s12439_s8 + $0x8] sm:$0xff]  ;;  %vm1633_vm5 = vcmask 1043456   ;;  %vm1629_vm6 = vcmask 31744  }
  0xae   : > { %s12360_s11 = smov 88   ;;  %s12358_s16 = smov 56   ;;  %v1524_v61 = vld [vmem:[%s12439_s8] sm:$0xff]  ;;  %vm2514_vm7 = vcmask 257024   ;;  %vm4258_vm8 = vcmask 36864   ;;  %vm4276_vm9 = vcmask 1044480  }
  0xaf   : > { %s1342_s28 = scalar_lea.vmem %s12450_s13, %s12345_s0  ;;  %s12365_s18 = smov 64   ;;  %vm4272_vm10 = vcmask 39936   ;;  %vm5154_vm11 = vcmask 258048   ;;  %vm5433_vm12 = vcmask 28672  }
  0xb0   : > { %10554 = vmatpush3.bf16.msra.mxu0 %v10553_v7  ;;  %v1349_v16 = vld [vmem:[%s1342_s28] sm:$0x1f]  ;;  %s1335_s2 = scalar_lea.vmem %s12452_s5, %s9324_s1  ;;  %s12352_s26 = smov 80  }
  0xb1   : > { %10555 = vmatprep.subr.bf16.mxu0 %v11064_v0  ;;  %v11405_v21 = vld [vmem:[%s1335_s2] sm:$0xf]  ;;  %s12354_s28 = smov 112   ;;  %s12346_s1 = smov 72  }
  0xb2   : > { %s12350_s2 = smov 104   ;;  %s12356_s0 = smov 48  }
  0xb3   : > { %s11436_s15 = scalar_lea.vmem %s12453_s9, %s12500_s23  ;;  %s12465_s4 = smov 80  }
  0xb4   : > { %10557 = vmatpush3.bf16.msra.mxu0 %v10556_v10  ;;  %v11439_v31 = vld [vmem:[%s11436_s15] ss:$0 sm:$0xff]  ;;  %s12466_s5 = smov 48   ;;  %s12468_s9 = sld [smem:[#allocation12_spill]] }
  0xb5   : > { %10558 = vmatprep.subr.bf16.mxu0 %v11064_v0  ;;  %s12472_s13 = sld [smem:[#allocation22_spill]]  ;;  %s12476_s19 = smov 120  }
  0xb6   : > { %s12477_s20 = smov 96   ;;  %s12484_s22 = sld [smem:[#allocation17_spill]] }
  0xb7   : > { %s12486_s23 = sld [smem:[#allocation18_spill]] }
  0xb8   : > { %10560 = vmatpush3.bf16.msra.mxu0 %v10559_v13 }
  0xb9   : > { %10561 = vmatprep.subr.bf16.mxu0 %v11064_v0 }
  0xbb   : > { %9904 = vmatmul.mubr.msk.f32.vlgmr.msra.gmra.mrb[0].mxu0 %vm1365_vm1, %v1349_v16 }
  0xbc   : > { %10563 = vmatpush3.bf16.msra.mxu0 %v10562_v17  ;;  %9914 = vmatprep.mubr.msk.f32.mxu0 %vm11065_vm0, %v11066_v1  ;;  %s12485_s6 = smov %s12484_s22 }
  0xbd   : > { %10564 = vmatprep.subr.bf16.mxu0 %v11064_v0 }
  0xc0   : > { %10566 = vmatpush3.bf16.msra.mxu0 %v10565_v20 }
  0xc1   : > { %9927 = vmatprep.subr.mxu0 %v11066_v1 }
  0xc3   : > { %9915 = vmatmul.mubr.msk.f32.vlgmr.msra.gmra.mrb[2].mxu0 %vm1450_vm2, %v11405_v21 }
  0xc4   : > { %9929 = vmatprep.mubr.msk.f32.mxu0 %vm11065_vm0, %v11066_v1 }
 0x18e   : > { %v11412_v22 = vpop.f32.mrb[0].mxu0 }
 0x18f   : > { %v9905_v23 = vpop.f32.mrb[1].mxu0 }
 0x196   : > { %v1520_v25 = vpop.f32.mrb[2].mxu0 }
 0x197   : > { %v11415_v26 = vadd.f32 %v9329_v24, %v1520_v25  ;;  %v9916_v27 = vpop.f32.mrb[3].mxu0 }
 0x199   : > { %1706 = vrot.lane.b32.xlu1 %v11415_v26, %s12366_s7  ;;  %1530 = vrot.lane.b32.xlu0 %v11415_v26, %s12362_s10 }
 0x19d   : > { %1708 = vrot.lane.b32.xlu0 %v11415_v26, %s12360_s11 }
 0x20b   : > { %v1531_v28 = vpop.permute.xlu0 %1530  ;;  %v1707_v30 = vpop.permute.xlu1 %1706 }
 0x20c   : > { %9918 = vmatpush3.xpose.msk.msra.mxu1 %vm1532_vm3, %v1531_v28 }
 0x20d   : > { %9922 = vmatprep.subr.mxu1 %v11066_v1 }
 0x20f   : > { %9920 = vmatmul.mubr.msk.f32.vlgmr.msra.gmra.mrb[0].mxu1 %vm1532_vm3, %v11415_v26  ;;  %v1709_v29 = vpop.permute.xlu0 %1708 }
 0x210   : > { %9928 = vmatpush3.xpose.msk.msra.mxu0 %vm1532_vm3, %v1709_v29  ;;  %9924 = vmatprep.mubr.msk.f32.mxu1 %vm11065_vm0, %v11066_v1 }
 0x211   : > { %9937 = vmatprep.subr.mxu0 %v11066_v1 }
 0x213   : > { %9930 = vmatmul.mubr.msk.f32.vlgmr.msra.gmra.mrb[4].mxu0 %vm1532_vm3, %v1707_v30  ;;  %v1526_v30 = vld [vmem:[%s12439_s8 + $0x10] sm:$0xff] }
 0x214   : > { %9939 = vmatprep.mubr.msk.f32.mxu0 %vm11065_vm0, %v11066_v1  ;;  %9938 = vmatpush3.msra.mxu0 %v1525_v52 }
 0x215   : > { %9947 = vmatprep.subr.mxu0 %v11066_v1 }
 0x2e2   : > { %v1603_v32 = vpop.f32.mrb[0].mxu1 }
 0x2e3   : > { %v1607_v33 = vmul.f32 0.35355338, %v1603_v32  ;;  %v9921_v34 = vpop.f32.mrb[1].mxu1 }
 0x2e5   : > { %v1614_v35 = vadd.f32 %v11439_v31, %v1607_v33 }
 0x2e6   : > { %v1780_v36 = vpop.f32.mrb[4].mxu0 }
 0x2e7   : > { %v1784_v37 = vmul.f32 0.35355338, %v1780_v36  ;;  %v9931_v38 = vpop.f32.mrb[5].mxu0  ;;  %v1616_v39 = vsel %vm1615_vm4, %v1614_v35, -inf }
 0x2e8   : > { %1617 = vmax.xlane.f32.xlu1 %v1616_v39 }
 0x2e9   : > { %v1785_v40 = vadd.f32 %v11439_v31, %v1784_v37 }
 0x2eb   : > { %v1786_v41 = vsel %vm1615_vm4, %v1785_v40, -inf }
 0x2ec   : > { %1787 = vmax.xlane.f32.xlu0 %v1786_v41 }
 0x375   : > { %v1618_v42 = vpop.xlane.xlu1 %1617 }
 0x376   : > { %v1619_v43 = vsub.f32 %v1614_v35, %v1618_v42 }
 0x378   : > { %v1620_v44 = vmul.f32 1.442695, %v1619_v43 }
 0x379   : > { %v1788_v45 = vpop.xlane.xlu0 %1787 }
 0x37a   : > { %10821 = vpow2.f32 %v1620_v44  ;;  %v1789_v46 = vsub.f32 %v1785_v40, %v1788_v45  ;;  %v1527_v45 = vld [vmem:[%s12439_s8 + $0x18] sm:$0xff] }
 0x37c   : > { %v1790_v47 = vmul.f32 1.442695, %v1789_v46 }
 0x37e   : > { %10823 = vpow2.f32 %v1790_v47 }
 0x384   : > { %v10822_v48 = vpop.eup %10821 }
 0x385   : > { %v1622_v49 = vsel %vm1615_vm4, %v10822_v48, 0.0 }
 0x386   : > { %1623 = vadd.xlane.f32.xlu0 %v1622_v49 }
 0x388   : > { %v10824_v50 = vpop.eup %10823 }
 0x389   : > { %v1792_v51 = vsel %vm1615_vm4, %v10824_v50, 0.0 }
 0x38a   : > { %1793 = vadd.xlane.f32.xlu1 %v1792_v51 }
 0x39b   : > { %1797 = vrot.lane.b32.xlu1 %v11415_v26, %s12358_s16 }
 0x39c   : > { %1627 = vrot.lane.b32.xlu0 %v11415_v26, %s12365_s18 }
 0x39f   : > { %2022 = vrot.lane.b32.xlu1 %v11415_v26, %s12352_s26 }
 0x3a0   : > { %2020 = vrot.lane.b32.xlu0 %v11415_v26, %s12354_s28 }
 0x413   : > { %v1624_v53 = vpop.xlane.xlu0 %1623 }
 0x414   : > { %10825 = vrcp.f32 %v1624_v53  ;;  %v9352_v53 = vld [vmem:[%s12438_s12] ss:$0 sm:$0xff] }
 0x417   : > { %v1794_v54 = vpop.xlane.xlu1 %1793  ;;  %v1628_v55 = vpop.permute.xlu0 %1627 }
 0x418   : > { %10827 = vrcp.f32 %v1794_v54  ;;  %9923 = vmatpush3.msk.msra.mxu1 %vm1633_vm5, %v1628_v55 }
 0x419   : > { %9932 = vmatprep.subr.mxu1 %v11066_v1 }
 0x41b   : > { %v1798_v58 = vpop.permute.xlu1 %1797  ;;  %v2021_v5 = vpop.permute.xlu0 %2020 }
 0x41e   : > { %v10826_v56 = vpop.eup %10825 }
 0x41f   : > { %v1626_v57 = vmul.f32 %v10826_v56, %v10822_v48  ;;  %v2023_v3 = vpop.permute.xlu1 %2022 }
 0x421   : > { %9925 = vmatmul.mubr.msk.f32.vlgmr.msra.gmra.mrb[2].mxu1 %vm1629_vm6, %v1626_v57 }
 0x422   : > { %v10828_v59 = vpop.eup %10827  ;;  %9933 = vmatpush3.msk.msra.mxu1 %vm1633_vm5, %v1798_v58  ;;  %9934 = vmatprep.mubr.msk.f32.mxu1 %vm11065_vm0, %v11066_v1 }
 0x423   : > { %v1796_v60 = vmul.f32 %v10828_v59, %v10824_v50  ;;  %9942 = vmatprep.subr.mxu1 %v11066_v1 }
 0x425   : > { %9935 = vmatmul.mubr.msk.f32.vlgmr.msra.gmra.mrb[4].mxu1 %vm1629_vm6, %v1796_v60 }
 0x426   : > { %9944 = vmatprep.mubr.msk.f32.mxu1 %vm11065_vm0, %v11066_v1  ;;  %9943 = vmatpush3.msra.mxu1 %v1524_v61 }
 0x427   : > { %9952 = vmatprep.subr.mxu1 %v11066_v1 }
 0x4f4   : > { %v1702_v62 = vpop.f32.mrb[2].mxu1 }
 0x4f5   : > { %v9926_v63 = vpop.f32.mrb[3].mxu1  ;;  %9945 = vmatmul.mubr.msk.f32.vlgmr.msra.gmra.mrb[6].mxu1 %vm1532_vm3, %v1702_v62 }
 0x4f6   : > { %9954 = vmatprep.mubr.msk.f32.mxu1 %vm11065_vm0, %v11066_v1 }
 0x4f8   : > { %v1870_v2 = vpop.f32.mrb[4].mxu1 }
 0x4f9   : > { %v9936_v4 = vpop.f32.mrb[5].mxu1  ;;  %9940 = vmatmul.mubr.msk.f32.vlgmr.msra.gmra.mrb[6].mxu0 %vm1532_vm3, %v1870_v2 }
 0x4fa   : > { %9948 = vmatpush3.xpose.msk.msra.mxu0 %vm1532_vm3, %v2023_v3  ;;  %9949 = vmatprep.mubr.msk.f32.mxu0 %vm11065_vm0, %v11066_v1  ;;  %v2543_v3 = vld [vmem:[%s12431_s27] sm:$0xff]  ;;  %v2544_v4 = vld [vmem:[%s12431_s27 + $0x8] sm:$0xff] }
 0x4fb   : > { %9957 = vmatprep.subr.mxu0 %v11066_v1 }
 0x4fd   : > { %9950 = vmatmul.mubr.msk.f32.vlgmr.msra.gmra.mrb[8].mxu0 %vm1532_vm3, %v2021_v5  ;;  %v10568_v5 = vpack.c.bf16 %v2544_v4, %v2543_v3 }
 0x4fe   : > { %9959 = vmatprep.mubr.msk.f32.mxu0 %vm11065_vm0, %v11066_v1  ;;  %9958 = vmatpush3.msra.mxu0 %v1526_v30  ;;  %v2641_v30 = vld [vmem:[%s12429_s30 + $0x68] sm:$0xff] }
 0x4ff   : > { %9967 = vmatprep.subr.mxu0 %v11066_v1 }
 0x5c8   : > { %v2016_v6 = vpop.f32.mrb[6].mxu1 }
 0x5c9   : > { %v9946_v7 = vpop.f32.mrb[7].mxu1 }
 0x5cc   : > { %v1943_v8 = vpop.f32.mrb[6].mxu0 }
 0x5cd   : > { %v11480_v9 = vadd.f32 %v2016_v6, %v1943_v8  ;;  %v9941_v10 = vpop.f32.mrb[7].mxu0  ;;  %v2546_v6 = vld [vmem:[%s12431_s27 + $0x18] sm:$0xff]  ;;  %v2628_v8 = vld [vmem:[%s12429_s30] sm:$0xff] }
 0x5ce   : > { %v2630_v10 = vld [vmem:[%s12429_s30 + $0x10] sm:$0xff] }
 0x5d0   : > { %v2094_v11 = vpop.f32.mrb[8].mxu0 }
 0x5d1   : > { %v2098_v12 = vmul.f32 0.35355338, %v2094_v11  ;;  %v9951_v13 = vpop.f32.mrb[9].mxu0 }
 0x5d3   : > { %v2099_v14 = vadd.f32 %v11439_v31, %v2098_v12  ;;  %v2631_v12 = vld [vmem:[%s12429_s30 + $0x18] sm:$0xff] }
 0x5d4   : > { %v10577_v13 = vpack.c.bf16 %v2631_v12, %v2630_v10  ;;  %v9365_v12 = vld [vmem:[%s12434_s21 + $0x1] ss:$0 sm:$0xff]  ;;  %s12478_s21 = sld [smem:[#allocation14_spill]] }
 0x5d5   : > { %v2100_v15 = vsel %vm1615_vm4, %v2099_v14, -inf }
 0x5d6   : > { %2101 = vmax.xlane.f32.xlu1 %v2100_v15  ;;  %v2633_v15 = vld [vmem:[%s12429_s30 + $0x28] sm:$0xff] }
 0x5e7   : > { %2264 = vrot.lane.b32.xlu1 %v11415_v26, %s12346_s1  ;;  %s12348_s1 = smov 40  }
 0x5eb   : > { %2262 = vrot.lane.b32.xlu1 %v11415_v26, %s12350_s2  ;;  %s12455_s2 = sld [smem:[#allocation39_spill]] }
 0x663   : > { %v2102_v16 = vpop.xlane.xlu1 %2101 }
 0x664   : > { %v2103_v17 = vsub.f32 %v2099_v14, %v2102_v16  ;;  %v2632_v14 = vld [vmem:[%s12429_s30 + $0x20] sm:$0xff] }
 0x665   : > { %v10580_v16 = vpack.c.bf16 %v2633_v15, %v2632_v14 }
 0x666   : > { %v2104_v18 = vmul.f32 1.442695, %v2103_v17  ;;  %v2634_v17 = vld [vmem:[%s12429_s30 + $0x30] sm:$0xff] }
 0x667   : > { %v2265_v27 = vpop.permute.xlu1 %2264 }
 0x668   : > { %10829 = vpow2.f32 %v2104_v18  ;;  %v2635_v18 = vld [vmem:[%s12429_s30 + $0x38] sm:$0xff] }
 0x66b   : > { %v2263_v29 = vpop.permute.xlu1 %2262 }
 0x672   : > { %v10830_v19 = vpop.eup %10829 }
 0x673   : > { %v2106_v20 = vsel %vm1615_vm4, %v10830_v19, 0.0 }
 0x674   : > { %2107 = vadd.xlane.f32.xlu0 %v2106_v20  ;;  %v2636_v20 = vld [vmem:[%s12429_s30 + $0x40] sm:$0xff] }
 0x68a   : > { %2111 = vrot.lane.b32.xlu0 %v11415_v26, %s12356_s0 }
 0x701   : > { %v2108_v23 = vpop.xlane.xlu0 %2107 }
 0x702   : > { %10831 = vrcp.f32 %v2108_v23  ;;  %v2637_v23 = vld [vmem:[%s12429_s30 + $0x48] sm:$0xff] }
 0x705   : > { %v2112_v24 = vpop.permute.xlu0 %2111 }
 0x706   : > { %9953 = vmatpush3.msk.msra.mxu1 %vm1633_vm5, %v2112_v24  ;;  %v10586_v24 = vpack.c.bf16 %v2637_v23, %v2636_v20 }
 0x707   : > { %9962 = vmatprep.subr.mxu1 %v11066_v1 }
 0x70c   : > { %v10832_v25 = vpop.eup %10831 }
 0x70d   : > { %v2110_v28 = vmul.f32 %v10832_v25, %v10830_v19  ;;  %v10583_v19 = vpack.c.bf16 %v2635_v18, %v2634_v17  ;;  %v2638_v25 = vld [vmem:[%s12429_s30 + $0x50] sm:$0xff] }
 0x70f   : > { %9955 = vmatmul.mubr.msk.f32.vlgmr.msra.gmra.mrb[8].mxu1 %vm1629_vm6, %v2110_v28 }
 0x710   : > { %9963 = vmatpush3.xpose.msk.msra.mxu1 %vm1532_vm3, %v2265_v27  ;;  %9964 = vmatprep.mubr.msk.f32.mxu1 %vm11065_vm0, %v11066_v1  ;;  %v2639_v27 = vld [vmem:[%s12429_s30 + $0x58] sm:$0xff] }
 0x711   : > { %9972 = vmatprep.subr.mxu1 %v11066_v1  ;;  %v10589_v28 = vpack.c.bf16 %v2639_v27, %v2638_v25 }
 0x713   : > { %9965 = vmatmul.mubr.msk.f32.vlgmr.msra.gmra.mrb[10].mxu1 %vm1532_vm3, %v2263_v29  ;;  %v2640_v29 = vld [vmem:[%s12429_s30 + $0x60] sm:$0xff] }
 0x714   : > { %9974 = vmatprep.mubr.msk.f32.mxu1 %vm11065_vm0, %v11066_v1  ;;  %9973 = vmatpush3.msra.mxu1 %v1527_v45  ;;  %v9355_v45 = vld [vmem:[%s12433_s24] ss:$0 sm:$0xff] }
 0x715   : > { %10573 = vmatprep.subr.bf16.mxu1 %v11064_v0 }
 0x7e2   : > { %v2184_v32 = vpop.f32.mrb[8].mxu1 }
 0x7e3   : > { %v9956_v33 = vpop.f32.mrb[9].mxu1  ;;  %9960 = vmatmul.mubr.msk.f32.vlgmr.msra.gmra.mrb[10].mxu0 %vm1532_vm3, %v2184_v32  ;;  %v10592_v32 = vpack.c.bf16 %v2641_v30, %v2640_v29 }
 0x7e4   : > { %9969 = vmatprep.mubr.msk.f32.mxu0 %vm11065_vm0, %v11066_v1 }
 0x7e6   : > { %v2336_v34 = vpop.f32.mrb[10].mxu1 }
 0x7e7   : > { %v2340_v35 = vmul.f32 0.35355338, %v2336_v34  ;;  %v9966_v36 = vpop.f32.mrb[11].mxu1 }
 0x7e9   : > { %v2341_v37 = vadd.f32 %v11439_v31, %v2340_v35 }
 0x7eb   : > { %v2342_v38 = vsel %vm1615_vm4, %v2341_v37, -inf }
 0x7ec   : > { %2343 = vmax.xlane.f32.xlu0 %v2342_v38 }
 0x802   : > { %2353 = vrot.lane.b32.xlu0 %v11415_v26, %s12348_s1  ;;  %s12454_s1 = sld [smem:[#allocation40_spill]] }
 0x879   : > { %v2344_v39 = vpop.xlane.xlu0 %2343 }
 0x87a   : > { %v2345_v40 = vsub.f32 %v2341_v37, %v2344_v39  ;;  %v9353_v37 = vld [vmem:[%s12441_s3] ss:$0 sm:$0xff] }
 0x87b   : > { %v9354_v39 = vld [vmem:[%s12430_s29] ss:$0 sm:$0xff] }
 0x87c   : > { %v2346_v41 = vmul.f32 1.442695, %v2345_v40 }
 0x87d   : > { %v2354_v42 = vpop.permute.xlu0 %2353 }
 0x87e   : > { %10833 = vpow2.f32 %v2346_v41  ;;  %9968 = vmatpush3.msk.msra.mxu0 %vm1633_vm5, %v2354_v42  ;;  %v2642_v42 = vld [vmem:[%s12429_s30 + $0x70] sm:$0xff] }
 0x87f   : > { %10567 = vmatprep.subr.bf16.mxu0 %v11064_v0 }
 0x888   : > { %v10834_v43 = vpop.eup %10833 }
 0x889   : > { %v2348_v44 = vsel %vm1615_vm4, %v10834_v43, 0.0 }
 0x88a   : > { %2349 = vadd.xlane.f32.xlu1 %v2348_v44 }
 0x8b6   : > { %v2257_v46 = vpop.f32.mrb[10].mxu0 }
 0x8b7   : > { %v2261_v26 = vadd.f32 %v2257_v46, %v11480_v9  ;;  %v9961_v47 = vpop.f32.mrb[11].mxu0  ;;  %v2629_v9 = vld [vmem:[%s12429_s30 + $0x8] sm:$0xff] }
 0x8b8   : > { %v10574_v11 = vpack.c.bf16 %v2629_v9, %v2628_v8  ;;  %v9359_v9 = vld [vmem:[%s12455_s2] ss:$0 sm:$0xff] }
 0x917   : > { %v2350_v48 = vpop.xlane.xlu1 %2349 }
 0x918   : > { %10835 = vrcp.f32 %v2350_v48 }
 0x922   : > { %v10836_v49 = vpop.eup %10835 }
 0x923   : > { %v2352_v50 = vmul.f32 %v10836_v49, %v10834_v43  ;;  %v2643_v43 = vld [vmem:[%s12429_s30 + $0x78] sm:$0xff]  ;;  %v9357_v49 = vld [vmem:[%s12432_s25] ss:$0 sm:$0xff] }
 0x924   : > { %v10595_v44 = vpack.c.bf16 %v2643_v43, %v2642_v42 }
 0x925   : > { %9970 = vmatmul.mubr.msk.f32.vlgmr.msra.gmra.mrb[12].mxu0 %vm1629_vm6, %v2352_v50 }
 0x926   : > { %9985 = vmatprep.mubr.msk.f32.mxu0 %vm11065_vm0, %v11066_v1  ;;  %10569 = vmatpush3.bf16.msra.mxu0 %v10568_v5 }
 0x927   : > { %10570 = vmatprep.subr.bf16.mxu0 %v11064_v0 }
 0x9f8   : > { %v2426_v51 = vpop.f32.mrb[12].mxu0 }
 0x9f9   : > { %v9971_v52 = vpop.f32.mrb[13].mxu0  ;;  %9975 = vmatmul.mubr.msk.f32.vlgmr.msra.gmra.mrb[12].mxu1 %vm1532_vm3, %v2426_v51 }
 0x9fa   : > { %10020 = vmatprep.mubr.msk.f32.mxu1 %vm11065_vm0, %v11066_v1  ;;  %10575 = vmatpush3.bf16.msra.mxu1 %v10574_v11 }
 0x9fb   : > { %10576 = vmatprep.subr.bf16.mxu1 %v11064_v0 }
 0x9fe   : > { %10578 = vmatpush3.bf16.msra.mxu1 %v10577_v13 }
 0x9ff   : > { %10579 = vmatprep.subr.bf16.mxu1 %v11064_v0 }
 0xa02   : > { %10581 = vmatpush3.bf16.msra.mxu1 %v10580_v16 }
 0xa03   : > { %10582 = vmatprep.subr.bf16.mxu1 %v11064_v0 }
 0xa06   : > { %10584 = vmatpush3.bf16.msra.mxu1 %v10583_v19 }
 0xa07   : > { %10585 = vmatprep.subr.bf16.mxu1 %v11064_v0 }
 0xa0a   : > { %10587 = vmatpush3.bf16.msra.mxu1 %v10586_v24 }
 0xa0b   : > { %10588 = vmatprep.subr.bf16.mxu1 %v11064_v0 }
 0xa0e   : > { %10590 = vmatpush3.bf16.msra.mxu1 %v10589_v28 }
 0xa0f   : > { %10591 = vmatprep.subr.bf16.mxu1 %v11064_v0 }
 0xa12   : > { %10593 = vmatpush3.bf16.msra.mxu1 %v10592_v32 }
 0xa13   : > { %10594 = vmatprep.subr.bf16.mxu1 %v11064_v0 }
 0xa16   : > { %10596 = vmatpush3.bf16.msra.mxu1 %v10595_v44 }
 0xa17   : > { %10059 = vmatprep.subr.mxu1 %v11066_v1 }
 0xacc   : > { %v2499_v54 = vpop.f32.mrb[12].mxu1 }
 0xacd   : > { %v2503_v55 = vadd.f32 %v2499_v54, %v2261_v26  ;;  %v9976_v56 = vpop.f32.mrb[13].mxu1 }
 0xacf   : > { %v2510_v57 = vadd.f32 %v9352_v53, %v2503_v55 }
 0xad1   : > { %v2511_v58 = vadd.f32 %v2510_v57, %v11405_v21  ;;  %v2545_v21 = vld [vmem:[%s12431_s27 + $0x10] sm:$0xff] }
 0xad2   : > { %v10571_v7 = vpack.c.bf16 %v2546_v6, %v2545_v21 }
 0xad3   : > { %v2515_v59 = vsel %vm2514_vm7, %v2511_v58, 0.0 }
 0xad4   : > { %2516 = vadd.xlane.f32.xlu1 %v2515_v59  ;;  %10572 = vmatpush3.bf16.msra.mxu0 %v10571_v7  ;;  %v9358_v7 = vld [vmem:[%s12454_s1] ss:$0 sm:$0xff] }
 0xad5   : > { %10597 = vmatprep.subr.bf16.mxu0 %v11064_v0 }
 0xb61   : > { %v2517_v60 = vpop.xlane.xlu1 %2516 }
 0xb62   : > { %v2519_v61 = vmul.f32 0.03125, %v2517_v60  ;;  %v9360_v60 = vld [vmem:[%s12437_s14 + $0x20] sm:$0xff] }
 0xb64   : > { %v2520_v62 = vsub.f32 %v2511_v58, %v2519_v61  ;;  %v9361_v61 = vld [vmem:[%s12437_s14 + $0x28] sm:$0xff] }
 0xb66   : > { %v2521_v63 = vmul.f32 %v2520_v62, %v2520_v62 }
 0xb68   : > { %v2522_v2 = vsel %vm2514_vm7, %v2521_v63, 0.0  ;;  %v9362_v63 = vld [vmem:[%s12437_s14 + $0x30] sm:$0xff] }
 0xb69   : > { %2523 = vadd.xlane.f32.xlu1 %v2522_v2  ;;  %v9363_v2 = vld [vmem:[%s12437_s14 + $0x38] sm:$0xff]  ;;  %s12473_s14 = sld [smem:[#allocation21_spill]] }
 0xb6a   : > { %v10601_v3 = vpack.c.bf16 %v9363_v2, %v9362_v63 }
 0xbf6   : > { %v2524_v33 = vpop.xlane.xlu1 %2523 }
 0xbf7   : > { %v2525_v34 = vmul.f32 0.03125, %v2524_v33 }
 0xbf9   : > { %v2526_v35 = vadd.f32 1e-05, %v2525_v34 }
 0xbfb   : > { %10837 = vrsqrt.f32 %v2526_v35 }
 0xc05   : > { %v10838_v36 = vpop.eup %10837 }
 0xc06   : > { %v2528_v38 = vmul.f32 %v10838_v36, %v2520_v62  ;;  %v10598_v62 = vpack.c.bf16 %v9361_v61, %v9360_v60 }
 0xc08   : > { %v2535_v40 = vmul.f32 %v9353_v37, %v2528_v38  ;;  %v9367_v37 = vld [vmem:[%s12439_s8 + $0x20] sm:$0xff] }
 0xc0a   : > { %v2542_v41 = vadd.f32 %v9354_v39, %v2535_v40 }
 0xc0c   : > { %9986 = vmatmul.mubr.msk.f32.vlgmr.msra.gmra.mrb[14].mxu0 %vm1450_vm2, %v2542_v41 }
 0xc0d   : > { %10031 = vmatprep.mubr.msk.f32.mxu0 %vm11065_vm0, %v11066_v1  ;;  %10599 = vmatpush3.bf16.msra.mxu0 %v10598_v62 }
 0xc0e   : > { %10600 = vmatprep.subr.bf16.mxu0 %v11064_v0 }
 0xc11   : > { %10602 = vmatpush3.bf16.msra.mxu0 %v10601_v3 }
 0xc12   : > { %10034 = vmatprep.subr.mxu0 %v11066_v1 }
 0xcdf   : > { %v2623_v46 = vpop.f32.mrb[14].mxu0 }
 0xce0   : > { %v2624_v26 = vadd.f32 %v9355_v45, %v2623_v46  ;;  %v9987_v47 = vpop.f32.mrb[15].mxu0 }
 0xce2   : > { %v2627_v48 = vmax.f32 %v2624_v26, 0.0 }
 0xce4   : > { %10021 = vmatmul.mubr.f32.vlgmr.msra.gmra.mrb[14].mxu1 %v2627_v48 }
 0xce5   : > { %10061 = vmatprep.mubr.msk.f32.mxu1 %vm11065_vm0, %v11066_v1  ;;  %10060 = vmatpush3.msra.mxu1 %v9367_v37 }
 0xce6   : > { %10069 = vmatprep.subr.mxu1 %v11066_v1 }
 0xdb7   : > { %v2717_v50 = vpop.f32.mrb[14].mxu1 }
 0xdb8   : > { %v2718_v51 = vadd.f32 %v9357_v49, %v2717_v50  ;;  %v10022_v52 = vpop.f32.mrb[15].mxu1 }
 0xdba   : > { %v2721_v53 = vadd.f32 %v2718_v51, %v2542_v41 }
 0xdbc   : > { %v2724_v54 = vsel %vm2514_vm7, %v2721_v53, 0.0 }
 0xdbd   : > { %2725 = vadd.xlane.f32.xlu1 %v2724_v54 }
 0xe4a   : > { %v2726_v55 = vpop.xlane.xlu1 %2725 }
 0xe4b   : > { %v2727_v56 = vmul.f32 0.03125, %v2726_v55  ;;  %v9368_v55 = vld [vmem:[%s12439_s8 + $0x28] sm:$0xff] }
 0xe4d   : > { %v2728_v57 = vsub.f32 %v2721_v53, %v2727_v56 }
 0xe4f   : > { %v2729_v58 = vmul.f32 %v2728_v57, %v2728_v57 }
 0xe51   : > { %v2730_v59 = vsel %vm2514_vm7, %v2729_v58, 0.0 }
 0xe52   : > { %2731 = vadd.xlane.f32.xlu1 %v2730_v59 }
 0xedf   : > { %v2732_v4 = vpop.xlane.xlu1 %2731 }
 0xee0   : > { %v2733_v5 = vmul.f32 0.03125, %v2732_v4 }
 0xee2   : > { %v2734_v21 = vadd.f32 1e-05, %v2733_v5 }
 0xee4   : > { %10839 = vrsqrt.f32 %v2734_v21 }
 0xeee   : > { %v10840_v6 = vpop.eup %10839 }
 0xeef   : > { %v2736_v8 = vmul.f32 %v10840_v6, %v2728_v57 }
 0xef1   : > { %v2743_v10 = vmul.f32 %v9358_v7, %v2736_v8 }
 0xef3   : > { %v11575_v11 = vadd.f32 %v9359_v9, %v2743_v10 }
 0xef5   : > { %10032 = vmatmul.mubr.msk.f32.vlgmr.msra.gmra.mrb[16].mxu0 %vm1450_vm2, %v11575_v11 }
 0xef6   : > { %10036 = vmatprep.mubr.msk.f32.mxu0 %vm11065_vm0, %v11066_v1 }
 0xfc8   : > { %v2833_v13 = vpop.f32.mrb[16].mxu0 }
 0xfc9   : > { %v11582_v14 = vadd.f32 %v9365_v12, %v2833_v13  ;;  %v10033_v15 = vpop.f32.mrb[17].mxu0 }
 0xfcb   : > { %2845 = vrot.lane.b32.xlu1 %v11582_v14, %s12362_s10 }
0x103d   : > { %v2846_v16 = vpop.permute.xlu1 %2845 }
0x103e   : > { %10035 = vmatpush3.xpose.msk.msra.mxu0 %vm1532_vm3, %v2846_v16 }
0x103f   : > { %10039 = vmatprep.subr.mxu0 %v11066_v1 }
0x1041   : > { %10037 = vmatmul.mubr.msk.f32.vlgmr.msra.gmra.mrb[18].mxu0 %vm1532_vm3, %v11582_v14 }
0x1042   : > { %10041 = vmatprep.mubr.msk.f32.mxu0 %vm11065_vm0, %v11066_v1 }
0x1114   : > { %v2917_v17 = vpop.f32.mrb[18].mxu0 }
0x1115   : > { %v2921_v18 = vmul.f32 0.35355338, %v2917_v17  ;;  %v10038_v19 = vpop.f32.mrb[19].mxu0 }
0x1117   : > { %v2922_v20 = vadd.f32 %v11439_v31, %v2921_v18  ;;  %v9369_v18 = vld [vmem:[%s12439_s8 + $0x30] sm:$0xff] }
0x1119   : > { %v2923_v23 = vsel %vm1615_vm4, %v2922_v20, -inf }
0x111a   : > { %2924 = vmax.xlane.f32.xlu0 %v2923_v23 }
0x1130   : > { %2934 = vrot.lane.b32.xlu0 %v11582_v14, %s12365_s18 }
0x1134   : > { %3011 = vrot.lane.b32.xlu0 %v11582_v14, %s12366_s7 }
0x11a7   : > { %v2925_v24 = vpop.xlane.xlu0 %2924 }
0x11a8   : > { %v2926_v25 = vsub.f32 %v2922_v20, %v2925_v24 }
0x11aa   : > { %v2927_v27 = vmul.f32 1.442695, %v2926_v25 }
0x11ab   : > { %v2935_v28 = vpop.permute.xlu0 %2934 }
0x11ac   : > { %10841 = vpow2.f32 %v2927_v27  ;;  %10040 = vmatpush3.msk.msra.mxu0 %vm1633_vm5, %v2935_v28 }
0x11ad   : > { %10044 = vmatprep.subr.mxu0 %v11066_v1 }
0x11af   : > { %v3012_v36 = vpop.permute.xlu0 %3011 }
0x11b6   : > { %v10842_v29 = vpop.eup %10841 }
0x11b7   : > { %v2929_v30 = vsel %vm1615_vm4, %v10842_v29, 0.0 }
0x11b8   : > { %2930 = vadd.xlane.f32.xlu1 %v2929_v30 }
0x11c9   : > { %3013 = vrot.lane.b32.xlu1 %v11582_v14, %s12360_s11  ;;  %s12460_s11 = sld [smem:[#allocation29_spill]] }
0x1245   : > { %v2931_v32 = vpop.xlane.xlu1 %2930 }
0x1246   : > { %10843 = vrcp.f32 %v2931_v32 }
0x1249   : > { %v3014_v35 = vpop.permute.xlu1 %3013 }
0x1250   : > { %v10844_v33 = vpop.eup %10843 }
0x1251   : > { %v2933_v34 = vmul.f32 %v10844_v33, %v10842_v29 }
0x1253   : > { %10042 = vmatmul.mubr.msk.f32.vlgmr.msra.gmra.mrb[20].mxu0 %vm1629_vm6, %v2933_v34 }
0x1254   : > { %10045 = vmatpush3.xpose.msk.msra.mxu0 %vm1532_vm3, %v3014_v35  ;;  %10046 = vmatprep.mubr.msk.f32.mxu0 %vm11065_vm0, %v11066_v1 }
0x1255   : > { %10049 = vmatprep.subr.mxu0 %v11066_v1 }
0x1257   : > { %10047 = vmatmul.mubr.msk.f32.vlgmr.msra.gmra.mrb[22].mxu0 %vm1532_vm3, %v3012_v36 }
0x1258   : > { %10051 = vmatprep.mubr.msk.f32.mxu0 %vm11065_vm0, %v11066_v1 }
0x1326   : > { %v3007_v38 = vpop.f32.mrb[20].mxu0 }
0x1327   : > { %v10043_v39 = vpop.f32.mrb[21].mxu0  ;;  %10062 = vmatmul.mubr.msk.f32.vlgmr.msra.gmra.mrb[16].mxu1 %vm1532_vm3, %v3007_v38 }
0x1328   : > { %10071 = vmatprep.mubr.msk.f32.mxu1 %vm11065_vm0, %v11066_v1 }
0x132a   : > { %v3085_v40 = vpop.f32.mrb[22].mxu0 }
0x132b   : > { %v3089_v41 = vmul.f32 0.35355338, %v3085_v40  ;;  %v10048_v42 = vpop.f32.mrb[23].mxu0 }
0x132d   : > { %v3090_v43 = vadd.f32 %v11439_v31, %v3089_v41 }
0x132f   : > { %v3091_v44 = vsel %vm1615_vm4, %v3090_v43, -inf }
0x1330   : > { %3092 = vmax.xlane.f32.xlu0 %v3091_v44 }
0x1346   : > { %3102 = vrot.lane.b32.xlu0 %v11582_v14, %s12358_s16  ;;  %s12459_s16 = sld [smem:[#allocation30_spill]] }
0x134a   : > { %3325 = vrot.lane.b32.xlu0 %v11582_v14, %s12354_s28  ;;  %s12457_s28 = smov 72  }
0x13bd   : > { %v3093_v45 = vpop.xlane.xlu0 %3092 }
0x13be   : > { %v3094_v46 = vsub.f32 %v3090_v43, %v3093_v45  ;;  %v9392_v43 = vld [vmem:[%s12438_s12 + $0x1] ss:$0 sm:$0xff]  ;;  %s12471_s12 = sld [smem:[#allocation16_spill]] }
0x13c0   : > { %v3095_v26 = vmul.f32 1.442695, %v3094_v46 }
0x13c1   : > { %v3103_v47 = vpop.permute.xlu0 %3102 }
0x13c2   : > { %10845 = vpow2.f32 %v3095_v26  ;;  %10050 = vmatpush3.msk.msra.mxu0 %vm1633_vm5, %v3103_v47 }
0x13c3   : > { %10054 = vmatprep.subr.mxu0 %v11066_v1 }
0x13c5   : > { %v3326_v59 = vpop.permute.xlu0 %3325 }
0x13cc   : > { %v10846_v48 = vpop.eup %10845 }
0x13cd   : > { %v3097_v49 = vsel %vm1615_vm4, %v10846_v48, 0.0 }
0x13ce   : > { %3098 = vadd.xlane.f32.xlu1 %v3097_v49 }
0x13df   : > { %3327 = vrot.lane.b32.xlu1 %v11582_v14, %s12352_s26  ;;  %s12456_s26 = smov 104  }
0x13fa   : > { %v3321_v50 = vpop.f32.mrb[16].mxu1 }
0x13fb   : > { %v10063_v51 = vpop.f32.mrb[17].mxu1 }
0x145b   : > { %v3099_v52 = vpop.xlane.xlu1 %3098 }
0x145c   : > { %10847 = vrcp.f32 %v3099_v52 }
0x145f   : > { %v3328_v57 = vpop.permute.xlu1 %3327 }
0x1466   : > { %v10848_v53 = vpop.eup %10847 }
0x1467   : > { %v3101_v54 = vmul.f32 %v10848_v53, %v10846_v48 }
0x1469   : > { %10052 = vmatmul.mubr.msk.f32.vlgmr.msra.gmra.mrb[24].mxu0 %vm1629_vm6, %v3101_v54  ;;  %v9397_v54 = vld [vmem:[%s12431_s27 + $0x20] sm:$0xff] }
0x146a   : > { %10055 = vmatpush3.msra.mxu0 %v9368_v55  ;;  %10056 = vmatprep.mubr.msk.f32.mxu0 %vm11065_vm0, %v11066_v1  ;;  %v9398_v55 = vld [vmem:[%s12431_s27 + $0x28] sm:$0xff] }
0x146b   : > { %10064 = vmatprep.subr.mxu0 %v11066_v1 }
0x153c   : > { %v3175_v56 = vpop.f32.mrb[24].mxu0 }
0x153d   : > { %v10053_v58 = vpop.f32.mrb[25].mxu0  ;;  %10057 = vmatmul.mubr.msk.f32.vlgmr.msra.gmra.mrb[26].mxu0 %vm1532_vm3, %v3175_v56  ;;  %v10604_v56 = vpack.c.bf16 %v9398_v55, %v9397_v54 }
0x153e   : > { %10065 = vmatpush3.xpose.msk.msra.mxu0 %vm1532_vm3, %v3328_v57  ;;  %10066 = vmatprep.mubr.msk.f32.mxu0 %vm11065_vm0, %v11066_v1  ;;  %v9400_v57 = vld [vmem:[%s12431_s27 + $0x38] sm:$0xff] }
0x153f   : > { %10074 = vmatprep.subr.mxu0 %v11066_v1 }
0x1541   : > { %10067 = vmatmul.mubr.msk.f32.vlgmr.msra.gmra.mrb[28].mxu0 %vm1532_vm3, %v3326_v59  ;;  %v9404_v59 = vld [vmem:[%s12429_s30 + $0x80] sm:$0xff] }
0x1542   : > { %10076 = vmatprep.mubr.msk.f32.mxu0 %vm11065_vm0, %v11066_v1  ;;  %10075 = vmatpush3.msra.mxu0 %v9369_v18 }
0x1543   : > { %10084 = vmatprep.subr.mxu0 %v11066_v1 }
0x1610   : > { %v3248_v60 = vpop.f32.mrb[26].mxu0 }
0x1611   : > { %v3322_v61 = vadd.f32 %v3321_v50, %v3248_v60  ;;  %v10058_v62 = vpop.f32.mrb[27].mxu0  ;;  %v9405_v60 = vld [vmem:[%s12429_s30 + $0x88] sm:$0xff] }
0x1612   : > { %v10610_v62 = vpack.c.bf16 %v9405_v60, %v9404_v59 }
0x1614   : > { %v3399_v63 = vpop.f32.mrb[28].mxu0 }
0x1615   : > { %v3403_v2 = vmul.f32 0.35355338, %v3399_v63  ;;  %v10068_v3 = vpop.f32.mrb[29].mxu0  ;;  %v9407_v63 = vld [vmem:[%s12429_s30 + $0x98] sm:$0xff] }
0x1616   : > { %v9408_v3 = vld [vmem:[%s12429_s30 + $0xa0] sm:$0xff] }
0x1617   : > { %v3404_v4 = vadd.f32 %v11439_v31, %v3403_v2 }
0x1619   : > { %v3405_v5 = vsel %vm1615_vm4, %v3404_v4, -inf }
0x161a   : > { %3406 = vmax.xlane.f32.xlu0 %v3405_v5 }
0x1630   : > { %3416 = vrot.lane.b32.xlu0 %v11582_v14, %s12356_s0  ;;  %s12458_s0 = smov 40  }
0x1634   : > { %3567 = vrot.lane.b32.xlu0 %v11582_v14, %s12456_s26 }
0x16a7   : > { %v3407_v21 = vpop.xlane.xlu0 %3406 }
0x16a8   : > { %v3408_v6 = vsub.f32 %v3404_v4, %v3407_v21  ;;  %v9409_v4 = vld [vmem:[%s12429_s30 + $0xa8] sm:$0xff]  ;;  %v9410_v21 = vld [vmem:[%s12429_s30 + $0xb0] sm:$0xff] }
0x16a9   : > { %v10616_v5 = vpack.c.bf16 %v9409_v4, %v9408_v3 }
0x16aa   : > { %v3409_v7 = vmul.f32 1.442695, %v3408_v6  ;;  %v9411_v6 = vld [vmem:[%s12429_s30 + $0xb8] sm:$0xff] }
0x16ab   : > { %v3417_v8 = vpop.permute.xlu0 %3416 }
0x16ac   : > { %10849 = vpow2.f32 %v3409_v7  ;;  %10070 = vmatpush3.msk.msra.mxu1 %vm1633_vm5, %v3417_v8  ;;  %v10619_v7 = vpack.c.bf16 %v9411_v6, %v9410_v21  ;;  %v9412_v8 = vld [vmem:[%s12429_s30 + $0xc0] sm:$0xff] }
0x16ad   : > { %10079 = vmatprep.subr.mxu1 %v11066_v1 }
0x16af   : > { %v3568_v17 = vpop.permute.xlu0 %3567 }
0x16b6   : > { %v10850_v9 = vpop.eup %10849 }
0x16b7   : > { %v3411_v10 = vsel %vm1615_vm4, %v10850_v9, 0.0 }
0x16b8   : > { %3412 = vadd.xlane.f32.xlu1 %v3411_v10 }
0x16c9   : > { %3569 = vrot.lane.b32.xlu1 %v11582_v14, %s12457_s28 }
0x1745   : > { %v3413_v12 = vpop.xlane.xlu1 %3412 }
0x1746   : > { %10851 = vrcp.f32 %v3413_v12  ;;  %v9414_v12 = vld [vmem:[%s12429_s30 + $0xd0] sm:$0xff] }
0x1749   : > { %v3570_v16 = vpop.permute.xlu1 %3569 }
0x1750   : > { %v10852_v13 = vpop.eup %10851 }
0x1751   : > { %v3415_v15 = vmul.f32 %v10852_v13, %v10850_v9  ;;  %v9413_v9 = vld [vmem:[%s12429_s30 + $0xc8] sm:$0xff]  ;;  %v9415_v13 = vld [vmem:[%s12429_s30 + $0xd8] sm:$0xff] }
0x1752   : > { %v10622_v10 = vpack.c.bf16 %v9413_v9, %v9412_v8 }
0x1753   : > { %10072 = vmatmul.mubr.msk.f32.vlgmr.msra.gmra.mrb[18].mxu1 %vm1629_vm6, %v3415_v15  ;;  %v10625_v15 = vpack.c.bf16 %v9415_v13, %v9414_v12 }
0x1754   : > { %10080 = vmatpush3.xpose.msk.msra.mxu1 %vm1532_vm3, %v3570_v16  ;;  %10081 = vmatprep.mubr.msk.f32.mxu1 %vm11065_vm0, %v11066_v1  ;;  %v9416_v16 = vld [vmem:[%s12429_s30 + $0xe0] sm:$0xff] }
0x1755   : > { %10089 = vmatprep.subr.mxu1 %v11066_v1 }
0x1757   : > { %10082 = vmatmul.mubr.msk.f32.vlgmr.msra.gmra.mrb[20].mxu1 %vm1532_vm3, %v3568_v17  ;;  %v9417_v17 = vld [vmem:[%s12429_s30 + $0xe8] sm:$0xff] }
0x1758   : > { %10091 = vmatprep.mubr.msk.f32.mxu1 %vm11065_vm0, %v11066_v1  ;;  %v10628_v18 = vpack.c.bf16 %v9417_v17, %v9416_v16 }
0x1826   : > { %v3489_v19 = vpop.f32.mrb[18].mxu1 }
0x1827   : > { %v10073_v20 = vpop.f32.mrb[19].mxu1  ;;  %10077 = vmatmul.mubr.msk.f32.vlgmr.msra.gmra.mrb[30].mxu0 %vm1532_vm3, %v3489_v19 }
0x1828   : > { %10086 = vmatprep.mubr.msk.f32.mxu0 %vm11065_vm0, %v11066_v1 }
0x182a   : > { %v3641_v23 = vpop.f32.mrb[20].mxu1 }
0x182b   : > { %v3645_v24 = vmul.f32 0.35355338, %v3641_v23  ;;  %v10083_v25 = vpop.f32.mrb[21].mxu1 }
0x182c   : > { %v9395_v25 = vld [vmem:[%s12441_s3 + $0x1] ss:$0 sm:$0xff]  ;;  %s12462_s3 = smov 88  }
0x182d   : > { %v3646_v27 = vadd.f32 %v11439_v31, %v3645_v24  ;;  %v9370_v31 = vld [vmem:[%s12439_s8 + $0x38] sm:$0xff]  ;;  %s12467_s8 = sld [smem:[#allocation27_spill]] }
0x182e   : > { %10090 = vmatpush3.msra.mxu1 %v9370_v31  ;;  %v4094_v31 = vld [vmem:[%s12459_s16 + $0x18] sm:$0xff] }
0x182f   : > { %v3647_v28 = vsel %vm1615_vm4, %v3646_v27, -inf  ;;  %10609 = vmatprep.subr.bf16.mxu1 %v11064_v0 }
0x1830   : > { %3648 = vmax.xlane.f32.xlu0 %v3647_v28  ;;  %v4091_v28 = vld [vmem:[%s12459_s16] sm:$0xff] }
0x1846   : > { %3658 = vrot.lane.b32.xlu0 %v11582_v14, %s12458_s0 }
0x18bd   : > { %v3649_v29 = vpop.xlane.xlu0 %3648 }
0x18be   : > { %v3650_v30 = vsub.f32 %v3646_v27, %v3649_v29  ;;  %v4092_v29 = vld [vmem:[%s12459_s16 + $0x8] sm:$0xff] }
0x18c0   : > { %v3651_v32 = vmul.f32 1.442695, %v3650_v30  ;;  %v9396_v30 = vld [vmem:[%s12430_s29 + $0x1] ss:$0 sm:$0xff]  ;;  %s12482_s29 = sld [smem:[#allocation24_spill]] }
0x18c1   : > { %v3659_v33 = vpop.permute.xlu0 %3658 }
0x18c2   : > { %10853 = vpow2.f32 %v3651_v32  ;;  %10085 = vmatpush3.msk.msra.mxu0 %vm1633_vm5, %v3659_v33  ;;  %v10634_v33 = vpack.c.bf16 %v4092_v29, %v4091_v28 }
0x18c3   : > { %10603 = vmatprep.subr.bf16.mxu0 %v11064_v0 }
0x18cc   : > { %v10854_v34 = vpop.eup %10853 }
0x18cd   : > { %v3653_v35 = vsel %vm1615_vm4, %v10854_v34, 0.0 }
0x18ce   : > { %3654 = vadd.xlane.f32.xlu1 %v3653_v35  ;;  %v4093_v35 = vld [vmem:[%s12459_s16 + $0x10] sm:$0xff] }
0x18fa   : > { %v3562_v36 = vpop.f32.mrb[30].mxu0 }
0x18fb   : > { %v3566_v14 = vadd.f32 %v3562_v36, %v3322_v61  ;;  %v10078_v37 = vpop.f32.mrb[31].mxu0  ;;  %v9406_v61 = vld [vmem:[%s12429_s30 + $0x90] sm:$0xff]  ;;  %v10637_v36 = vpack.c.bf16 %v4094_v31, %v4093_v35 }
0x18fc   : > { %v10613_v2 = vpack.c.bf16 %v9407_v63, %v9406_v61 }
0x195b   : > { %v3655_v38 = vpop.xlane.xlu1 %3654 }
0x195c   : > { %10855 = vrcp.f32 %v3655_v38  ;;  %v9418_v38 = vld [vmem:[%s12429_s30 + $0xf0] sm:$0xff] }
0x1966   : > { %v10856_v39 = vpop.eup %10855 }
0x1967   : > { %v3657_v40 = vmul.f32 %v10856_v39, %v10854_v34  ;;  %v9419_v39 = vld [vmem:[%s12429_s30 + $0xf8] sm:$0xff]  ;;  %s12483_s30 = sld [smem:[#allocation23_spill]] }
0x1969   : > { %10087 = vmatmul.mubr.msk.f32.vlgmr.msra.gmra.mrb[32].mxu0 %vm1629_vm6, %v3657_v40  ;;  %v10631_v40 = vpack.c.bf16 %v9419_v39, %v9418_v38 }
0x196a   : > { %10102 = vmatprep.mubr.msk.f32.mxu0 %vm11065_vm0, %v11066_v1  ;;  %10605 = vmatpush3.bf16.msra.mxu0 %v10604_v56 }
0x196b   : > { %10606 = vmatprep.subr.bf16.mxu0 %v11064_v0 }
0x1a3c   : > { %v3731_v41 = vpop.f32.mrb[32].mxu0 }
0x1a3d   : > { %v10088_v42 = vpop.f32.mrb[33].mxu0  ;;  %10092 = vmatmul.mubr.msk.f32.vlgmr.msra.gmra.mrb[22].mxu1 %vm1532_vm3, %v3731_v41  ;;  %v9402_v41 = vld [vmem:[%s12433_s24 + $0x1] ss:$0 sm:$0xff]  ;;  %s12479_s24 = sld [smem:[#allocation13_spill]] }
0x1a3e   : > { %10137 = vmatprep.mubr.msk.f32.mxu1 %vm11065_vm0, %v11066_v1  ;;  %10611 = vmatpush3.bf16.msra.mxu1 %v10610_v62 }
0x1a3f   : > { %10612 = vmatprep.subr.bf16.mxu1 %v11064_v0 }
0x1a42   : > { %10614 = vmatpush3.bf16.msra.mxu1 %v10613_v2 }
0x1a43   : > { %10615 = vmatprep.subr.bf16.mxu1 %v11064_v0 }
0x1a46   : > { %10617 = vmatpush3.bf16.msra.mxu1 %v10616_v5 }
0x1a47   : > { %10618 = vmatprep.subr.bf16.mxu1 %v11064_v0 }
0x1a4a   : > { %10620 = vmatpush3.bf16.msra.mxu1 %v10619_v7 }
0x1a4b   : > { %10621 = vmatprep.subr.bf16.mxu1 %v11064_v0 }
0x1a4e   : > { %10623 = vmatpush3.bf16.msra.mxu1 %v10622_v10 }
0x1a4f   : > { %10624 = vmatprep.subr.bf16.mxu1 %v11064_v0 }
0x1a52   : > { %10626 = vmatpush3.bf16.msra.mxu1 %v10625_v15 }
0x1a53   : > { %10627 = vmatprep.subr.bf16.mxu1 %v11064_v0 }
0x1a56   : > { %10629 = vmatpush3.bf16.msra.mxu1 %v10628_v18 }
0x1a57   : > { %10630 = vmatprep.subr.bf16.mxu1 %v11064_v0 }
0x1a5a   : > { %10632 = vmatpush3.bf16.msra.mxu1 %v10631_v40 }
0x1a5b   : > { %10176 = vmatprep.subr.mxu1 %v11066_v1 }
0x1b10   : > { %v3804_v44 = vpop.f32.mrb[22].mxu1 }
0x1b11   : > { %v3808_v45 = vadd.f32 %v3804_v44, %v3566_v14  ;;  %v10093_v46 = vpop.f32.mrb[23].mxu1  ;;  %v9327_v14 = vld [vmem:[#allocation4] ss:$0 sm:$0xff] }
0x1b12   : > { %v11724_v37 = vadd.f32 %v9327_v14, %v11412_v22 }
0x1b13   : > { %v3815_v26 = vadd.f32 %v9392_v43, %v3808_v45  ;;  %v9428_v45 = vld [vmem:[%s12460_s11] ss:$0 sm:$0xff] }
0x1b15   : > { %v3816_v47 = vadd.f32 %v3815_v26, %v11575_v11  ;;  %v9399_v11 = vld [vmem:[%s12431_s27 + $0x30] sm:$0xff]  ;;  %s12481_s27 = sld [smem:[#allocation20_spill]] }
0x1b16   : > { %v10607_v58 = vpack.c.bf16 %v9400_v57, %v9399_v11 }
0x1b17   : > { %v3821_v48 = vsel %vm2514_vm7, %v3816_v47, 0.0 }
0x1b18   : > { %3822 = vadd.xlane.f32.xlu1 %v3821_v48  ;;  %10608 = vmatpush3.bf16.msra.mxu0 %v10607_v58 }
0x1b19   : > { %10633 = vmatprep.subr.bf16.mxu0 %v11064_v0 }
0x1ba5   : > { %v3823_v49 = vpop.xlane.xlu1 %3822 }
0x1ba6   : > { %v3824_v50 = vmul.f32 0.03125, %v3823_v49 }
0x1ba8   : > { %v3825_v51 = vsub.f32 %v3816_v47, %v3824_v50 }
0x1baa   : > { %v3826_v52 = vmul.f32 %v3825_v51, %v3825_v51 }
0x1bac   : > { %v3827_v53 = vsel %vm2514_vm7, %v3826_v52, 0.0 }
0x1bad   : > { %3828 = vadd.xlane.f32.xlu1 %v3827_v53 }
0x1c3a   : > { %v3829_v19 = vpop.xlane.xlu1 %3828 }
0x1c3b   : > { %v3830_v20 = vmul.f32 0.03125, %v3829_v19 }
0x1c3d   : > { %v3831_v23 = vadd.f32 1e-05, %v3830_v20 }
0x1c3f   : > { %10857 = vrsqrt.f32 %v3831_v23 }
0x1c49   : > { %v10858_v24 = vpop.eup %10857 }
0x1c4a   : > { %v3833_v27 = vmul.f32 %v10858_v24, %v3825_v51 }
0x1c4c   : > { %v3840_v32 = vmul.f32 %v9395_v25, %v3833_v27 }
0x1c4e   : > { %v11714_v34 = vadd.f32 %v9396_v30, %v3840_v32 }
0x1c50   : > { %10103 = vmatmul.mubr.msk.f32.vlgmr.msra.gmra.mrb[34].mxu0 %vm1450_vm2, %v11714_v34 }
0x1c51   : > { %10635 = vmatpush3.bf16.msra.mxu0 %v10634_v33  ;;  %10148 = vmatprep.mubr.msk.f32.mxu0 %vm11065_vm0, %v11066_v1 }
0x1c52   : > { %10636 = vmatprep.subr.bf16.mxu0 %v11064_v0 }
0x1c55   : > { %10638 = vmatpush3.bf16.msra.mxu0 %v10637_v36 }
0x1c56   : > { %10151 = vmatprep.subr.mxu0 %v11066_v1 }
0x1c58   : > { %10149 = vmatmul.mubr.msk.f32.vlgmr.msra.gmra.mrb[36].mxu0 %vm1450_vm2, %v11724_v37 }
0x1c59   : > { %10153 = vmatprep.mubr.msk.f32.mxu0 %vm11065_vm0, %v11066_v1 }
0x1d23   : > { %v3930_v42 = vpop.f32.mrb[34].mxu0 }
0x1d24   : > { %v3931_v43 = vadd.f32 %v9402_v41, %v3930_v42  ;;  %v10104_v44 = vpop.f32.mrb[35].mxu0 }
0x1d26   : > { %v3934_v22 = vmax.f32 %v3931_v43, 0.0 }
0x1d28   : > { %10138 = vmatmul.mubr.f32.vlgmr.msra.gmra.mrb[24].mxu1 %v3934_v22 }
0x1d29   : > { %10178 = vmatprep.mubr.msk.f32.mxu1 %vm11065_vm0, %v11066_v1 }
0x1d2b   : > { %v4171_v46 = vpop.f32.mrb[36].mxu0 }
0x1d2c   : > { %v11738_v26 = vadd.f32 %v9428_v45, %v4171_v46  ;;  %v10150_v47 = vpop.f32.mrb[37].mxu0 }
0x1d2e   : > { %4181 = vrot.lane.b32.xlu1 %v11738_v26, %s12362_s10  ;;  %s12461_s10 = sld [smem:[#allocation28_spill]] }
0x1d34   : > { %v4175_v3 = vld [vmem:[%s12461_s10] sm:$0xff]  ;;  %v4176_v24 = vld [vmem:[%s12461_s10 + $0x8] sm:$0xff] }
0x1d35   : > { %10177 = vmatpush3.msra.mxu1 %v4175_v3 }
0x1d36   : > { %10186 = vmatprep.subr.mxu1 %v11066_v1 }
0x1da0   : > { %v4182_v48 = vpop.permute.xlu1 %4181 }
0x1da1   : > { %10152 = vmatpush3.xpose.msk.msra.mxu0 %vm1532_vm3, %v4182_v48  ;;  %v4177_v48 = vld [vmem:[%s12461_s10 + $0x10] sm:$0xff] }
0x1da2   : > { %10156 = vmatprep.subr.mxu0 %v11066_v1 }
0x1da4   : > { %10154 = vmatmul.mubr.msk.f32.vlgmr.msra.gmra.mrb[38].mxu0 %vm1532_vm3, %v11738_v26 }
0x1da5   : > { %10158 = vmatprep.mubr.msk.f32.mxu0 %vm11065_vm0, %v11066_v1 }
0x1dfb   : > { %v11748_v49 = vpop.f32.mrb[24].mxu1 }
0x1dfc   : > { %v10139_v50 = vpop.f32.mrb[25].mxu1 }
0x1e77   : > { %v4253_v51 = vpop.f32.mrb[38].mxu0 }
0x1e78   : > { %v4257_v52 = vmul.f32 0.35355338, %v4253_v51  ;;  %v10155_v53 = vpop.f32.mrb[39].mxu0 }
0x1e7a   : > { %v4259_v54 = vsel %vm4258_vm8, %v4257_v52, -inf }
0x1e7b   : > { %4260 = vmax.xlane.f32.xlu0 %v4259_v54 }
0x1e91   : > { %4270 = vrot.lane.b32.xlu0 %v11738_v26, %s12365_s18  ;;  %s12463_s18 = smov 56  }
0x1e95   : > { %4349 = vrot.lane.b32.xlu0 %v11738_v26, %s12366_s7  ;;  %s12464_s7 = smov 112  }
0x1f08   : > { %v4261_v55 = vpop.xlane.xlu0 %4260 }
0x1f09   : > { %v4262_v56 = vsub.f32 %v4257_v52, %v4261_v55 }
0x1f0b   : > { %v4263_v11 = vmul.f32 1.442695, %v4262_v56 }
0x1f0c   : > { %v4271_v57 = vpop.permute.xlu0 %4270 }
0x1f0d   : > { %10859 = vpow2.f32 %v4263_v11  ;;  %10157 = vmatpush3.msk.msra.mxu0 %vm4276_vm9, %v4271_v57 }
0x1f0e   : > { %10161 = vmatprep.subr.mxu0 %v11066_v1 }
0x1f10   : > { %v4350_v2 = vpop.permute.xlu0 %4349 }
0x1f17   : > { %v10860_v58 = vpop.eup %10859 }
0x1f18   : > { %v4265_v59 = vsel %vm4258_vm8, %v10860_v58, 0.0 }
0x1f19   : > { %4266 = vadd.xlane.f32.xlu1 %v4265_v59  ;;  %v9421_v59 = vld [vmem:[%s12432_s25 + $0x1] ss:$0 sm:$0xff]  ;;  %s12480_s25 = sld [smem:[#allocation19_spill]] }
0x1f2a   : > { %4351 = vrot.lane.b32.xlu1 %v11738_v26, %s12462_s3 }
0x1fa6   : > { %v4267_v60 = vpop.xlane.xlu1 %4266 }
0x1fa7   : > { %10861 = vrcp.f32 %v4267_v60  ;;  %v4027_v60 = vadd.f32 %v9421_v59, %v11748_v49  ;;  %v5182_v59 = vld [vmem:[%s12471_s12] sm:$0xff] }
0x1faa   : > { %v4352_v63 = vpop.permute.xlu1 %4351 }
0x1fb1   : > { %v10862_v61 = vpop.eup %10861 }
0x1fb2   : > { %v4269_v62 = vmul.f32 %v10862_v61, %v10860_v58 }
0x1fb4   : > { %10159 = vmatmul.mubr.msk.f32.vlgmr.msra.gmra.mrb[40].mxu0 %vm4272_vm10, %v4269_v62 }
0x1fb5   : > { %10162 = vmatpush3.xpose.msk.msra.mxu0 %vm1532_vm3, %v4352_v63  ;;  %10163 = vmatprep.mubr.msk.f32.mxu0 %vm11065_vm0, %v11066_v1  ;;  %v4030_v63 = vadd.f32 %v4027_v60, %v11714_v34  ;;  %v5183_v60 = vld [vmem:[%s12471_s12 + $0x8] sm:$0xff] }
0x1fb6   : > { %10166 = vmatprep.subr.mxu0 %v11066_v1 }
0x1fb8   : > { %10164 = vmatmul.mubr.msk.f32.vlgmr.msra.gmra.mrb[42].mxu0 %vm1532_vm3, %v4350_v2 }
0x1fb9   : > { %10168 = vmatprep.mubr.msk.f32.mxu0 %vm11065_vm0, %v11066_v1 }
0x2087   : > { %v4345_v4 = vpop.f32.mrb[40].mxu0 }
0x2088   : > { %v10160_v5 = vpop.f32.mrb[41].mxu0  ;;  %10179 = vmatmul.mubr.msk.f32.vlgmr.msra.gmra.mrb[26].mxu1 %vm1532_vm3, %v4345_v4 }
0x2089   : > { %10188 = vmatprep.mubr.msk.f32.mxu1 %vm11065_vm0, %v11066_v1 }
0x208b   : > { %v4423_v21 = vpop.f32.mrb[42].mxu0 }
0x208c   : > { %v4427_v6 = vmul.f32 0.35355338, %v4423_v21  ;;  %v10165_v7 = vpop.f32.mrb[43].mxu0 }
0x208e   : > { %v4428_v8 = vsel %vm4258_vm8, %v4427_v6, -inf }
0x208f   : > { %4429 = vmax.xlane.f32.xlu0 %v4428_v8 }
0x20a5   : > { %4439 = vrot.lane.b32.xlu0 %v11738_v26, %s12463_s18 }
0x20a9   : > { %4662 = vrot.lane.b32.xlu0 %v11738_v26, %s12464_s7 }
0x211c   : > { %v4430_v9 = vpop.xlane.xlu0 %4429 }
0x211d   : > { %v4431_v10 = vsub.f32 %v4427_v6, %v4430_v9 }
0x211f   : > { %v4432_v12 = vmul.f32 1.442695, %v4431_v10  ;;  %v4178_v10 = vld [vmem:[%s12461_s10 + $0x18] sm:$0xff] }
0x2120   : > { %v4440_v13 = vpop.permute.xlu0 %4439 }
0x2121   : > { %10863 = vpow2.f32 %v4432_v12  ;;  %10167 = vmatpush3.msk.msra.mxu0 %vm4276_vm9, %v4440_v13 }
0x2122   : > { %10171 = vmatprep.subr.mxu0 %v11066_v1 }
0x2124   : > { %v4663_v29 = vpop.permute.xlu0 %4662 }
0x212b   : > { %v10864_v15 = vpop.eup %10863 }
0x212c   : > { %v4434_v16 = vsel %vm4258_vm8, %v10864_v15, 0.0 }
0x212d   : > { %4435 = vadd.xlane.f32.xlu1 %v4434_v16 }
0x213e   : > { %4664 = vrot.lane.b32.xlu1 %v11738_v26, %s12465_s4 }
0x215b   : > { %v4658_v17 = vpop.f32.mrb[26].mxu1 }
0x215c   : > { %v10180_v18 = vpop.f32.mrb[27].mxu1 }
0x21ba   : > { %v4436_v19 = vpop.xlane.xlu1 %4435 }
0x21bb   : > { %10865 = vrcp.f32 %v4436_v19  ;;  %v9425_v19 = vld [vmem:[%s12455_s2 + $0x1] ss:$0 sm:$0xff]  ;;  %s12470_s2 = sld [smem:[#allocation45_spill]] }
0x21be   : > { %v4665_v27 = vpop.permute.xlu1 %4664 }
0x21c5   : > { %v10866_v20 = vpop.eup %10865 }
0x21c6   : > { %v4438_v23 = vmul.f32 %v10866_v20, %v10864_v15 }
0x21c8   : > { %10169 = vmatmul.mubr.msk.f32.vlgmr.msra.gmra.mrb[44].mxu0 %vm4272_vm10, %v4438_v23 }
0x21c9   : > { %10172 = vmatpush3.msra.mxu0 %v4176_v24  ;;  %10173 = vmatprep.mubr.msk.f32.mxu0 %vm11065_vm0, %v11066_v1 }
0x21ca   : > { %10181 = vmatprep.subr.mxu0 %v11066_v1 }
0x229b   : > { %v4512_v25 = vpop.f32.mrb[44].mxu0 }
0x229c   : > { %v10170_v28 = vpop.f32.mrb[45].mxu0  ;;  %10174 = vmatmul.mubr.msk.f32.vlgmr.msra.gmra.mrb[46].mxu0 %vm1532_vm3, %v4512_v25 }
0x229d   : > { %10182 = vmatpush3.xpose.msk.msra.mxu0 %vm1532_vm3, %v4665_v27  ;;  %10183 = vmatprep.mubr.msk.f32.mxu0 %vm11065_vm0, %v11066_v1 }
0x229e   : > { %10191 = vmatprep.subr.mxu0 %v11066_v1 }
0x22a0   : > { %10184 = vmatmul.mubr.msk.f32.vlgmr.msra.gmra.mrb[48].mxu0 %vm1532_vm3, %v4663_v29 }
0x22a1   : > { %10193 = vmatprep.mubr.msk.f32.mxu0 %vm11065_vm0, %v11066_v1  ;;  %10192 = vmatpush3.msra.mxu0 %v4177_v48 }
0x22a2   : > { %10201 = vmatprep.subr.mxu0 %v11066_v1 }
0x236f   : > { %v4585_v30 = vpop.f32.mrb[46].mxu0 }
0x2370   : > { %v4659_v32 = vadd.f32 %v4658_v17, %v4585_v30  ;;  %v10175_v33 = vpop.f32.mrb[47].mxu0  ;;  %v9424_v17 = vld [vmem:[%s12454_s1 + $0x1] ss:$0 sm:$0xff]  ;;  %v9450_v30 = vld [vmem:[%s12467_s8] ss:$0 sm:$0xff]  ;;  %s12469_s1 = sld [smem:[#allocation46_spill]] }
0x2373   : > { %v4736_v35 = vpop.f32.mrb[48].mxu0 }
0x2374   : > { %v4740_v31 = vmul.f32 0.35355338, %v4736_v35  ;;  %v10185_v36 = vpop.f32.mrb[49].mxu0 }
0x2376   : > { %v4741_v14 = vsel %vm4258_vm8, %v4740_v31, -inf }
0x2377   : > { %4742 = vmax.xlane.f32.xlu0 %v4741_v14 }
0x238d   : > { %4752 = vrot.lane.b32.xlu0 %v11738_v26, %s12466_s5 }
0x2391   : > { %4903 = vrot.lane.b32.xlu0 %v11738_v26, %s12456_s26 }
0x2404   : > { %v4743_v38 = vpop.xlane.xlu0 %4742 }
0x2405   : > { %v4744_v39 = vsub.f32 %v4740_v31, %v4743_v38 }
0x2407   : > { %v4745_v40 = vmul.f32 1.442695, %v4744_v39 }
0x2408   : > { %v4753_v41 = vpop.permute.xlu0 %4752 }
0x2409   : > { %10867 = vpow2.f32 %v4745_v40  ;;  %10187 = vmatpush3.msk.msra.mxu1 %vm4276_vm9, %v4753_v41  ;;  %v5266_v41 = vld [vmem:[%s12468_s9] sm:$0xff] }
0x240a   : > { %10196 = vmatprep.subr.mxu1 %v11066_v1 }
0x240c   : > { %v4904_v47 = vpop.permute.xlu0 %4903 }
0x2413   : > { %v10868_v42 = vpop.eup %10867 }
0x2414   : > { %v4747_v43 = vsel %vm4258_vm8, %v10868_v42, 0.0 }
0x2415   : > { %4748 = vadd.xlane.f32.xlu1 %v4747_v43 }
0x2426   : > { %4905 = vrot.lane.b32.xlu1 %v11738_v26, %s12457_s28 }
0x24a2   : > { %v4749_v44 = vpop.xlane.xlu1 %4748 }
0x24a3   : > { %10869 = vrcp.f32 %v4749_v44  ;;  %v5268_v44 = vld [vmem:[%s12468_s9 + $0x10] sm:$0xff] }
0x24a6   : > { %v4906_v46 = vpop.permute.xlu1 %4905 }
0x24ad   : > { %v10870_v22 = vpop.eup %10869 }
0x24ae   : > { %v4751_v45 = vmul.f32 %v10870_v22, %v10868_v42  ;;  %v5267_v42 = vld [vmem:[%s12468_s9 + $0x8] sm:$0xff]  ;;  %v5269_v22 = vld [vmem:[%s12468_s9 + $0x18] sm:$0xff] }
0x24af   : > { %v10646_v43 = vpack.c.bf16 %v5267_v42, %v5266_v41 }
0x24b0   : > { %10189 = vmatmul.mubr.msk.f32.vlgmr.msra.gmra.mrb[28].mxu1 %vm4272_vm10, %v4751_v45  ;;  %v10649_v45 = vpack.c.bf16 %v5269_v22, %v5268_v44 }
0x24b1   : > { %10197 = vmatpush3.xpose.msk.msra.mxu1 %vm1532_vm3, %v4906_v46  ;;  %10198 = vmatprep.mubr.msk.f32.mxu1 %vm11065_vm0, %v11066_v1 }
0x24b2   : > { %10206 = vmatprep.subr.mxu1 %v11066_v1 }
0x24b4   : > { %10199 = vmatmul.mubr.msk.f32.vlgmr.msra.gmra.mrb[30].mxu1 %vm1532_vm3, %v4904_v47 }
0x24b5   : > { %10208 = vmatprep.mubr.msk.f32.mxu1 %vm11065_vm0, %v11066_v1  ;;  %10207 = vmatpush3.msra.mxu1 %v4178_v10 }
0x24b6   : > { %10645 = vmatprep.subr.bf16.mxu1 %v11064_v0 }
0x2583   : > { %v4825_v50 = vpop.f32.mrb[28].mxu1 }
0x2584   : > { %v10190_v51 = vpop.f32.mrb[29].mxu1  ;;  %10194 = vmatmul.mubr.msk.f32.vlgmr.msra.gmra.mrb[50].mxu0 %vm1532_vm3, %v4825_v50 }
0x2585   : > { %10203 = vmatprep.mubr.msk.f32.mxu0 %vm11065_vm0, %v11066_v1 }
0x2587   : > { %v4977_v52 = vpop.f32.mrb[30].mxu1 }
0x2588   : > { %v4981_v53 = vmul.f32 0.35355338, %v4977_v52  ;;  %v10200_v54 = vpop.f32.mrb[31].mxu1 }
0x258a   : > { %v4982_v55 = vsel %vm4258_vm8, %v4981_v53, -inf }
0x258b   : > { %4983 = vmax.xlane.f32.xlu0 %v4982_v55  ;;  %v9426_v55 = vld [vmem:[%s12469_s1] ss:$0 sm:$0xff]  ;;  %s12474_s1 = sld [smem:[#allocation11_spill]] }
0x25a1   : > { %4993 = vrot.lane.b32.xlu0 %v11738_v26, %s12458_s0  ;;  %v4035_v26 = vsel %vm2514_vm7, %v4030_v63, 0.0 }
0x2618   : > { %v4984_v56 = vpop.xlane.xlu0 %4983 }
0x2619   : > { %v4985_v11 = vsub.f32 %v4981_v53, %v4984_v56 }
0x261b   : > { %v4986_v57 = vmul.f32 1.442695, %v4985_v11  ;;  %v9427_v11 = vld [vmem:[%s12470_s2] ss:$0 sm:$0xff]  ;;  %s12475_s2 = sld [smem:[#allocation15_spill]] }
0x261c   : > { %v4994_v58 = vpop.permute.xlu0 %4993 }
0x261d   : > { %10871 = vpow2.f32 %v4986_v57  ;;  %10202 = vmatpush3.msk.msra.mxu0 %vm4276_vm9, %v4994_v58 }
0x261e   : > { %10639 = vmatprep.subr.bf16.mxu0 %v11064_v0 }
0x2627   : > { %v10872_v61 = vpop.eup %10871 }
0x2628   : > { %v4988_v62 = vsel %vm4258_vm8, %v10872_v61, 0.0 }
0x2629   : > { %4989 = vadd.xlane.f32.xlu1 %v4988_v62  ;;  %v5184_v62 = vld [vmem:[%s12471_s12 + $0x10] sm:$0xff] }
0x262d   : > { %4036 = vadd.xlane.f32.xlu1 %v4035_v26 }
0x2657   : > { %v4898_v2 = vpop.f32.mrb[50].mxu0 }
0x2658   : > { %v4902_v3 = vadd.f32 %v4898_v2, %v4659_v32  ;;  %v10195_v4 = vpop.f32.mrb[51].mxu0 }
0x26b6   : > { %v4990_v5 = vpop.xlane.xlu1 %4989 }
0x26b7   : > { %10873 = vrcp.f32 %v4990_v5 }
0x26ba   : > { %v4037_v21 = vpop.xlane.xlu1 %4036 }
0x26bb   : > { %v4038_v6 = vmul.f32 0.03125, %v4037_v21  ;;  %v9451_v21 = vld [vmem:[%s12472_s13] ss:$0 sm:$0xff] }
0x26bd   : > { %v4039_v7 = vsub.f32 %v4030_v63, %v4038_v6  ;;  %v5185_v63 = vld [vmem:[%s12471_s12 + $0x18] sm:$0xff] }
0x26be   : > { %v10643_v26 = vpack.c.bf16 %v5185_v63, %v5184_v62 }
0x26bf   : > { %v4040_v49 = vmul.f32 %v4039_v7, %v4039_v7 }
0x26c1   : > { %v10874_v8 = vpop.eup %10873  ;;  %v4041_v9 = vsel %vm2514_vm7, %v4040_v49, 0.0 }
0x26c2   : > { %v4992_v34 = vmul.f32 %v10874_v8, %v10872_v61  ;;  %4042 = vadd.xlane.f32.xlu1 %v4041_v9  ;;  %v10640_v61 = vpack.c.bf16 %v5183_v60, %v5182_v59  ;;  %v9455_v9 = vld [vmem:[%s12474_s1] ss:$0 sm:$0xff] }
0x26c4   : > { %10204 = vmatmul.mubr.msk.f32.vlgmr.msra.gmra.mrb[52].mxu0 %vm4272_vm10, %v4992_v34 }
0x26c5   : > { %10219 = vmatprep.mubr.msk.f32.mxu0 %vm11065_vm0, %v11066_v1  ;;  %10641 = vmatpush3.bf16.msra.mxu0 %v10640_v61 }
0x26c6   : > { %10642 = vmatprep.subr.bf16.mxu0 %v11064_v0 }
0x26c9   : > { %10644 = vmatpush3.bf16.msra.mxu0 %v10643_v26 }
0x26ca   : > { %10233 = vmatprep.subr.mxu0 %v11066_v1 }
0x274f   : > { %v4043_v12 = vpop.xlane.xlu1 %4042 }
0x2750   : > { %v4044_v13 = vmul.f32 0.03125, %v4043_v12 }
0x2752   : > { %v4045_v15 = vadd.f32 1e-05, %v4044_v13  ;;  %v9453_v13 = vld [vmem:[%s12475_s2] ss:$0 sm:$0xff] }
0x2754   : > { %10875 = vrsqrt.f32 %v4045_v15 }
0x275e   : > { %v10876_v16 = vpop.eup %10875 }
0x275f   : > { %v4047_v18 = vmul.f32 %v10876_v16, %v4039_v7  ;;  %v9452_v7 = vld [vmem:[%s12473_s14] ss:$0 sm:$0xff] }
0x2761   : > { %v4054_v20 = vmul.f32 %v9424_v17, %v4047_v18 }
0x2763   : > { %v4061_v23 = vadd.f32 %v9425_v19, %v4054_v20 }
0x2765   : > { %v4064_v24 = vsel %vm2514_vm7, %v4061_v23, 0.0 }
0x2766   : > { %4065 = vadd.xlane.f32.xlu1 %v4064_v24 }
0x2797   : > { %v5066_v25 = vpop.f32.mrb[52].mxu0 }
0x2798   : > { %v10205_v27 = vpop.f32.mrb[53].mxu0  ;;  %10209 = vmatmul.mubr.msk.f32.vlgmr.msra.gmra.mrb[32].mxu1 %vm1532_vm3, %v5066_v25  ;;  %v11897_v25 = vld [vmem:[%s11436_s15] ss:$0 sm:$0xff] }
0x2799   : > { %10230 = vmatprep.mubr.msk.f32.mxu1 %vm11065_vm0, %v11066_v1  ;;  %10647 = vmatpush3.bf16.msra.mxu1 %v10646_v43 }
0x279a   : > { %10648 = vmatprep.subr.bf16.mxu1 %v11064_v0 }
0x279d   : > { %10650 = vmatpush3.bf16.msra.mxu1 %v10649_v45 }
0x279e   : > { %10238 = vmatprep.subr.mxu1 %v11066_v1 }
0x27f3   : > { %v4066_v28 = vpop.xlane.xlu1 %4065 }
0x27f4   : > { %v4067_v29 = vmul.f32 0.03125, %v4066_v28 }
0x27f6   : > { %v4068_v31 = vsub.f32 %v4061_v23, %v4067_v29 }
0x27f8   : > { %v4069_v39 = vmul.f32 %v4068_v31, %v4068_v31 }
0x27fa   : > { %v4070_v40 = vsel %vm2514_vm7, %v4069_v39, 0.0 }
0x286b   : > { %v5139_v32 = vpop.f32.mrb[32].mxu1 }
0x286c   : > { %v5143_v33 = vadd.f32 %v5139_v32, %v4902_v3  ;;  %v10210_v35 = vpop.f32.mrb[33].mxu1 }
0x286e   : > { %v5150_v36 = vadd.f32 %v9450_v30, %v5143_v33 }
0x2870   : > { %v5151_v14 = vadd.f32 %v5150_v36, %v11724_v37 }
0x2872   : > { %v5155_v38 = vsel %vm5154_vm11, %v5151_v14, 0.0 }
0x2873   : > { %5156 = vadd.xlane.f32.xlu1 %v5155_v38 }
0x2877   : > { %4071 = vadd.xlane.f32.xlu1 %v4070_v40 }
0x2900   : > { %v5157_v37 = vpop.xlane.xlu1 %5156 }
0x2901   : > { %v5158_v46 = vmul.f32 0.03125, %v5157_v37 }
0x2903   : > { %v5159_v47 = vsub.f32 %v5151_v14, %v5158_v46 }
0x2904   : > { %v4072_v48 = vpop.xlane.xlu1 %4071 }
0x2905   : > { %v4073_v50 = vmul.f32 0.03125, %v4072_v48  ;;  %v5160_v51 = vmul.f32 %v5159_v47, %v5159_v47 }
0x2907   : > { %v4074_v52 = vadd.f32 1e-05, %v4073_v50  ;;  %v5161_v53 = vsel %vm5154_vm11, %v5160_v51, 0.0 }
0x2908   : > { %5162 = vadd.xlane.f32.xlu0 %v5161_v53  ;;  %v5351_v53 = vld [vmem:[%s12478_s21 + $0x8] sm:$0xff] }
0x2909   : > { %10877 = vrsqrt.f32 %v4074_v52  ;;  %v5350_v52 = vld [vmem:[%s12478_s21] sm:$0xff] }
0x2913   : > { %v10878_v54 = vpop.eup %10877 }
0x2914   : > { %v4076_v56 = vmul.f32 %v10878_v54, %v4068_v31 }
0x2916   : > { %v4083_v57 = vmul.f32 %v9426_v55, %v4076_v56 }
0x2918   : > { %v11854_v58 = vadd.f32 %v9427_v11, %v4083_v57 }
0x291a   : > { %10231 = vmatmul.mubr.msk.f32.vlgmr.msra.gmra.mrb[34].mxu1 %vm1450_vm2, %v11854_v58 }
0x291b   : > { %10240 = vmatprep.mubr.msk.f32.mxu1 %vm11065_vm0, %v11066_v1 }
0x2995   : > { %v5163_v2 = vpop.xlane.xlu0 %5162 }
0x2996   : > { %v5164_v3 = vmul.f32 0.03125, %v5163_v2 }
0x2998   : > { %v5165_v4 = vadd.f32 1e-05, %v5164_v3 }
0x299a   : > { %10879 = vrsqrt.f32 %v5165_v4 }
0x29a4   : > { %v10880_v5 = vpop.eup %10879 }
0x29a5   : > { %v5167_v6 = vmul.f32 %v10880_v5, %v5159_v47 }
0x29a7   : > { %v5174_v49 = vmul.f32 %v9451_v21, %v5167_v6 }
0x29a9   : > { %v11868_v8 = vadd.f32 %v9452_v7, %v5174_v49 }
0x29ab   : > { %10220 = vmatmul.mubr.msk.f32.vlgmr.msra.gmra.mrb[54].mxu0 %vm1450_vm2, %v11868_v8 }
0x29ac   : > { %10235 = vmatprep.mubr.msk.f32.mxu0 %vm11065_vm0, %v11066_v1 }
0x29ed   : > { %v5346_v34 = vpop.f32.mrb[34].mxu1 }
0x29ee   : > { %v11875_v10 = vadd.f32 %v9455_v9, %v5346_v34  ;;  %v10232_v12 = vpop.f32.mrb[35].mxu1 }
0x29f0   : > { %5524 = vrot.lane.b32.xlu1 %v11875_v10, %s12476_s19  ;;  %10234 = vmatpush3.xpose.msk.msra.mxu0 %vm1532_vm3, %v11875_v10 }
0x29f1   : > { %10243 = vmatprep.subr.mxu0 %v11066_v1 }
0x2a62   : > { %v5525_v18 = vpop.permute.xlu1 %5524 }
0x2a7e   : > { %v5262_v15 = vpop.f32.mrb[54].mxu0 }
0x2a7f   : > { %v11883_v16 = vadd.f32 %v9453_v13, %v5262_v15  ;;  %v10221_v17 = vpop.f32.mrb[55].mxu0 }
0x2a81   : > { %5522 = vrot.lane.b32.xlu1 %v11883_v16, %s12476_s19  ;;  %10236 = vmatmul.mubr.msk.f32.vlgmr.msra.gmra.mrb[56].mxu0 %vm1532_vm3, %v11883_v16 }
0x2a82   : > { %10244 = vmatpush3.xpose.msk.msra.mxu0 %vm1532_vm3, %v5525_v18  ;;  %10245 = vmatprep.mubr.msk.f32.mxu0 %vm11065_vm0, %v11066_v1 }
0x2a83   : > { %10253 = vmatprep.subr.mxu0 %v11066_v1 }
0x2af3   : > { %v5523_v19 = vpop.permute.xlu1 %5522 }
0x2af4   : > { %10246 = vmatmul.mubr.msk.f32.vlgmr.msra.gmra.mrb[58].mxu0 %vm1532_vm3, %v5523_v19  ;;  %v5352_v19 = vld [vmem:[%s12478_s21 + $0x10] sm:$0xff] }
0x2af5   : > { %10255 = vmatprep.mubr.msk.f32.mxu0 %vm11065_vm0, %v11066_v1  ;;  %10254 = vmatpush3.msra.mxu0 %v5351_v53 }
0x2af6   : > { %10263 = vmatprep.subr.mxu0 %v11066_v1 }
0x2b54   : > { %v5427_v20 = vpop.f32.mrb[56].mxu0 }
0x2b55   : > { %v5431_v23 = vmul.f32 0.35355338, %v5427_v20  ;;  %v10237_v24 = vpop.f32.mrb[57].mxu0 }
0x2b57   : > { %v5432_v27 = vadd.f32 %v11897_v25, %v5431_v23 }
0x2b59   : > { %v5434_v28 = vsel %vm5433_vm12, %v5432_v27, -inf }
0x2b5a   : > { %5435 = vmax.xlane.f32.xlu1 %v5434_v28 }
0x2b6b   : > { %5613 = vrot.lane.b32.xlu1 %v11875_v10, %s12462_s3 }
0x2bc7   : > { %v5596_v29 = vpop.f32.mrb[58].mxu0 }
0x2bc8   : > { %v5600_v30 = vmul.f32 0.35355338, %v5596_v29  ;;  %v10247_v32 = vpop.f32.mrb[59].mxu0 }
0x2bca   : > { %v5601_v33 = vadd.f32 %v11897_v25, %v5600_v30 }
0x2bcc   : > { %v5602_v35 = vsel %vm5433_vm12, %v5601_v33, -inf }
0x2bcd   : > { %5603 = vmax.xlane.f32.xlu0 %v5602_v35 }
0x2be7   : > { %v5436_v31 = vpop.xlane.xlu1 %5435 }
0x2be8   : > { %v5437_v36 = vsub.f32 %v5432_v27, %v5436_v31 }
0x2bea   : > { %v5438_v14 = vmul.f32 1.442695, %v5437_v36 }
0x2beb   : > { %v5614_v48 = vpop.permute.xlu1 %5613 }
0x2bec   : > { %10881 = vpow2.f32 %v5438_v14 }
0x2bf6   : > { %v10882_v38 = vpop.eup %10881 }
0x2bf7   : > { %v5440_v39 = vsel %vm5433_vm12, %v10882_v38, 0.0 }
0x2bf8   : > { %5441 = vadd.xlane.f32.xlu0 %v5440_v39 }
0x2c5a   : > { %v5604_v40 = vpop.xlane.xlu0 %5603 }
0x2c5b   : > { %v5605_v41 = vsub.f32 %v5601_v33, %v5604_v40 }
0x2c5d   : > { %v5606_v42 = vmul.f32 1.442695, %v5605_v41 }
0x2c5f   : > { %10883 = vpow2.f32 %v5606_v42 }
0x2c69   : > { %v10884_v43 = vpop.eup %10883 }
0x2c6a   : > { %v5608_v44 = vsel %vm5433_vm12, %v10884_v43, 0.0 }
0x2c6b   : > { %5609 = vadd.xlane.f32.xlu0 %v5608_v44 }
0x2c81   : > { %5445 = vrot.lane.b32.xlu0 %v11875_v10, %s12477_s20 }
0x2c85   : > { %5838 = vrot.lane.b32.xlu0 %v11875_v10, %s12464_s7  ;;  %v5442_v22 = vpop.xlane.xlu0 %5441 }
0x2c86   : > { %10885 = vrcp.f32 %v5442_v22 }
0x2c89   : > { %5836 = vrot.lane.b32.xlu0 %v11883_v16, %s12464_s7 }
0x2c90   : > { %v10886_v37 = vpop.eup %10885 }
0x2c91   : > { %v5444_v46 = vmul.f32 %v10886_v37, %v10882_v38  ;;  %v5353_v38 = vld [vmem:[%s12478_s21 + $0x18] sm:$0xff] }
0x2cf8   : > { %v5610_v45 = vpop.xlane.xlu0 %5609 }
0x2cf9   : > { %10887 = vrcp.f32 %v5610_v45  ;;  %v9477_v45 = vld [vmem:[%s12479_s24] ss:$0 sm:$0xff] }
0x2cfc   : > { %v5446_v47 = vpop.permute.xlu0 %5445 }
0x2cfd   : > { %10239 = vmatpush3.msk.msra.mxu1 %vm1633_vm5, %v5446_v47 }
0x2cfe   : > { %10241 = vmatmul.mubr.msk.f32.vlgmr.msra.gmra.mrb[36].mxu1 %vm1629_vm6, %v5444_v46  ;;  %10248 = vmatprep.subr.mxu1 %v11066_v1 }
0x2cff   : > { %10249 = vmatpush3.msk.msra.mxu1 %vm1633_vm5, %v5614_v48  ;;  %10250 = vmatprep.mubr.msk.f32.mxu1 %vm11065_vm0, %v11066_v1 }
0x2d00   : > { %10258 = vmatprep.subr.mxu1 %v11066_v1  ;;  %v5839_v56 = vpop.permute.xlu0 %5838 }
0x2d03   : > { %v10888_v50 = vpop.eup %10887 }
0x2d04   : > { %v5612_v51 = vmul.f32 %v10888_v50, %v10884_v43  ;;  %v5837_v59 = vpop.permute.xlu0 %5836 }
0x2d06   : > { %10251 = vmatmul.mubr.msk.f32.vlgmr.msra.gmra.mrb[38].mxu1 %vm1629_vm6, %v5612_v51 }
0x2d07   : > { %10260 = vmatprep.mubr.msk.f32.mxu1 %vm11065_vm0, %v11066_v1  ;;  %10259 = vmatpush3.msra.mxu1 %v5350_v52 }
0x2d08   : > { %10268 = vmatprep.subr.mxu1 %v11066_v1 }
0x2dd1   : > { %v5518_v54 = vpop.f32.mrb[36].mxu1 }
0x2dd2   : > { %v10242_v55 = vpop.f32.mrb[37].mxu1  ;;  %10261 = vmatmul.mubr.msk.f32.vlgmr.msra.gmra.mrb[40].mxu1 %vm1532_vm3, %v5518_v54 }
0x2dd3   : > { %10270 = vmatprep.mubr.msk.f32.mxu1 %vm11065_vm0, %v11066_v1 }
0x2dd9   : > { %v5686_v11 = vpop.f32.mrb[38].mxu1 }
0x2dda   : > { %v10252_v57 = vpop.f32.mrb[39].mxu1  ;;  %10256 = vmatmul.mubr.msk.f32.vlgmr.msra.gmra.mrb[60].mxu0 %vm1532_vm3, %v5686_v11  ;;  %v6357_v11 = vld [vmem:[%s12480_s25] sm:$0xff] }
0x2ddb   : > { %10264 = vmatpush3.xpose.msk.msra.mxu0 %vm1532_vm3, %v5839_v56  ;;  %10265 = vmatprep.mubr.msk.f32.mxu0 %vm11065_vm0, %v11066_v1  ;;  %v6358_v57 = vld [vmem:[%s12480_s25 + $0x8] sm:$0xff] }
0x2ddc   : > { %10273 = vmatprep.subr.mxu0 %v11066_v1 }
0x2dde   : > { %10266 = vmatmul.mubr.msk.f32.vlgmr.msra.gmra.mrb[62].mxu0 %vm1532_vm3, %v5837_v59  ;;  %v10652_v59 = vpack.c.bf16 %v6358_v57, %v6357_v11 }
0x2ddf   : > { %10275 = vmatprep.mubr.msk.f32.mxu0 %vm11065_vm0, %v11066_v1  ;;  %10274 = vmatpush3.msra.mxu0 %v5352_v19  ;;  %v6455_v19 = vld [vmem:[%s12481_s27 + $0x68] sm:$0xff] }
0x2de0   : > { %10283 = vmatprep.subr.mxu0 %v11066_v1 }
0x2ea5   : > { %v5832_v60 = vpop.f32.mrb[40].mxu1 }
0x2ea6   : > { %v10262_v61 = vpop.f32.mrb[41].mxu1 }
0x2ead   : > { %v5759_v62 = vpop.f32.mrb[60].mxu0 }
0x2eae   : > { %v5833_v63 = vadd.f32 %v5832_v60, %v5759_v62  ;;  %v10257_v26 = vpop.f32.mrb[61].mxu0  ;;  %v6360_v60 = vld [vmem:[%s12480_s25 + $0x18] sm:$0xff]  ;;  %v6442_v62 = vld [vmem:[%s12481_s27] sm:$0xff] }
0x2eaf   : > { %v6444_v26 = vld [vmem:[%s12481_s27 + $0x10] sm:$0xff] }
0x2eb1   : > { %v5910_v2 = vpop.f32.mrb[62].mxu0 }
0x2eb2   : > { %v5914_v3 = vmul.f32 0.35355338, %v5910_v2  ;;  %v10267_v4 = vpop.f32.mrb[63].mxu0 }
0x2eb4   : > { %v5915_v5 = vadd.f32 %v11897_v25, %v5914_v3  ;;  %v6445_v3 = vld [vmem:[%s12481_s27 + $0x18] sm:$0xff] }
0x2eb5   : > { %v10661_v4 = vpack.c.bf16 %v6445_v3, %v6444_v26  ;;  %v9490_v3 = vld [vmem:[%s12460_s11 + $0x1] ss:$0 sm:$0xff] }
0x2eb6   : > { %v5916_v21 = vsel %vm5433_vm12, %v5915_v5, -inf }
0x2eb7   : > { %5917 = vmax.xlane.f32.xlu0 %v5916_v21  ;;  %v6447_v21 = vld [vmem:[%s12481_s27 + $0x28] sm:$0xff] }
0x2ecd   : > { %5927 = vrot.lane.b32.xlu0 %v11875_v10, %s12465_s4 }
0x2ed1   : > { %6078 = vrot.lane.b32.xlu0 %v11883_v16, %s12456_s26 }
0x2f44   : > { %v5918_v6 = vpop.xlane.xlu0 %5917 }
0x2f45   : > { %v5919_v7 = vsub.f32 %v5915_v5, %v5918_v6  ;;  %v6446_v5 = vld [vmem:[%s12481_s27 + $0x20] sm:$0xff] }
0x2f46   : > { %v10664_v6 = vpack.c.bf16 %v6447_v21, %v6446_v5 }
0x2f47   : > { %v5920_v49 = vmul.f32 1.442695, %v5919_v7  ;;  %v6448_v7 = vld [vmem:[%s12481_s27 + $0x30] sm:$0xff] }
0x2f48   : > { %v5928_v9 = vpop.permute.xlu0 %5927 }
0x2f49   : > { %10889 = vpow2.f32 %v5920_v49  ;;  %10269 = vmatpush3.msk.msra.mxu1 %vm1633_vm5, %v5928_v9  ;;  %v6449_v49 = vld [vmem:[%s12481_s27 + $0x38] sm:$0xff] }
0x2f4a   : > { %10278 = vmatprep.subr.mxu1 %v11066_v1  ;;  %v10667_v9 = vpack.c.bf16 %v6449_v49, %v6448_v7 }
0x2f4c   : > { %v6079_v18 = vpop.permute.xlu0 %6078 }
0x2f53   : > { %v10890_v34 = vpop.eup %10889 }
0x2f54   : > { %v5922_v12 = vsel %vm5433_vm12, %v10890_v34, 0.0 }
0x2f55   : > { %5923 = vadd.xlane.f32.xlu1 %v5922_v12  ;;  %v6451_v12 = vld [vmem:[%s12481_s27 + $0x48] sm:$0xff] }
0x2f66   : > { %6080 = vrot.lane.b32.xlu1 %v11875_v10, %s12456_s26 }
0x2fe2   : > { %v5924_v13 = vpop.xlane.xlu1 %5923 }
0x2fe3   : > { %10891 = vrcp.f32 %v5924_v13 }
0x2fe6   : > { %v6081_v17 = vpop.permute.xlu1 %6080 }
0x2fed   : > { %v10892_v15 = vpop.eup %10891 }
0x2fee   : > { %v5926_v16 = vmul.f32 %v10892_v15, %v10890_v34  ;;  %v6450_v34 = vld [vmem:[%s12481_s27 + $0x40] sm:$0xff]  ;;  %v6452_v15 = vld [vmem:[%s12481_s27 + $0x50] sm:$0xff] }
0x2fef   : > { %v10670_v13 = vpack.c.bf16 %v6451_v12, %v6450_v34 }
0x2ff0   : > { %10271 = vmatmul.mubr.msk.f32.vlgmr.msra.gmra.mrb[42].mxu1 %vm1629_vm6, %v5926_v16  ;;  %v6453_v16 = vld [vmem:[%s12481_s27 + $0x58] sm:$0xff] }
0x2ff1   : > { %10279 = vmatpush3.xpose.msk.msra.mxu1 %vm1532_vm3, %v6081_v17  ;;  %10280 = vmatprep.mubr.msk.f32.mxu1 %vm11065_vm0, %v11066_v1  ;;  %v10673_v17 = vpack.c.bf16 %v6453_v16, %v6452_v15 }
0x2ff2   : > { %10288 = vmatprep.subr.mxu1 %v11066_v1 }
0x2ff4   : > { %10281 = vmatmul.mubr.msk.f32.vlgmr.msra.gmra.mrb[44].mxu1 %vm1532_vm3, %v6079_v18  ;;  %v6454_v18 = vld [vmem:[%s12481_s27 + $0x60] sm:$0xff] }
0x2ff5   : > { %10290 = vmatprep.mubr.msk.f32.mxu1 %vm11065_vm0, %v11066_v1  ;;  %10289 = vmatpush3.msra.mxu1 %v5353_v38  ;;  %v9480_v38 = vld [vmem:[%s12484_s22] ss:$0 sm:$0xff]  ;;  %s12487_s22 = sld [smem:[#allocation26_spill]] }
0x2ff6   : > { %10657 = vmatprep.subr.bf16.mxu1 %v11064_v0 }
0x2ffb   : > { %s12488_s17 = smov %s12487_s22 }
0x30c3   : > { %v6000_v20 = vpop.f32.mrb[42].mxu1 }
0x30c4   : > { %v10272_v23 = vpop.f32.mrb[43].mxu1  ;;  %10276 = vmatmul.mubr.msk.f32.vlgmr.msra.gmra.mrb[64].mxu0 %vm1532_vm3, %v6000_v20  ;;  %v10676_v20 = vpack.c.bf16 %v6455_v19, %v6454_v18 }
0x30c5   : > { %10285 = vmatprep.mubr.msk.f32.mxu0 %vm11065_vm0, %v11066_v1 }
0x30c7   : > { %v6152_v24 = vpop.f32.mrb[44].mxu1 }
0x30c8   : > { %v6156_v27 = vmul.f32 0.35355338, %v6152_v24  ;;  %v10282_v28 = vpop.f32.mrb[45].mxu1 }
0x30ca   : > { %v6157_v29 = vadd.f32 %v11897_v25, %v6156_v27 }
0x30cc   : > { %v6158_v30 = vsel %vm5433_vm12, %v6157_v29, -inf }
0x30cd   : > { %6159 = vmax.xlane.f32.xlu0 %v6158_v30 }
0x30e3   : > { %6169 = vrot.lane.b32.xlu0 %v11875_v10, %s12457_s28 }
0x315a   : > { %v6160_v32 = vpop.xlane.xlu0 %6159 }
0x315b   : > { %v6161_v33 = vsub.f32 %v6157_v29, %v6160_v32  ;;  %v9478_v29 = vld [vmem:[%s12482_s29] ss:$0 sm:$0xff] }
0x315c   : > { %v9479_v32 = vld [vmem:[%s12483_s30] ss:$0 sm:$0xff] }
0x315d   : > { %v6162_v35 = vmul.f32 1.442695, %v6161_v33 }
0x315e   : > { %v6170_v31 = vpop.permute.xlu0 %6169 }
0x315f   : > { %10893 = vpow2.f32 %v6162_v35  ;;  %10284 = vmatpush3.msk.msra.mxu0 %vm1633_vm5, %v6170_v31  ;;  %v6456_v31 = vld [vmem:[%s12481_s27 + $0x70] sm:$0xff] }
0x3160   : > { %10651 = vmatprep.subr.bf16.mxu0 %v11064_v0 }
0x3169   : > { %v10894_v36 = vpop.eup %10893 }
0x316a   : > { %v6164_v14 = vsel %vm5433_vm12, %v10894_v36, 0.0 }
0x316b   : > { %6165 = vadd.xlane.f32.xlu1 %v6164_v14 }
0x3197   : > { %v6073_v39 = vpop.f32.mrb[64].mxu0 }
0x3198   : > { %v6077_v10 = vadd.f32 %v6073_v39, %v5833_v63  ;;  %v10277_v40 = vpop.f32.mrb[65].mxu0  ;;  %v6443_v63 = vld [vmem:[%s12481_s27 + $0x8] sm:$0xff] }
0x3199   : > { %v10658_v2 = vpack.c.bf16 %v6443_v63, %v6442_v62 }
0x31f8   : > { %v6166_v41 = vpop.xlane.xlu1 %6165 }
0x31f9   : > { %10895 = vrcp.f32 %v6166_v41 }
0x3203   : > { %v10896_v42 = vpop.eup %10895 }
0x3204   : > { %v6168_v43 = vmul.f32 %v10896_v42, %v10894_v36  ;;  %v6457_v36 = vld [vmem:[%s12481_s27 + $0x78] sm:$0xff]  ;;  %v9482_v42 = vld [vmem:[%s12486_s23] ss:$0 sm:$0xff]  ;;  %s12489_s23 = sld [smem:[#allocation25_spill]] }
0x3205   : > { %v10679_v14 = vpack.c.bf16 %v6457_v36, %v6456_v31 }
0x3206   : > { %10286 = vmatmul.mubr.msk.f32.vlgmr.msra.gmra.mrb[66].mxu0 %vm1629_vm6, %v6168_v43 }
0x3207   : > { %10301 = vmatprep.mubr.msk.f32.mxu0 %vm11065_vm0, %v11066_v1  ;;  %10653 = vmatpush3.bf16.msra.mxu0 %v10652_v59 }
0x3208   : > { %10654 = vmatprep.subr.bf16.mxu0 %v11064_v0 }
0x320a   : > { %v9484_v63 = vld [vmem:[%s12489_s23] ss:$0 sm:$0xff] }
0x32d9   : > { %v6242_v44 = vpop.f32.mrb[66].mxu0 }
0x32da   : > { %v10287_v22 = vpop.f32.mrb[67].mxu0  ;;  %10291 = vmatmul.mubr.msk.f32.vlgmr.msra.gmra.mrb[46].mxu1 %vm1532_vm3, %v6242_v44 }
0x32db   : > { %10336 = vmatprep.mubr.msk.f32.mxu1 %vm11065_vm0, %v11066_v1  ;;  %10659 = vmatpush3.bf16.msra.mxu1 %v10658_v2 }
0x32dc   : > { %10660 = vmatprep.subr.bf16.mxu1 %v11064_v0 }
0x32df   : > { %10662 = vmatpush3.bf16.msra.mxu1 %v10661_v4 }
0x32e0   : > { %10663 = vmatprep.subr.bf16.mxu1 %v11064_v0 }
0x32e3   : > { %10665 = vmatpush3.bf16.msra.mxu1 %v10664_v6 }
0x32e4   : > { %10666 = vmatprep.subr.bf16.mxu1 %v11064_v0 }
0x32e7   : > { %10668 = vmatpush3.bf16.msra.mxu1 %v10667_v9 }
0x32e8   : > { %10669 = vmatprep.subr.bf16.mxu1 %v11064_v0 }
0x32eb   : > { %10671 = vmatpush3.bf16.msra.mxu1 %v10670_v13 }
0x32ec   : > { %10672 = vmatprep.subr.bf16.mxu1 %v11064_v0 }
0x32ef   : > { %10674 = vmatpush3.bf16.msra.mxu1 %v10673_v17 }
0x32f0   : > { %10675 = vmatprep.subr.bf16.mxu1 %v11064_v0 }
0x32f3   : > { %10677 = vmatpush3.bf16.msra.mxu1 %v10676_v20 }
0x32f4   : > { %10678 = vmatprep.subr.bf16.mxu1 %v11064_v0 }
0x32f7   : > { %10680 = vmatpush3.bf16.msra.mxu1 %v10679_v14 }
0x32f8   : > { %10375 = vmatprep.subr.mxu1 %v11066_v1 }
0x33ad   : > { %v6315_v37 = vpop.f32.mrb[46].mxu1 }
0x33ae   : > { %v6319_v46 = vadd.f32 %v6315_v37, %v6077_v10  ;;  %v10292_v47 = vpop.f32.mrb[47].mxu1 }
0x33b0   : > { %v6326_v48 = vadd.f32 %v9477_v45, %v6319_v46 }
0x33b2   : > { %v6327_v50 = vadd.f32 %v6326_v48, %v11868_v8  ;;  %v6359_v8 = vld [vmem:[%s12480_s25 + $0x10] sm:$0xff] }
0x33b3   : > { %v10655_v61 = vpack.c.bf16 %v6360_v60, %v6359_v8 }
0x33b4   : > { %v6330_v51 = vsel %vm5154_vm11, %v6327_v50, 0.0 }
0x33b5   : > { %6331 = vadd.xlane.f32.xlu1 %v6330_v51  ;;  %10656 = vmatpush3.bf16.msra.mxu0 %v10655_v61  ;;  %v9483_v61 = vld [vmem:[%s12487_s22] ss:$0 sm:$0xff]  ;;  %s12490_s22 = smov 64  }
0x33b6   : > { %10681 = vmatprep.subr.bf16.mxu0 %v11064_v0 }
0x3442   : > { %v6332_v52 = vpop.xlane.xlu1 %6331 }
0x3443   : > { %v6333_v53 = vmul.f32 0.03125, %v6332_v52  ;;  %v9485_v52 = vld [vmem:[%s12459_s16 + $0x20] sm:$0xff] }
0x3445   : > { %v6334_v54 = vsub.f32 %v6327_v50, %v6333_v53  ;;  %v9486_v53 = vld [vmem:[%s12459_s16 + $0x28] sm:$0xff] }
0x3447   : > { %v6335_v55 = vmul.f32 %v6334_v54, %v6334_v54 }
0x3449   : > { %v6336_v56 = vsel %vm5154_vm11, %v6335_v55, 0.0  ;;  %v9487_v55 = vld [vmem:[%s12459_s16 + $0x30] sm:$0xff] }
0x344a   : > { %6337 = vadd.xlane.f32.xlu1 %v6336_v56  ;;  %v9488_v56 = vld [vmem:[%s12459_s16 + $0x38] sm:$0xff] }
0x344b   : > { %v10685_v11 = vpack.c.bf16 %v9488_v56, %v9487_v55 }
0x34d7   : > { %v6338_v23 = vpop.xlane.xlu1 %6337 }
0x34d8   : > { %v6339_v24 = vmul.f32 0.03125, %v6338_v23 }
0x34da   : > { %v6340_v27 = vadd.f32 1e-05, %v6339_v24 }
0x34dc   : > { %10897 = vrsqrt.f32 %v6340_v27 }
0x34e6   : > { %v10898_v28 = vpop.eup %10897 }
0x34e7   : > { %v6342_v30 = vmul.f32 %v10898_v28, %v6334_v54  ;;  %v10682_v54 = vpack.c.bf16 %v9486_v53, %v9485_v52  ;;  %v9492_v28 = vld [vmem:[%s12461_s10 + $0x20] sm:$0xff] }
0x34e9   : > { %v6349_v33 = vmul.f32 %v9478_v29, %v6342_v30 }
0x34eb   : > { %v6356_v35 = vadd.f32 %v9479_v32, %v6349_v33 }
0x34ed   : > { %10302 = vmatmul.mubr.msk.f32.vlgmr.msra.gmra.mrb[68].mxu0 %vm1450_vm2, %v6356_v35 }
0x34ee   : > { %10347 = vmatprep.mubr.msk.f32.mxu0 %vm11065_vm0, %v11066_v1  ;;  %10683 = vmatpush3.bf16.msra.mxu0 %v10682_v54 }
0x34ef   : > { %10684 = vmatprep.subr.bf16.mxu0 %v11064_v0 }
0x34f2   : > { %10686 = vmatpush3.bf16.msra.mxu0 %v10685_v11 }
0x34f3   : > { %10350 = vmatprep.subr.mxu0 %v11066_v1 }
0x35c0   : > { %v6437_v39 = vpop.f32.mrb[68].mxu0 }
0x35c1   : > { %v6438_v10 = vadd.f32 %v9480_v38, %v6437_v39  ;;  %v10303_v40 = vpop.f32.mrb[69].mxu0 }
0x35c3   : > { %v6441_v41 = vmax.f32 %v6438_v10, 0.0 }
0x35c5   : > { %10337 = vmatmul.mubr.f32.vlgmr.msra.gmra.mrb[48].mxu1 %v6441_v41 }
0x35c6   : > { %10377 = vmatprep.mubr.msk.f32.mxu1 %vm11065_vm0, %v11066_v1  ;;  %10376 = vmatpush3.msra.mxu1 %v9492_v28 }
0x35c7   : > { %10385 = vmatprep.subr.mxu1 %v11066_v1 }
0x3698   : > { %v6531_v43 = vpop.f32.mrb[48].mxu1 }
0x3699   : > { %v6532_v44 = vadd.f32 %v9482_v42, %v6531_v43  ;;  %v10338_v22 = vpop.f32.mrb[49].mxu1 }
0x369b   : > { %v6535_v45 = vadd.f32 %v6532_v44, %v6356_v35 }
0x369d   : > { %v6538_v37 = vsel %vm5154_vm11, %v6535_v45, 0.0 }
0x369e   : > { %6539 = vadd.xlane.f32.xlu1 %v6538_v37 }
0x372b   : > { %v6540_v46 = vpop.xlane.xlu1 %6539 }
0x372c   : > { %v6541_v47 = vmul.f32 0.03125, %v6540_v46 }
0x372e   : > { %v6542_v48 = vsub.f32 %v6535_v45, %v6541_v47  ;;  %v9493_v45 = vld [vmem:[%s12461_s10 + $0x28] sm:$0xff] }
0x3730   : > { %v6543_v50 = vmul.f32 %v6542_v48, %v6542_v48 }
0x3732   : > { %v6544_v51 = vsel %vm5154_vm11, %v6543_v50, 0.0 }
0x3733   : > { %6545 = vadd.xlane.f32.xlu1 %v6544_v51 }
0x37c0   : > { %v6546_v57 = vpop.xlane.xlu1 %6545 }
0x37c1   : > { %v6547_v59 = vmul.f32 0.03125, %v6546_v57 }
0x37c3   : > { %v6548_v8 = vadd.f32 1e-05, %v6547_v59 }
0x37c5   : > { %10899 = vrsqrt.f32 %v6548_v8 }
0x37cf   : > { %v10900_v60 = vpop.eup %10899 }
0x37d0   : > { %v6550_v62 = vmul.f32 %v10900_v60, %v6542_v48 }
0x37d2   : > { %v6557_v26 = vmul.f32 %v9483_v61, %v6550_v62 }
0x37d4   : > { %v12030_v2 = vadd.f32 %v9484_v63, %v6557_v26 }
0x37d6   : > { %10348 = vmatmul.mubr.msk.f32.vlgmr.msra.gmra.mrb[70].mxu0 %vm1450_vm2, %v12030_v2 }
0x37d7   : > { %10352 = vmatprep.mubr.msk.f32.mxu0 %vm11065_vm0, %v11066_v1 }
0x38a9   : > { %v6647_v4 = vpop.f32.mrb[70].mxu0 }
0x38aa   : > { %v12037_v5 = vadd.f32 %v9490_v3, %v6647_v4  ;;  %v10349_v21 = vpop.f32.mrb[71].mxu0 }
0x38ab   : > { %v9494_v21 = vld [vmem:[%s12461_s10 + $0x30] sm:$0xff] }
0x38ac   : > { %6659 = vrot.lane.b32.xlu1 %v12037_v5, %s12477_s20 }
0x391e   : > { %v6660_v6 = vpop.permute.xlu1 %6659 }
0x391f   : > { %10351 = vmatpush3.xpose.msk.msra.mxu0 %vm1532_vm3, %v6660_v6 }
0x3920   : > { %10355 = vmatprep.subr.mxu0 %v11066_v1 }
0x3922   : > { %10353 = vmatmul.mubr.msk.f32.vlgmr.msra.gmra.mrb[72].mxu0 %vm1532_vm3, %v12037_v5 }
0x3923   : > { %10357 = vmatprep.mubr.msk.f32.mxu0 %vm11065_vm0, %v11066_v1 }
0x39f5   : > { %v6731_v7 = vpop.f32.mrb[72].mxu0 }
0x39f6   : > { %v6735_v49 = vmul.f32 0.35355338, %v6731_v7  ;;  %v10354_v9 = vpop.f32.mrb[73].mxu0 }
0x39f8   : > { %v6736_v34 = vsel %vm4258_vm8, %v6735_v49, -inf }
0x39f9   : > { %6737 = vmax.xlane.f32.xlu0 %v6736_v34 }
0x3a0f   : > { %6747 = vrot.lane.b32.xlu0 %v12037_v5, %s12490_s22 }
0x3a13   : > { %6824 = vrot.lane.b32.xlu0 %v12037_v5, %s12476_s19 }
0x3a86   : > { %v6738_v12 = vpop.xlane.xlu0 %6737 }
0x3a87   : > { %v6739_v13 = vsub.f32 %v6735_v49, %v6738_v12 }
0x3a89   : > { %v6740_v15 = vmul.f32 1.442695, %v6739_v13 }
0x3a8a   : > { %v6748_v16 = vpop.permute.xlu0 %6747 }
0x3a8b   : > { %10901 = vpow2.f32 %v6740_v15  ;;  %10356 = vmatpush3.msk.msra.mxu0 %vm4276_vm9, %v6748_v16 }
0x3a8c   : > { %10360 = vmatprep.subr.mxu0 %v11066_v1 }
0x3a8e   : > { %v6825_v27 = vpop.permute.xlu0 %6824 }
0x3a95   : > { %v10902_v17 = vpop.eup %10901 }
0x3a96   : > { %v6742_v18 = vsel %vm4258_vm8, %v10902_v17, 0.0 }
0x3a97   : > { %6743 = vadd.xlane.f32.xlu1 %v6742_v18 }
0x3aa8   : > { %6826 = vrot.lane.b32.xlu1 %v12037_v5, %s12462_s3 }
0x3b24   : > { %v6744_v19 = vpop.xlane.xlu1 %6743 }
0x3b25   : > { %10903 = vrcp.f32 %v6744_v19 }
0x3b28   : > { %v6827_v24 = vpop.permute.xlu1 %6826 }
0x3b2f   : > { %v10904_v20 = vpop.eup %10903 }
0x3b30   : > { %v6746_v23 = vmul.f32 %v10904_v20, %v10902_v17  ;;  %v9495_v20 = vld [vmem:[%s12461_s10 + $0x38] sm:$0xff] }
0x3b32   : > { %10358 = vmatmul.mubr.msk.f32.vlgmr.msra.gmra.mrb[74].mxu0 %vm4272_vm10, %v6746_v23 }
0x3b33   : > { %10361 = vmatpush3.xpose.msk.msra.mxu0 %vm1532_vm3, %v6827_v24  ;;  %10362 = vmatprep.mubr.msk.f32.mxu0 %vm11065_vm0, %v11066_v1 }
0x3b34   : > { %10365 = vmatprep.subr.mxu0 %v11066_v1 }
0x3b36   : > { %10363 = vmatmul.mubr.msk.f32.vlgmr.msra.gmra.mrb[76].mxu0 %vm1532_vm3, %v6825_v27 }
0x3b37   : > { %10367 = vmatprep.mubr.msk.f32.mxu0 %vm11065_vm0, %v11066_v1 }
0x3c05   : > { %v6820_v29 = vpop.f32.mrb[74].mxu0 }
0x3c06   : > { %v10359_v30 = vpop.f32.mrb[75].mxu0  ;;  %10378 = vmatmul.mubr.msk.f32.vlgmr.msra.gmra.mrb[50].mxu1 %vm1532_vm3, %v6820_v29 }
0x3c07   : > { %10387 = vmatprep.mubr.msk.f32.mxu1 %vm11065_vm0, %v11066_v1  ;;  %v9529_v30 = vld [vmem:[%s12468_s9 + $0x20] sm:$0xff] }
0x3c09   : > { %v6898_v32 = vpop.f32.mrb[76].mxu0 }
0x3c0a   : > { %v6902_v33 = vmul.f32 0.35355338, %v6898_v32  ;;  %v10364_v35 = vpop.f32.mrb[77].mxu0  ;;  %v9530_v32 = vld [vmem:[%s12468_s9 + $0x28] sm:$0xff] }
0x3c0b   : > { %v9531_v35 = vld [vmem:[%s12468_s9 + $0x30] sm:$0xff] }
0x3c0c   : > { %v6903_v31 = vsel %vm4258_vm8, %v6902_v33, -inf }
0x3c0d   : > { %6904 = vmax.xlane.f32.xlu0 %v6903_v31  ;;  %v9532_v31 = vld [vmem:[%s12468_s9 + $0x38] sm:$0xff] }
0x3c23   : > { %6914 = vrot.lane.b32.xlu0 %v12037_v5, %s12463_s18 }
0x3c27   : > { %7137 = vrot.lane.b32.xlu0 %v12037_v5, %s12464_s7 }
0x3c9a   : > { %v6905_v36 = vpop.xlane.xlu0 %6904 }
0x3c9b   : > { %v6906_v14 = vsub.f32 %v6902_v33, %v6905_v36  ;;  %v10694_v33 = vpack.c.bf16 %v9530_v32, %v9529_v30 }
0x3c9d   : > { %v6907_v38 = vmul.f32 1.442695, %v6906_v14 }
0x3c9e   : > { %v6915_v39 = vpop.permute.xlu0 %6914 }
0x3c9f   : > { %10905 = vpow2.f32 %v6907_v38  ;;  %10366 = vmatpush3.msk.msra.mxu0 %vm4276_vm9, %v6915_v39  ;;  %v10697_v38 = vpack.c.bf16 %v9532_v31, %v9531_v35  ;;  %v9517_v39 = vld [vmem:[%s12467_s8 + $0x1] ss:$0 sm:$0xff] }
0x3ca0   : > { %10370 = vmatprep.subr.mxu0 %v11066_v1 }
0x3ca2   : > { %v7138_v48 = vpop.permute.xlu0 %7137 }
0x3ca9   : > { %v10906_v10 = vpop.eup %10905 }
0x3caa   : > { %v6909_v40 = vsel %vm4258_vm8, %v10906_v10, 0.0 }
0x3cab   : > { %6910 = vadd.xlane.f32.xlu1 %v6909_v40 }
0x3cbc   : > { %7139 = vrot.lane.b32.xlu1 %v12037_v5, %s12465_s4 }
0x3cd9   : > { %v7133_v41 = vpop.f32.mrb[50].mxu1 }
0x3cda   : > { %v10379_v42 = vpop.f32.mrb[51].mxu1 }
0x3d38   : > { %v6911_v43 = vpop.xlane.xlu1 %6910 }
0x3d39   : > { %10907 = vrcp.f32 %v6911_v43 }
0x3d3c   : > { %v7140_v46 = vpop.permute.xlu1 %7139 }
0x3d43   : > { %v10908_v44 = vpop.eup %10907 }
0x3d44   : > { %v6913_v22 = vmul.f32 %v10908_v44, %v10906_v10 }
0x3d46   : > { %10368 = vmatmul.mubr.msk.f32.vlgmr.msra.gmra.mrb[78].mxu0 %vm4272_vm10, %v6913_v22 }
0x3d47   : > { %10371 = vmatpush3.msra.mxu0 %v9493_v45  ;;  %10372 = vmatprep.mubr.msk.f32.mxu0 %vm11065_vm0, %v11066_v1 }
0x3d48   : > { %10380 = vmatprep.subr.mxu0 %v11066_v1 }
0x3e19   : > { %v6987_v37 = vpop.f32.mrb[78].mxu0 }
0x3e1a   : > { %v10369_v47 = vpop.f32.mrb[79].mxu0  ;;  %10373 = vmatmul.mubr.msk.f32.vlgmr.msra.gmra.mrb[80].mxu0 %vm1532_vm3, %v6987_v37 }
0x3e1b   : > { %10381 = vmatpush3.xpose.msk.msra.mxu0 %vm1532_vm3, %v7140_v46  ;;  %10382 = vmatprep.mubr.msk.f32.mxu0 %vm11065_vm0, %v11066_v1 }
0x3e1c   : > { %10390 = vmatprep.subr.mxu0 %v11066_v1 }
0x3e1e   : > { %10383 = vmatmul.mubr.msk.f32.vlgmr.msra.gmra.mrb[82].mxu0 %vm1532_vm3, %v7138_v48 }
0x3e1f   : > { %10392 = vmatprep.mubr.msk.f32.mxu0 %vm11065_vm0, %v11066_v1  ;;  %10391 = vmatpush3.msra.mxu0 %v9494_v21 }
0x3e20   : > { %10400 = vmatprep.subr.mxu0 %v11066_v1 }
0x3eed   : > { %v7060_v50 = vpop.f32.mrb[80].mxu0 }
0x3eee   : > { %v7134_v51 = vadd.f32 %v7133_v41, %v7060_v50  ;;  %v10374_v52 = vpop.f32.mrb[81].mxu0  ;;  %v9534_v50 = vld [vmem:[%s12474_s1 + $0x1] ss:$0 sm:$0xff] }
0x3eef   : > { %v9523_v52 = vld [vmem:[%s12471_s12 + $0x28] sm:$0xff] }
0x3ef1   : > { %v7211_v53 = vpop.f32.mrb[82].mxu0 }
0x3ef2   : > { %v7215_v54 = vmul.f32 0.35355338, %v7211_v53  ;;  %v10384_v55 = vpop.f32.mrb[83].mxu0 }
0x3ef3   : > { %v9525_v55 = vld [vmem:[%s12471_s12 + $0x38] sm:$0xff] }
0x3ef4   : > { %v7216_v56 = vsel %vm4258_vm8, %v7215_v54, -inf }
0x3ef5   : > { %7217 = vmax.xlane.f32.xlu0 %v7216_v56 }
0x3f0b   : > { %7227 = vrot.lane.b32.xlu0 %v12037_v5, %s12466_s5  ;;  %s12491_s5 = sld [smem:[#allocation18_spill]] }
0x3f0f   : > { %7378 = vrot.lane.b32.xlu0 %v12037_v5, %s12456_s26 }
0x3f82   : > { %v7218_v11 = vpop.xlane.xlu0 %7217 }
0x3f83   : > { %v7219_v57 = vsub.f32 %v7215_v54, %v7218_v11  ;;  %v9524_v54 = vld [vmem:[%s12471_s12 + $0x30] sm:$0xff] }
0x3f84   : > { %v10691_v56 = vpack.c.bf16 %v9525_v55, %v9524_v54  ;;  %v10946_v55 = vld [vmem:[%s11436_s15] ss:$0 sm:$0xff] }
0x3f85   : > { %v7220_v59 = vmul.f32 1.442695, %v7219_v57 }
0x3f86   : > { %v7228_v8 = vpop.permute.xlu0 %7227 }
0x3f87   : > { %10909 = vpow2.f32 %v7220_v59  ;;  %10386 = vmatpush3.msk.msra.mxu1 %vm4276_vm9, %v7228_v8 }
0x3f88   : > { %10395 = vmatprep.subr.mxu1 %v11066_v1 }
0x3f8a   : > { %v7379_v4 = vpop.permute.xlu0 %7378 }
0x3f91   : > { %v10910_v60 = vpop.eup %10909 }
0x3f92   : > { %v7222_v61 = vsel %vm4258_vm8, %v10910_v60, 0.0 }
0x3f93   : > { %7223 = vadd.xlane.f32.xlu1 %v7222_v61 }
0x3fa4   : > { %7380 = vrot.lane.b32.xlu1 %v12037_v5, %s12457_s28 }
0x4020   : > { %v7224_v62 = vpop.xlane.xlu1 %7223 }
0x4021   : > { %10911 = vrcp.f32 %v7224_v62  ;;  %v9521_v62 = vld [vmem:[%s12473_s14 + $0x1] ss:$0 sm:$0xff] }
0x4024   : > { %v7381_v3 = vpop.permute.xlu1 %7380 }
0x402b   : > { %v10912_v63 = vpop.eup %10911 }
0x402c   : > { %v7226_v26 = vmul.f32 %v10912_v63, %v10910_v60  ;;  %v9520_v60 = vld [vmem:[%s12472_s13 + $0x1] ss:$0 sm:$0xff] }
0x402e   : > { %10388 = vmatmul.mubr.msk.f32.vlgmr.msra.gmra.mrb[52].mxu1 %vm4272_vm10, %v7226_v26 }
0x402f   : > { %10396 = vmatpush3.xpose.msk.msra.mxu1 %vm1532_vm3, %v7381_v3  ;;  %10397 = vmatprep.mubr.msk.f32.mxu1 %vm11065_vm0, %v11066_v1  ;;  %v9527_v3 = vld [vmem:[%s12475_s2 + $0x1] ss:$0 sm:$0xff] }
0x4030   : > { %10405 = vmatprep.subr.mxu1 %v11066_v1 }
0x4032   : > { %10398 = vmatmul.mubr.msk.f32.vlgmr.msra.gmra.mrb[54].mxu1 %vm1532_vm3, %v7379_v4 }
0x4033   : > { %10407 = vmatprep.mubr.msk.f32.mxu1 %vm11065_vm0, %v11066_v1  ;;  %10406 = vmatpush3.msra.mxu1 %v9495_v20 }
0x4034   : > { %10693 = vmatprep.subr.bf16.mxu1 %v11064_v0 }
0x4101   : > { %v7300_v6 = vpop.f32.mrb[52].mxu1 }
0x4102   : > { %v10389_v7 = vpop.f32.mrb[53].mxu1  ;;  %10393 = vmatmul.mubr.msk.f32.vlgmr.msra.gmra.mrb[84].mxu0 %vm1532_vm3, %v7300_v6 }
0x4103   : > { %10402 = vmatprep.mubr.msk.f32.mxu0 %vm11065_vm0, %v11066_v1 }
0x4105   : > { %v7452_v49 = vpop.f32.mrb[54].mxu1 }
0x4106   : > { %v7456_v9 = vmul.f32 0.35355338, %v7452_v49  ;;  %v10399_v34 = vpop.f32.mrb[55].mxu1 }
0x4108   : > { %v7457_v12 = vsel %vm4258_vm8, %v7456_v9, -inf }
0x4109   : > { %7458 = vmax.xlane.f32.xlu0 %v7457_v12 }
0x411f   : > { %7468 = vrot.lane.b32.xlu0 %v12037_v5, %s12458_s0  ;;  %s12496_s0 = sld [smem:[#allocation51_spill]] }
0x4196   : > { %v7459_v13 = vpop.xlane.xlu0 %7458 }
0x4197   : > { %v7460_v15 = vsub.f32 %v7456_v9, %v7459_v13 }
0x4199   : > { %v7461_v16 = vmul.f32 1.442695, %v7460_v15 }
0x419a   : > { %v7469_v17 = vpop.permute.xlu0 %7468 }
0x419b   : > { %10913 = vpow2.f32 %v7461_v16  ;;  %10401 = vmatpush3.msk.msra.mxu0 %vm4276_vm9, %v7469_v17 }
0x419c   : > { %10687 = vmatprep.subr.bf16.mxu0 %v11064_v0 }
0x41a5   : > { %v10914_v18 = vpop.eup %10913 }
0x41a6   : > { %v7463_v19 = vsel %vm4258_vm8, %v10914_v18, 0.0 }
0x41a7   : > { %7464 = vadd.xlane.f32.xlu1 %v7463_v19 }
0x41d5   : > { %v7373_v5 = vpop.f32.mrb[84].mxu0 }
0x41d6   : > { %v7377_v23 = vadd.f32 %v7373_v5, %v7134_v51  ;;  %v10394_v24 = vpop.f32.mrb[85].mxu0 }
0x4234   : > { %v7465_v27 = vpop.xlane.xlu1 %7464 }
0x4235   : > { %10915 = vrcp.f32 %v7465_v27 }
0x423f   : > { %v10916_v28 = vpop.eup %10915 }
0x4240   : > { %v7467_v29 = vmul.f32 %v10916_v28, %v10914_v18 }
0x4242   : > { %10403 = vmatmul.mubr.msk.f32.vlgmr.msra.gmra.mrb[86].mxu0 %vm4272_vm10, %v7467_v29 }
0x4243   : > { %10418 = vmatprep.mubr.msk.f32.mxu0 %vm11065_vm0, %v11066_v1 }
0x4315   : > { %v7541_v36 = vpop.f32.mrb[86].mxu0 }
0x4316   : > { %v10404_v14 = vpop.f32.mrb[87].mxu0  ;;  %10408 = vmatmul.mubr.msk.f32.vlgmr.msra.gmra.mrb[56].mxu1 %vm1532_vm3, %v7541_v36 }
0x4317   : > { %10695 = vmatpush3.bf16.msra.mxu1 %v10694_v33  ;;  %10429 = vmatprep.mubr.msk.f32.mxu1 %vm11065_vm0, %v11066_v1 }
0x4318   : > { %10696 = vmatprep.subr.bf16.mxu1 %v11064_v0 }
0x431b   : > { %10698 = vmatpush3.bf16.msra.mxu1 %v10697_v38 }
0x431c   : > { %10437 = vmatprep.subr.mxu1 %v11066_v1 }
0x431e   : > { %10430 = vmatmul.mubr.msk.f32.vlgmr.msra.gmra.mrb[58].mxu1 %vm1450_vm2, %v11854_v58 }
0x431f   : > { %10439 = vmatprep.mubr.msk.f32.mxu1 %vm11065_vm0, %v11066_v1 }
0x43e9   : > { %v7614_v10 = vpop.f32.mrb[56].mxu1 }
0x43ea   : > { %v7618_v40 = vadd.f32 %v7614_v10, %v7377_v23  ;;  %v10409_v41 = vpop.f32.mrb[57].mxu1 }
0x43eb   : > { %v9536_v41 = vld [vmem:[%s12478_s21 + $0x20] sm:$0xff] }
0x43ec   : > { %v7625_v42 = vadd.f32 %v9517_v39, %v7618_v40 }
0x43ee   : > { %v7626_v43 = vadd.f32 %v7625_v42, %v12030_v2  ;;  %v9522_v2 = vld [vmem:[%s12471_s12 + $0x20] sm:$0xff]  ;;  %v9537_v42 = vld [vmem:[%s12478_s21 + $0x28] sm:$0xff] }
0x43ef   : > { %v10688_v53 = vpack.c.bf16 %v9523_v52, %v9522_v2 }
0x43f0   : > { %v7631_v44 = vsel %vm5154_vm11, %v7626_v43, 0.0 }
0x43f1   : > { %v7823_v22 = vpop.f32.mrb[58].mxu1  ;;  %7632 = vadd.xlane.f32.xlu1 %v7631_v44  ;;  %10689 = vmatpush3.bf16.msra.mxu0 %v10688_v53 }
0x43f2   : > { %v10431_v45 = vpop.f32.mrb[59].mxu1  ;;  %v12145_v51 = vadd.f32 %v9534_v50, %v7823_v22  ;;  %10690 = vmatprep.subr.bf16.mxu0 %v11064_v0 }
0x43f5   : > { %10692 = vmatpush3.bf16.msra.mxu0 %v10691_v56 }
0x43f6   : > { %10432 = vmatprep.subr.mxu0 %v11066_v1 }
0x447e   : > { %v7633_v58 = vpop.xlane.xlu1 %7632 }
0x447f   : > { %v7634_v37 = vmul.f32 0.03125, %v7633_v58 }
0x4481   : > { %v7635_v46 = vsub.f32 %v7626_v43, %v7634_v37 }
0x4483   : > { %v7636_v47 = vmul.f32 %v7635_v46, %v7635_v46 }
0x4485   : > { %v7637_v48 = vsel %vm5154_vm11, %v7636_v47, 0.0 }
0x4486   : > { %7638 = vadd.xlane.f32.xlu1 %v7637_v48 }
0x4497   : > { %8002 = vrot.lane.b32.xlu1 %v12145_v51, %s12476_s19 }
0x4513   : > { %v7639_v11 = vpop.xlane.xlu1 %7638 }
0x4514   : > { %v7640_v57 = vmul.f32 0.03125, %v7639_v11 }
0x4516   : > { %v7641_v59 = vadd.f32 1e-05, %v7640_v57 }
0x4517   : > { %v8003_v7 = vpop.permute.xlu1 %8002 }
0x4518   : > { %10917 = vrsqrt.f32 %v7641_v59 }
0x4522   : > { %v10918_v8 = vpop.eup %10917 }
0x4523   : > { %v7643_v61 = vmul.f32 %v10918_v8, %v7635_v46 }
0x4525   : > { %v7650_v63 = vmul.f32 %v9520_v60, %v7643_v61 }
0x4527   : > { %v12157_v26 = vadd.f32 %v9521_v62, %v7650_v63 }
0x4529   : > { %10419 = vmatmul.mubr.msk.f32.vlgmr.msra.gmra.mrb[88].mxu0 %vm1450_vm2, %v12157_v26 }
0x452a   : > { %10433 = vmatpush3.xpose.msk.msra.mxu0 %vm1532_vm3, %v12145_v51  ;;  %10434 = vmatprep.mubr.msk.f32.mxu0 %vm11065_vm0, %v11066_v1 }
0x452b   : > { %10442 = vmatprep.subr.mxu0 %v11066_v1 }
0x45fc   : > { %v7740_v4 = vpop.f32.mrb[88].mxu0 }
0x45fd   : > { %v12167_v21 = vadd.f32 %v9527_v3, %v7740_v4  ;;  %v10420_v6 = vpop.f32.mrb[89].mxu0 }
0x45ff   : > { %8000 = vrot.lane.b32.xlu0 %v12167_v21, %s12476_s19  ;;  %10435 = vmatmul.mubr.msk.f32.vlgmr.msra.gmra.mrb[90].mxu0 %vm1532_vm3, %v12167_v21  ;;  %s12493_s19 = sld [smem:[#allocation32_spill]] }
0x4600   : > { %10443 = vmatpush3.xpose.msk.msra.mxu0 %vm1532_vm3, %v8003_v7  ;;  %10444 = vmatprep.mubr.msk.f32.mxu0 %vm11065_vm0, %v11066_v1  ;;  %v9538_v7 = vld [vmem:[%s12478_s21 + $0x30] sm:$0xff] }
0x4601   : > { %10452 = vmatprep.subr.mxu0 %v11066_v1 }
0x4671   : > { %v8001_v49 = vpop.permute.xlu0 %8000 }
0x4672   : > { %10445 = vmatmul.mubr.msk.f32.vlgmr.msra.gmra.mrb[92].mxu0 %vm1532_vm3, %v8001_v49 }
0x4673   : > { %10454 = vmatprep.mubr.msk.f32.mxu0 %vm11065_vm0, %v11066_v1  ;;  %10453 = vmatpush3.msra.mxu0 %v9537_v42 }
0x4674   : > { %10462 = vmatprep.subr.mxu0 %v11066_v1 }
0x46d2   : > { %v7906_v9 = vpop.f32.mrb[90].mxu0 }
0x46d3   : > { %v7910_v34 = vmul.f32 0.35355338, %v7906_v9  ;;  %v10436_v12 = vpop.f32.mrb[91].mxu0 }
0x46d5   : > { %v7911_v13 = vadd.f32 %v11897_v25, %v7910_v34 }
0x46d7   : > { %v7912_v15 = vsel %vm5433_vm12, %v7911_v13, -inf }
0x46d8   : > { %7913 = vmax.xlane.f32.xlu0 %v7912_v15 }
0x4745   : > { %v8074_v16 = vpop.f32.mrb[92].mxu0 }
0x4746   : > { %v8078_v17 = vmul.f32 0.35355338, %v8074_v16  ;;  %v10446_v18 = vpop.f32.mrb[93].mxu0 }
0x4748   : > { %v8079_v19 = vadd.f32 %v11897_v25, %v8078_v17 }
0x474a   : > { %v8080_v20 = vsel %vm5433_vm12, %v8079_v19, -inf }
0x474b   : > { %8081 = vmax.xlane.f32.xlu1 %v8080_v20 }
0x475c   : > { %8091 = vrot.lane.b32.xlu1 %v12145_v51, %s12462_s3  ;;  %s12492_s3 = sld [smem:[#allocation48_spill]] }
0x4760   : > { %8314 = vrot.lane.b32.xlu1 %v12167_v21, %s12464_s7 }
0x4765   : > { %v7914_v5 = vpop.xlane.xlu0 %7913 }
0x4766   : > { %v7915_v23 = vsub.f32 %v7911_v13, %v7914_v5 }
0x4768   : > { %v7916_v24 = vmul.f32 1.442695, %v7915_v23  ;;  %v9539_v23 = vld [vmem:[%s12478_s21 + $0x38] sm:$0xff] }
0x476a   : > { %10919 = vpow2.f32 %v7916_v24 }
0x4774   : > { %v10920_v27 = vpop.eup %10919 }
0x4775   : > { %v7918_v28 = vsel %vm5433_vm12, %v10920_v27, 0.0 }
0x4776   : > { %7919 = vadd.xlane.f32.xlu0 %v7918_v28 }
0x47d8   : > { %v8082_v29 = vpop.xlane.xlu1 %8081 }
0x47d9   : > { %v8083_v30 = vsub.f32 %v8079_v19, %v8082_v29 }
0x47db   : > { %v8084_v25 = vmul.f32 1.442695, %v8083_v30 }
0x47dc   : > { %v8092_v39 = vpop.permute.xlu1 %8091 }
0x47dd   : > { %10921 = vpow2.f32 %v8084_v25 }
0x47e0   : > { %v8315_v37 = vpop.permute.xlu1 %8314 }
0x47e7   : > { %v10922_v32 = vpop.eup %10921 }
0x47e8   : > { %v8086_v33 = vsel %vm5433_vm12, %v10922_v32, 0.0 }
0x47e9   : > { %8087 = vadd.xlane.f32.xlu0 %v8086_v33 }
0x47ff   : > { %7923 = vrot.lane.b32.xlu0 %v12145_v51, %s12477_s20  ;;  %s12494_s20 = sld [smem:[#allocation31_spill]] }
0x4803   : > { %8316 = vrot.lane.b32.xlu0 %v12145_v51, %s12464_s7  ;;  %v7920_v35 = vpop.xlane.xlu0 %7919 }
0x4804   : > { %10923 = vrcp.f32 %v7920_v35  ;;  %v9561_v35 = vld [vmem:[%s12479_s24 + $0x1] ss:$0 sm:$0xff] }
0x480e   : > { %v10924_v36 = vpop.eup %10923 }
0x480f   : > { %v7922_v14 = vmul.f32 %v10924_v36, %v10920_v27 }
0x4876   : > { %v8088_v31 = vpop.xlane.xlu0 %8087 }
0x4877   : > { %10925 = vrcp.f32 %v8088_v31 }
0x487a   : > { %v7924_v38 = vpop.permute.xlu0 %7923 }
0x487b   : > { %10438 = vmatpush3.msk.msra.mxu1 %vm1633_vm5, %v7924_v38 }
0x487c   : > { %10440 = vmatmul.mubr.msk.f32.vlgmr.msra.gmra.mrb[60].mxu1 %vm1629_vm6, %v7922_v14  ;;  %10447 = vmatprep.subr.mxu1 %v11066_v1 }
0x487d   : > { %10448 = vmatpush3.msk.msra.mxu1 %vm1633_vm5, %v8092_v39  ;;  %10449 = vmatprep.mubr.msk.f32.mxu1 %vm11065_vm0, %v11066_v1 }
0x487e   : > { %10457 = vmatprep.subr.mxu1 %v11066_v1  ;;  %v8317_v45 = vpop.permute.xlu0 %8316 }
0x4881   : > { %v10926_v10 = vpop.eup %10925 }
0x4882   : > { %v8090_v40 = vmul.f32 %v10926_v10, %v10922_v32 }
0x4884   : > { %10450 = vmatmul.mubr.msk.f32.vlgmr.msra.gmra.mrb[62].mxu1 %vm1629_vm6, %v8090_v40 }
0x4885   : > { %10459 = vmatprep.mubr.msk.f32.mxu1 %vm11065_vm0, %v11066_v1  ;;  %10458 = vmatpush3.msra.mxu1 %v9536_v41 }
0x4886   : > { %10467 = vmatprep.subr.mxu1 %v11066_v1 }
0x494f   : > { %v7996_v43 = vpop.f32.mrb[60].mxu1 }
0x4950   : > { %v10441_v44 = vpop.f32.mrb[61].mxu1  ;;  %10460 = vmatmul.mubr.msk.f32.vlgmr.msra.gmra.mrb[64].mxu1 %vm1532_vm3, %v7996_v43 }
0x4951   : > { %10469 = vmatprep.mubr.msk.f32.mxu1 %vm11065_vm0, %v11066_v1 }
0x4957   : > { %v8164_v22 = vpop.f32.mrb[62].mxu1 }
0x4958   : > { %v10451_v58 = vpop.f32.mrb[63].mxu1  ;;  %10455 = vmatmul.mubr.msk.f32.vlgmr.msra.gmra.mrb[94].mxu0 %vm1532_vm3, %v8164_v22  ;;  %v9566_v22 = vld [vmem:[%s12480_s25 + $0x20] sm:$0xff] }
0x4959   : > { %10463 = vmatpush3.xpose.msk.msra.mxu0 %vm1532_vm3, %v8317_v45  ;;  %10464 = vmatprep.mubr.msk.f32.mxu0 %vm11065_vm0, %v11066_v1  ;;  %v9567_v45 = vld [vmem:[%s12480_s25 + $0x28] sm:$0xff] }
0x495a   : > { %10472 = vmatprep.subr.mxu0 %v11066_v1  ;;  %v10700_v58 = vpack.c.bf16 %v9567_v45, %v9566_v22 }
0x495c   : > { %10465 = vmatmul.mubr.msk.f32.vlgmr.msra.gmra.mrb[96].mxu0 %vm1532_vm3, %v8315_v37  ;;  %v9569_v37 = vld [vmem:[%s12480_s25 + $0x38] sm:$0xff] }
0x495d   : > { %10474 = vmatprep.mubr.msk.f32.mxu0 %vm11065_vm0, %v11066_v1  ;;  %10473 = vmatpush3.msra.mxu0 %v9538_v7 }
0x495e   : > { %10482 = vmatprep.subr.mxu0 %v11066_v1 }
0x4a23   : > { %v8310_v46 = vpop.f32.mrb[64].mxu1 }
0x4a24   : > { %v10461_v47 = vpop.f32.mrb[65].mxu1 }
0x4a25   : > { %v9573_v47 = vld [vmem:[%s12481_s27 + $0x80] sm:$0xff] }
0x4a2b   : > { %v8237_v48 = vpop.f32.mrb[94].mxu0 }
0x4a2c   : > { %v8311_v50 = vadd.f32 %v8310_v46, %v8237_v48  ;;  %v10456_v2 = vpop.f32.mrb[95].mxu0  ;;  %v9574_v48 = vld [vmem:[%s12481_s27 + $0x88] sm:$0xff] }
0x4a2d   : > { %v10706_v2 = vpack.c.bf16 %v9574_v48, %v9573_v47  ;;  %v9080_v48 = vld [vmem:[%s12492_s3] sm:$0xff] }
0x4a2f   : > { %v8388_v52 = vpop.f32.mrb[96].mxu0 }
0x4a30   : > { %v8392_v53 = vmul.f32 0.35355338, %v8388_v52  ;;  %v10466_v54 = vpop.f32.mrb[97].mxu0  ;;  %v9576_v52 = vld [vmem:[%s12481_s27 + $0x98] sm:$0xff] }
0x4a31   : > { %v9577_v54 = vld [vmem:[%s12481_s27 + $0xa0] sm:$0xff] }
0x4a32   : > { %v8393_v56 = vadd.f32 %v10946_v55, %v8392_v53 }
0x4a34   : > { %v8394_v11 = vsel %vm5433_vm12, %v8393_v56, -inf }
0x4a35   : > { %8395 = vmax.xlane.f32.xlu0 %v8394_v11  ;;  %v9579_v11 = vld [vmem:[%s12481_s27 + $0xb0] sm:$0xff] }
0x4a4b   : > { %8405 = vrot.lane.b32.xlu0 %v12145_v51, %s12465_s4  ;;  %s12495_s4 = sld [smem:[#allocation53_spill]] }
0x4a4f   : > { %8556 = vrot.lane.b32.xlu0 %v12167_v21, %s12456_s26 }
0x4a51   : > { %s12497_s7 = sshll.u32 %s12495_s4, 3 }
0x4a52   : > { %s1346_s15 = scalar_lea.vmem %s12496_s0, %s12497_s7 }
0x4ac2   : > { %v8396_v57 = vpop.xlane.xlu0 %8395 }
0x4ac3   : > { %v8397_v59 = vsub.f32 %v8393_v56, %v8396_v57  ;;  %v9580_v57 = vld [vmem:[%s12481_s27 + $0xb8] sm:$0xff] }
0x4ac5   : > { %v8398_v8 = vmul.f32 1.442695, %v8397_v59  ;;  %v10715_v59 = vpack.c.bf16 %v9580_v57, %v9579_v11 }
0x4ac6   : > { %v8406_v60 = vpop.permute.xlu0 %8405 }
0x4ac7   : > { %10927 = vpow2.f32 %v8398_v8  ;;  %10468 = vmatpush3.msk.msra.mxu1 %vm1633_vm5, %v8406_v60  ;;  %v9581_v8 = vld [vmem:[%s12481_s27 + $0xc0] sm:$0xff]  ;;  %v9582_v60 = vld [vmem:[%s12481_s27 + $0xc8] sm:$0xff] }
0x4ac8   : > { %10477 = vmatprep.subr.mxu1 %v11066_v1 }
0x4aca   : > { %v8557_v6 = vpop.permute.xlu0 %8556 }
0x4ad1   : > { %v10928_v61 = vpop.eup %10927 }
0x4ad2   : > { %v8400_v62 = vsel %vm5433_vm12, %v10928_v61, 0.0 }
0x4ad3   : > { %8401 = vadd.xlane.f32.xlu1 %v8400_v62  ;;  %v9583_v62 = vld [vmem:[%s12481_s27 + $0xd0] sm:$0xff] }
0x4ae4   : > { %8558 = vrot.lane.b32.xlu1 %v12145_v51, %s12456_s26 }
0x4b60   : > { %v8402_v63 = vpop.xlane.xlu1 %8401 }
0x4b61   : > { %10929 = vrcp.f32 %v8402_v63  ;;  %v9584_v63 = vld [vmem:[%s12481_s27 + $0xd8] sm:$0xff] }
0x4b64   : > { %v8559_v21 = vpop.permute.xlu1 %8558 }
0x4b6b   : > { %v10930_v3 = vpop.eup %10929 }
0x4b6c   : > { %v8404_v4 = vmul.f32 %v10930_v3, %v10928_v61  ;;  %v10718_v61 = vpack.c.bf16 %v9582_v60, %v9581_v8  ;;  %v10721_v3 = vpack.c.bf16 %v9584_v63, %v9583_v62  ;;  %v9596_v60 = vld [vmem:[%s12494_s20] ss:$0 sm:$0xff] }
0x4b6d   : > { %v9597_v63 = vld [vmem:[#allocation2] ss:$0 sm:$0xff] }
0x4b6e   : > { %10470 = vmatmul.mubr.msk.f32.vlgmr.msra.gmra.mrb[66].mxu1 %vm1629_vm6, %v8404_v4  ;;  %v9585_v4 = vld [vmem:[%s12481_s27 + $0xe0] sm:$0xff] }
0x4b6f   : > { %10478 = vmatpush3.xpose.msk.msra.mxu1 %vm1532_vm3, %v8559_v21  ;;  %10479 = vmatprep.mubr.msk.f32.mxu1 %vm11065_vm0, %v11066_v1  ;;  %v9586_v21 = vld [vmem:[%s12481_s27 + $0xe8] sm:$0xff] }
0x4b70   : > { %10487 = vmatprep.subr.mxu1 %v11066_v1 }
0x4b72   : > { %10480 = vmatmul.mubr.msk.f32.vlgmr.msra.gmra.mrb[68].mxu1 %vm1532_vm3, %v8557_v6  ;;  %v10724_v6 = vpack.c.bf16 %v9586_v21, %v9585_v4 }
0x4b73   : > { %10489 = vmatprep.mubr.msk.f32.mxu1 %vm11065_vm0, %v11066_v1  ;;  %10488 = vmatpush3.msra.mxu1 %v9539_v23 }
0x4b74   : > { %10705 = vmatprep.subr.bf16.mxu1 %v11064_v0 }
0x4c41   : > { %v8478_v49 = vpop.f32.mrb[66].mxu1 }
0x4c42   : > { %v10471_v9 = vpop.f32.mrb[67].mxu1  ;;  %10475 = vmatmul.mubr.msk.f32.vlgmr.msra.gmra.mrb[98].mxu0 %vm1532_vm3, %v8478_v49 }
0x4c43   : > { %10484 = vmatprep.mubr.msk.f32.mxu0 %vm11065_vm0, %v11066_v1 }
0x4c45   : > { %v8630_v34 = vpop.f32.mrb[68].mxu1 }
0x4c46   : > { %v8634_v12 = vmul.f32 0.35355338, %v8630_v34  ;;  %v10481_v13 = vpop.f32.mrb[69].mxu1 }
0x4c48   : > { %v8635_v15 = vadd.f32 %v10946_v55, %v8634_v12  ;;  %v9578_v55 = vld [vmem:[%s12481_s27 + $0xa8] sm:$0xff]  ;;  %v9564_v12 = vld [vmem:[%s12482_s29 + $0x1] ss:$0 sm:$0xff] }
0x4c49   : > { %v10712_v56 = vpack.c.bf16 %v9578_v55, %v9577_v54 }
0x4c4a   : > { %v8636_v16 = vsel %vm5433_vm12, %v8635_v15, -inf }
0x4c4b   : > { %8637 = vmax.xlane.f32.xlu1 %v8636_v16 }
0x4cd8   : > { %v8638_v17 = vpop.xlane.xlu1 %8637 }
0x4cd9   : > { %v8639_v18 = vsub.f32 %v8635_v15, %v8638_v17  ;;  %v9565_v15 = vld [vmem:[%s12483_s30 + $0x1] ss:$0 sm:$0xff] }
0x4cdb   : > { %v8640_v19 = vmul.f32 1.442695, %v8639_v18  ;;  %v9587_v18 = vld [vmem:[%s12481_s27 + $0xf0] sm:$0xff] }
0x4cdd   : > { %10931 = vpow2.f32 %v8640_v19  ;;  %v9588_v19 = vld [vmem:[%s12481_s27 + $0xf8] sm:$0xff] }
0x4ce7   : > { %v10932_v20 = vpop.eup %10931 }
0x4ce8   : > { %v8642_v5 = vsel %vm5433_vm12, %v10932_v20, 0.0 }
0x4ce9   : > { %8643 = vadd.xlane.f32.xlu0 %v8642_v5  ;;  %v9571_v5 = vld [vmem:[%s12485_s6 + $0x1] ss:$0 sm:$0xff] }
0x4cff   : > { %8647 = vrot.lane.b32.xlu0 %v12145_v51, %s12457_s28 }
0x4d15   : > { %v8551_v24 = vpop.f32.mrb[98].mxu0 }
0x4d16   : > { %v8555_v27 = vadd.f32 %v8551_v24, %v8311_v50  ;;  %v10476_v28 = vpop.f32.mrb[99].mxu0  ;;  %v9575_v50 = vld [vmem:[%s12481_s27 + $0x90] sm:$0xff] }
0x4d17   : > { %v10709_v53 = vpack.c.bf16 %v9576_v52, %v9575_v50  ;;  %v9081_v50 = vld [vmem:[%s12492_s3 + $0x8] sm:$0xff]  ;;  %v9082_v52 = vld [vmem:[%s12492_s3 + $0x10] sm:$0xff] }
0x4d76   : > { %v8644_v29 = vpop.xlane.xlu0 %8643 }
0x4d77   : > { %10933 = vrcp.f32 %v8644_v29  ;;  %v9590_v29 = vld [vmem:[%s12491_s5 + $0x1] ss:$0 sm:$0xff] }
0x4d7a   : > { %v8648_v30 = vpop.permute.xlu0 %8647 }
0x4d7b   : > { %10483 = vmatpush3.msk.msra.mxu0 %vm1633_vm5, %v8648_v30 }
0x4d7c   : > { %10699 = vmatprep.subr.bf16.mxu0 %v11064_v0 }
0x4d81   : > { %v10934_v25 = vpop.eup %10933 }
0x4d82   : > { %v8646_v32 = vmul.f32 %v10934_v25, %v10932_v20  ;;  %v10727_v20 = vpack.c.bf16 %v9588_v19, %v9587_v18 }
0x4d84   : > { %10485 = vmatmul.mubr.msk.f32.vlgmr.msra.gmra.mrb[100].mxu0 %vm1629_vm6, %v8646_v32 }
0x4d85   : > { %10500 = vmatprep.mubr.msk.f32.mxu0 %vm11065_vm0, %v11066_v1  ;;  %10701 = vmatpush3.bf16.msra.mxu0 %v10700_v58 }
0x4d86   : > { %10702 = vmatprep.subr.bf16.mxu0 %v11064_v0 }
0x4e57   : > { %v8720_v51 = vpop.f32.mrb[100].mxu0 }
0x4e58   : > { %v10486_v33 = vpop.f32.mrb[101].mxu0  ;;  %10490 = vmatmul.mubr.msk.f32.vlgmr.msra.gmra.mrb[70].mxu1 %vm1532_vm3, %v8720_v51 }
0x4e59   : > { %10535 = vmatprep.mubr.msk.f32.mxu1 %vm11065_vm0, %v11066_v1  ;;  %10707 = vmatpush3.bf16.msra.mxu1 %v10706_v2  ;;  %v10730_v2 = vpack.c.bf16 %v9081_v50, %v9080_v48 }
0x4e5a   : > { %10708 = vmatprep.subr.bf16.mxu1 %v11064_v0 }
0x4e5d   : > { %10710 = vmatpush3.bf16.msra.mxu1 %v10709_v53  ;;  %v9083_v53 = vld [vmem:[%s12492_s3 + $0x18] sm:$0xff] }
0x4e5e   : > { %10711 = vmatprep.subr.bf16.mxu1 %v11064_v0  ;;  %v10733_v54 = vpack.c.bf16 %v9083_v53, %v9082_v52 }
0x4e61   : > { %10713 = vmatpush3.bf16.msra.mxu1 %v10712_v56 }
0x4e62   : > { %10714 = vmatprep.subr.bf16.mxu1 %v11064_v0 }
0x4e65   : > { %10716 = vmatpush3.bf16.msra.mxu1 %v10715_v59  ;;  %v9595_v59 = vld [vmem:[%s12493_s19] ss:$0 sm:$0xff] }
0x4e66   : > { %10717 = vmatprep.subr.bf16.mxu1 %v11064_v0 }
0x4e69   : > { %10719 = vmatpush3.bf16.msra.mxu1 %v10718_v61 }
0x4e6a   : > { %10720 = vmatprep.subr.bf16.mxu1 %v11064_v0 }
0x4e6d   : > { %10722 = vmatpush3.bf16.msra.mxu1 %v10721_v3 }
0x4e6e   : > { %10723 = vmatprep.subr.bf16.mxu1 %v11064_v0 }
0x4e71   : > { %10725 = vmatpush3.bf16.msra.mxu1 %v10724_v6 }
0x4e72   : > { %10726 = vmatprep.subr.bf16.mxu1 %v11064_v0 }
0x4e75   : > { %10728 = vmatpush3.bf16.msra.mxu1 %v10727_v20 }
0x4f2b   : > { %v8793_v31 = vpop.f32.mrb[70].mxu1 }
0x4f2c   : > { %v8797_v36 = vadd.f32 %v8793_v31, %v8555_v27  ;;  %v10491_v14 = vpop.f32.mrb[71].mxu1 }
0x4f2e   : > { %v8804_v38 = vadd.f32 %v9561_v35, %v8797_v36 }
0x4f30   : > { %v8805_v39 = vadd.f32 %v8804_v38, %v12157_v26  ;;  %v9568_v26 = vld [vmem:[%s12480_s25 + $0x30] sm:$0xff] }
0x4f31   : > { %v10703_v46 = vpack.c.bf16 %v9569_v37, %v9568_v26 }
0x4f32   : > { %v8810_v10 = vsel %vm5154_vm11, %v8805_v39, 0.0 }
0x4f33   : > { %8811 = vadd.xlane.f32.xlu1 %v8810_v10  ;;  %10704 = vmatpush3.bf16.msra.mxu0 %v10703_v46 }
0x4f34   : > { %10729 = vmatprep.subr.bf16.mxu0 %v11064_v0 }
0x4fc0   : > { %v8812_v40 = vpop.xlane.xlu1 %8811 }
0x4fc1   : > { %v8813_v41 = vmul.f32 0.03125, %v8812_v40 }
0x4fc3   : > { %v8814_v42 = vsub.f32 %v8805_v39, %v8813_v41  ;;  %v9593_v41 = vld [vmem:[%s12488_s17 + $0x1] ss:$0 sm:$0xff] }
0x4fc5   : > { %v8815_v43 = vmul.f32 %v8814_v42, %v8814_v42 }
0x4fc7   : > { %v8816_v44 = vsel %vm5154_vm11, %v8815_v43, 0.0  ;;  %v9594_v43 = vld [vmem:[%s12489_s23 + $0x1] ss:$0 sm:$0xff] }
0x4fc8   : > { %8817 = vadd.xlane.f32.xlu1 %v8816_v44 }
0x5055   : > { %v8818_v7 = vpop.xlane.xlu1 %8817 }
0x5056   : > { %v8819_v49 = vmul.f32 0.03125, %v8818_v7 }
0x5058   : > { %v8820_v9 = vadd.f32 1e-05, %v8819_v49 }
0x505a   : > { %10935 = vrsqrt.f32 %v8820_v9 }
0x5064   : > { %v10936_v34 = vpop.eup %10935 }
0x5065   : > { %v8822_v13 = vmul.f32 %v10936_v34, %v8814_v42 }
0x5067   : > { %v8829_v16 = vmul.f32 %v9564_v12, %v8822_v13 }
0x5069   : > { %v8836_v17 = vadd.f32 %v9565_v15, %v8829_v16 }
0x506b   : > { %10501 = vmatmul.mubr.msk.f32.vlgmr.msra.gmra.mrb[102].mxu0 %vm1450_vm2, %v8836_v17 }
0x506c   : > { %10546 = vmatprep.mubr.msk.f32.mxu0 %vm11065_vm0, %v11066_v1  ;;  %10731 = vmatpush3.bf16.msra.mxu0 %v10730_v2 }
0x506d   : > { %10732 = vmatprep.subr.bf16.mxu0 %v11064_v0 }
0x5070   : > { %10734 = vmatpush3.bf16.msra.mxu0 %v10733_v54 }
0x513e   : > { %v8919_v23 = vpop.f32.mrb[102].mxu0 }
0x513f   : > { %v8920_v24 = vadd.f32 %v9571_v5, %v8919_v23  ;;  %v10502_v27 = vpop.f32.mrb[103].mxu0 }
0x5141   : > { %v8923_v28 = vmax.f32 %v8920_v24, 0.0 }
0x5143   : > { %10536 = vmatmul.mubr.f32.vlgmr.msra.gmra.mrb[72].mxu1 %v8923_v28 }
0x5216   : > { %v9015_v30 = vpop.f32.mrb[72].mxu1 }
0x5217   : > { %v9016_v25 = vadd.f32 %v9590_v29, %v9015_v30  ;;  %v10537_v32 = vpop.f32.mrb[73].mxu1 }
0x5219   : > { %v9019_v51 = vadd.f32 %v9016_v25, %v8836_v17 }
0x521b   : > { %v9024_v33 = vsel %vm5154_vm11, %v9019_v51, 0.0 }
0x521c   : > { %9025 = vadd.xlane.f32.xlu1 %v9024_v33 }
0x52a9   : > { %v9026_v1 = vpop.xlane.xlu1 %9025 }
0x52aa   : > { %v9027_v35 = vmul.f32 0.03125, %v9026_v1 }
0x52ac   : > { %v9028_v31 = vsub.f32 %v9019_v51, %v9027_v35 }
0x52ae   : > { %v9029_v36 = vmul.f32 %v9028_v31, %v9028_v31 }
0x52b0   : > { %v9030_v14 = vsel %vm5154_vm11, %v9029_v36, 0.0 }
0x52b1   : > { %9031 = vadd.xlane.f32.xlu1 %v9030_v14 }
0x533e   : > { %v9032_v38 = vpop.xlane.xlu1 %9031 }
0x533f   : > { %v9033_v39 = vmul.f32 0.03125, %v9032_v38 }
0x5341   : > { %v9034_v10 = vadd.f32 1e-05, %v9033_v39 }
0x5343   : > { %10937 = vrsqrt.f32 %v9034_v10 }
0x534d   : > { %v10938_v40 = vpop.eup %10937 }
0x534e   : > { %v9036_v42 = vmul.f32 %v10938_v40, %v9028_v31 }
0x5350   : > { %v9043_v44 = vmul.f32 %v9593_v41, %v9036_v42 }
0x5352   : > { %v9050_v22 = vadd.f32 %v9594_v43, %v9043_v44 }
0x5354   : > { %v9053_v45 = vsel %vm5154_vm11, %v9050_v22, 0.0 }
0x5355   : > { %9054 = vadd.xlane.f32.xlu1 %v9053_v45 }
0x53e2   : > { %v9055_v58 = vpop.xlane.xlu1 %9054 }
0x53e3   : > { %v9056_v26 = vmul.f32 0.03125, %v9055_v58 }
0x53e5   : > { %v9057_v37 = vsub.f32 %v9050_v22, %v9056_v26 }
0x53e7   : > { %v9058_v46 = vmul.f32 %v9057_v37, %v9057_v37 }
0x53e9   : > { %v9059_v47 = vsel %vm5154_vm11, %v9058_v46, 0.0 }
0x53ea   : > { %9060 = vadd.xlane.f32.xlu1 %v9059_v47 }
0x5477   : > { %v9061_v55 = vpop.xlane.xlu1 %9060 }
0x5478   : > { %v9062_v56 = vmul.f32 0.03125, %v9061_v55 }
0x547a   : > { %v9063_v11 = vadd.f32 1e-05, %v9062_v56 }
0x547c   : > { %10939 = vrsqrt.f32 %v9063_v11 }
0x5486   : > { %v10940_v57 = vpop.eup %10939 }
0x5487   : > { %v9065_v8 = vmul.f32 %v10940_v57, %v9057_v37 }
0x5489   : > { %v9072_v61 = vmul.f32 %v9595_v59, %v9065_v8 }
0x548b   : > { %v9079_v62 = vadd.f32 %v9596_v60, %v9072_v61 }
0x548d   : > { %10547 = vmatmul.mubr.msk.f32.vlgmr.msra.gmra.mrb[104].mxu0 %vm1450_vm2, %v9079_v62 }
0x5560   : > { %v9160_v3 = vpop.f32.mrb[104].mxu0 }
0x5561   : > { %v9161_v4 = vadd.f32 %v9597_v63, %v9160_v3  ;;  %v10548_v0 = vpop.f32.mrb[105].mxu0 }
0x5563   : > { %v9164_v21 = vsel %vm4258_vm8, %v9161_v4, -inf }
0x5564   : > { %9165 = vmax.xlane.f32.xlu0 %v9164_v21 }
0x55f1   : > { %v9166_v6 = vpop.xlane.xlu0 %9165 }
0x55f2   : > { %v9167_v7 = vsub.f32 %v9161_v4, %v9166_v6 }
0x55f4   : > { %v9168_v49 = vmul.f32 1.442695, %v9167_v7 }
0x55f6   : > { %10941 = vpow2.f32 %v9168_v49 }
0x5600   : > { %v10942_v9 = vpop.eup %10941 }
0x5601   : > { %v9170_v34 = vsel %vm4258_vm8, %v10942_v9, 0.0 }
0x5602   : > { %9171 = vadd.xlane.f32.xlu1 %v9170_v34 }
0x568f   : > { %v9172_v12 = vpop.xlane.xlu1 %9171 }
0x5690   : > { %10943 = vrcp.f32 %v9172_v12 }
0x569a   : > { %v10944_v13 = vpop.eup %10943 }
0x569b   : > { %v9174_v15 = vmul.f32 %v10944_v13, %v10942_v9 }
0x569d   : > { %9175 = vst.msk [vmem:[%s1346_s15] sm:$0x1f] %vm4258_vm8, %v9174_v15 }
0x569e PF: > { %s12498_s18 = sld [smem:[#allocation52_spill]] }
0x56a4   : > { %s99_s22 = sadd.s32 1, %s12498_s18  }
0x56a5   : > { %p96_p11 = scmp.ge.s32.totalorder %s99_s22, 4  }
0x56a7   :  { %98 = sbr.rel (!%p96_p11) target bundleno = 94 (0x5e), region = 312 }
0x56ae   :  { %9195 = vsyncpa [#allocation3], 1 }
0x56af   :  { %9197 = vsyncpa [#allocation3 + $0x1], 1 }
0x56b0   :  { %9198 = vsyncpa [#allocation5], 1 }

</bundles_post_ra>
